<compile_context>
chip_gen: v7x
topology: tpu7x:2x2x1
jax: 0.10.0
libtpu: 0.0.40
codegen_flags: <defaults>
</compile_context>

<pallas_src>
import functools

import jax
import jax.numpy as jnp
from jax.experimental import pallas as pl
from jax.experimental.pallas import tpu as pltpu

CP = 128  # all channel dims padded to one lane-width


# ----------------------------------------------------------------------------
# The single fused kernel
# ----------------------------------------------------------------------------
def _early_fusion_kernel(x_ref, w1_ref, w3_ref, wp_ref, s_ref, b_ref,
                         o_ref, act_ref, pad_ref, pool_ref, *, H1, W1):
    f32, bf16 = jnp.float32, jnp.bfloat16
    C = CP

    # Spatial sizes of the three stages (MaxPool2d(2, 2, padding=1): d//2 + 1).
    H2, W2 = H1 // 2 + 1, W1 // 2 + 1
    H3, W3 = H2 // 2 + 1, W2 // 2 + 1
    W1p, W2p = W1 + 2, W2 + 2          # flattened row strides (zero-padded width)
    M1, M2, M3 = H1 * W1p, H2 * W2p, H3 * W3

    def bn_relu(acc, i):
        s = s_ref[i:i + 1, :]
        b = b_ref[i:i + 1, :]
        return jnp.maximum(acc * s + b, 0.0)

    def conv3x3(src_ref, w_ref, M, Wp, i):
        # 3x3 / pad=1 conv as ONE matmul: lane-concatenate the 9 shifted views
        # of the zero-padded flattened buffer into a (M, 9C) bf16 LHS and hit
        # the MXU once with K = 9*128 (accumulation stays inside the MXU).
        # Output rows q = h*Wp + w; columns w in [W, W+2) are junk rows that
        # are simply never consumed downstream.
        taps = []
        for t in range(9):
            off = (t // 3) * Wp + (t % 3)
            taps.append(src_ref[off:off + M, :].astype(bf16))
        lhs = jnp.concatenate(taps, axis=1)                       # (M, 9C) bf16
        acc = jnp.dot(lhs, w_ref[...], preferred_element_type=f32)  # (M, C) f32
        return bn_relu(acc, i)

    def conv1x1(y, widx, i):
        z = jnp.dot(y.astype(bf16), wp_ref[widx], preferred_element_type=f32)
        return bn_relu(z, i)

    def maxpool(src_ref, H, W, stride, store_row):
        # nn.MaxPool2d(kernel_size=2, stride=2, padding=1); out = d//2 + 1.
        # src_ref rows are flattened with row stride `stride`; only the first
        # W entries of each row are valid. Each output row is built fully in
        # registers and written with a single contiguous (Wo, C) store.
        Ho, Wo = H // 2 + 1, W // 2 + 1

        def row(r):
            return src_ref[r * stride:r * stride + W, :]

        for ho in range(Ho):
            r0, r1 = 2 * ho - 1, 2 * ho
            if r0 < 0:
                rmax = row(r1)
            elif r1 < H:
                rmax = jnp.maximum(row(r0), row(r1))
            else:
                rmax = row(r0)
            pieces = [rmax[0:1, :]]                 # wo = 0 (col -1 is padding)
            for wo in range(1, Wo):
                c0, c1 = 2 * wo - 1, 2 * wo
                v = rmax[c0:c0 + 1, :]
                if c1 < W:
                    v = jnp.maximum(v, rmax[c1:c1 + 1, :])
                pieces.append(v)
            store_row(ho, jnp.concatenate(pieces, axis=0))        # (Wo, C)

    # ---- stage 1: conv1 (3x3) + bn1 + relu ; conv2 (1x1) + bn2 + relu ------
    y = conv3x3(x_ref, w1_ref, M1, W1p, 0)
    y = conv1x1(y, 0, 1)
    act_ref[0:M1, :] = y

    # ---- maxpool #1: writes straight into the zero-padded conv3 input ------
    pad_ref[...] = jnp.zeros_like(pad_ref)

    def store_pad(ho, vrow):
        base = (ho + 1) * W2p + 1
        pad_ref[base:base + W2, :] = vrow

    maxpool(act_ref, H1, W1, W1p, store_pad)

    # ---- stage 2: conv3 (3x3) + bn3 + relu ; conv4 (1x1) + bn4 + relu ------
    y = conv3x3(pad_ref, w3_ref, M2, W2p, 2)
    y = conv1x1(y, 1, 3)
    act_ref[0:M2, :] = y

    # ---- maxpool #2: compact (H3*W3, C) buffer (1x1 convs need no padding) -
    def store_pool(ho, vrow):
        pool_ref[ho * W3:ho * W3 + W3, :] = vrow

    maxpool(act_ref, H2, W2, W2p, store_pool)

    # ---- stage 3: conv5, conv6 (1x1) + bn + relu ---------------------------
    y = pool_ref[0:M3, :]
    y = conv1x1(y, 2, 4)
    y = conv1x1(y, 3, 5)

    # ---- head: AdaptiveAvgPool2d(1) + conv7 (1x1, bias) + squeeze ----------
    pooled = jnp.sum(y, axis=0, keepdims=True) * (1.0 / M3)      # (1, C)
    logits = jnp.dot(pooled.astype(bf16), wp_ref[4],
                     preferred_element_type=f32) + b_ref[6:7, :]  # (1, C)
    # Output block is (1, 8, C) so the last two dims are tile-aligned; only
    # row 0 is consumed by the wrapper.
    o_ref[...] = jnp.broadcast_to(logits[None], (1, 8, C))


# ----------------------------------------------------------------------------
# Parameters (deterministic in-script init, mirrors the module's __init__)
# ----------------------------------------------------------------------------
def init_params(key, input_channels, input_channels2, n_classes):
    n1 = 16
    filters = [n1, n1 * 2, n1 * 4, n1 * 8]  # 16, 32, 64, 128
    cin0 = input_channels + input_channels2
    eps = 1e-5
    # Eval-mode BN fold with init-time stats: mean=0, var=1, gamma=1, beta=0.
    bn_scale = 1.0 / (1.0 + eps) ** 0.5

    specs = [
        # (cin, cout, k, has_bn)
        (cin0,       filters[0], 3, True),    # conv1 + bn1
        (filters[0], filters[1], 1, True),    # conv2 + bn2
        (filters[1], filters[2], 3, True),    # conv3 + bn3
        (filters[2], filters[3], 1, True),    # conv4 + bn4
        (filters[3], filters[3], 1, True),    # conv5 + bn5
        (filters[3], filters[2], 1, True),    # conv6 + bn6
        (filters[2], n_classes,  1, False),   # conv7 (classifier)
    ]

    keys = jax.random.split(key, len(specs))
    w3x3, w1x1 = [], []
    scales = jnp.zeros((8, CP), jnp.float32)
    biases = jnp.zeros((8, CP), jnp.float32)
    for i, ((cin, cout, k, has_bn), kk) in enumerate(zip(specs, keys)):
        kw, kb = jax.random.split(kk)
        # kaiming_normal_(mode='fan_out', nonlinearity='relu') on weights,
        # PyTorch-default U(-1/sqrt(fan_in), 1/sqrt(fan_in)) on conv biases.
        fan_out = cout * k * k
        w = jax.random.normal(kw, (cout, cin, k, k), jnp.float32) * (2.0 / fan_out) ** 0.5
        bound = 1.0 / (cin * k * k) ** 0.5
        b = jax.random.uniform(kb, (cout,), jnp.float32, minval=-bound, maxval=bound)
        if k == 3:
            wt = jnp.transpose(w, (2, 3, 1, 0)).reshape(9, cin, cout)  # (ky*3+kx, cin, cout)
            wpad = jnp.zeros((9, CP, CP), jnp.float32).at[:, :cin, :cout].set(wt)
            w3x3.append(wpad.reshape(9 * CP, CP))   # stacked-K layout for 1-matmul conv
        else:
            wt = w[:, :, 0, 0].T                                       # (cin, cout)
            w1x1.append(jnp.zeros((CP, CP), jnp.float32).at[:cin, :cout].set(wt))
        s = bn_scale if has_bn else 1.0
        scales = scales.at[i, :cout].set(s)
        biases = biases.at[i, :cout].set(b * s)   # folded (b_conv - mean)*s + beta

    return {
        "w1": w3x3[0].astype(jnp.bfloat16),                 # (9*128, 128)
        "w3": w3x3[1].astype(jnp.bfloat16),                 # (9*128, 128)
        "w1x1": jnp.stack(w1x1, axis=0).astype(jnp.bfloat16),  # conv2,4,5,6,7
        "scales": scales,                                   # (8, 128) f32
        "biases": biases,                                   # (8, 128) f32
        "n_classes": n_classes,
    }


# ----------------------------------------------------------------------------
# Forward pass (wrapper: layout glue only, then one pallas_call)
# ----------------------------------------------------------------------------
def early_fusion_cnn_forward(params, x1_nchw, x2_nchw):
    B, _, H, W = x1_nchw.shape

    # torch: x1.squeeze()/x2.squeeze() are no-ops for these (no singleton dims).
    x1 = jnp.transpose(x1_nchw, (0, 2, 3, 1)).astype(jnp.float32)
    x2 = jnp.transpose(x2_nchw, (0, 2, 3, 1)).astype(jnp.float32)
    x = jnp.concatenate([x1, x2], axis=-1)                  # (B, H, W, Cin)
    cin = x.shape[-1]

    # Zero-pad: +1 spatial border (conv1 padding=1) and channels -> 128 lanes,
    # then flatten spatial (row stride W+2) plus a few tail zero rows so the
    # largest 3x3 tap offset stays in-bounds for the junk output rows.
    x = jnp.pad(x, ((0, 0), (1, 1), (1, 1), (0, CP - cin)))
    rows = (H + 2) * (W + 2)
    nrows = -(-(rows + 2) // 8) * 8
    xflat = jnp.pad(x.reshape(B, rows, CP), ((0, 0), (0, nrows - rows), (0, 0)))

    H2, W2 = H // 2 + 1, W // 2 + 1
    H3, W3 = H2 // 2 + 1, W2 // 2 + 1
    act_rows = -(-(H * (W + 2)) // 8) * 8
    pad_rows = -(-((H2 + 2) * (W2 + 2) + 2) // 8) * 8
    pool_rows = -(-(H3 * W3) // 8) * 8

    kernel = functools.partial(_early_fusion_kernel, H1=H, W1=W)
    out = pl.pallas_call(
        kernel,
        out_shape=jax.ShapeDtypeStruct((B, 8, CP), jnp.float32),
        grid=(B,),
        in_specs=[
            pl.BlockSpec((None, nrows, CP), lambda b: (b, 0, 0)),   # padded sample
            pl.BlockSpec((9 * CP, CP), lambda b: (0, 0)),           # conv1 (stacked K)
            pl.BlockSpec((9 * CP, CP), lambda b: (0, 0)),           # conv3 (stacked K)
            pl.BlockSpec((5, CP, CP), lambda b: (0, 0, 0)),         # conv2,4,5,6,7
            pl.BlockSpec((8, CP), lambda b: (0, 0)),                # folded BN scales
            pl.BlockSpec((8, CP), lambda b: (0, 0)),                # folded biases
        ],
        out_specs=pl.BlockSpec((1, 8, CP), lambda b: (b, 0, 0)),
        scratch_shapes=[
            pltpu.VMEM((act_rows, CP), jnp.float32),   # stage activations
            pltpu.VMEM((pad_rows, CP), jnp.float32),   # zero-padded conv3 input
            pltpu.VMEM((pool_rows, CP), jnp.float32),  # pool #2 output
        ],
        compiler_params=pltpu.CompilerParams(
            dimension_semantics=("parallel",)),
    )(xflat, params["w1"], params["w3"], params["w1x1"],
      params["scales"], params["biases"])

    return out[:, 0, :params["n_classes"]]                  # (B, n_classes)


# ----------------------------------------------------------------------------
# Pure-JAX reference (f32) for correctness checking
# ----------------------------------------------------------------------------
def _reference_forward(params, x1_nchw, x2_nchw):
    x1 = jnp.transpose(x1_nchw, (0, 2, 3, 1)).astype(jnp.float32)
    x2 = jnp.transpose(x2_nchw, (0, 2, 3, 1)).astype(jnp.float32)
    x = jnp.concatenate([x1, x2], axis=-1)
    x = jnp.pad(x, ((0, 0), (0, 0), (0, 0), (0, CP - x.shape[-1])))

    s = params["scales"].astype(jnp.float32)
    bb = params["biases"].astype(jnp.float32)
    w1 = params["w1"].astype(jnp.float32).reshape(3, 3, CP, CP)   # HWIO
    w3 = params["w3"].astype(jnp.float32).reshape(3, 3, CP, CP)
    wp = params["w1x1"].astype(jnp.float32)

    def c3(x, w, i):
        y = jax.lax.conv_general_dilated(
            x, w, (1, 1), ((1, 1), (1, 1)),
            dimension_numbers=("NHWC", "HWIO", "NHWC"))
        return jnp.maximum(y * s[i] + bb[i], 0.0)

    def c1(x, k, i):
        y = jnp.einsum("bhwc,cd->bhwd", x, wp[k])
        return jnp.maximum(y * s[i] + bb[i], 0.0)

    def mp(x):
        return jax.lax.reduce_window(
            x, -jnp.inf, jax.lax.max, (1, 2, 2, 1), (1, 2, 2, 1),
            ((0, 0), (1, 1), (1, 1), (0, 0)))

    y = c3(x, w1, 0)
    y = c1(y, 0, 1)
    y = mp(y)
    y = c3(y, w3, 2)
    y = c1(y, 1, 3)
    y = mp(y)
    y = c1(y, 2, 4)
    y = c1(y, 3, 5)
    pooled = jnp.mean(y, axis=(1, 2))
    logits = pooled @ wp[4] + bb[6]
    return logits[:, :params["n_classes"]]


if __name__ == "__main__":
    key = jax.random.PRNGKey(0)
    k1, k2, kp = jax.random.split(key, 3)

    B, C1, C2, H, W, n_classes = 2, 4, 4, 16, 16, 6
    x1 = jax.random.normal(k1, (B, C1, H, W), jnp.float32)
    x2 = jax.random.normal(k2, (B, C2, H, W), jnp.float32)
    params = init_params(kp, C1, C2, n_classes)

    fwd = jax.jit(lambda a, b: early_fusion_cnn_forward(params, a, b))
    out = fwd(x1, x2)
    jax.block_until_ready(out)
    assert out.shape == (B, n_classes), out.shape
    assert bool(jnp.all(jnp.isfinite(out)))

    ref = _reference_forward(params, x1, x2)
    err = float(jnp.max(jnp.abs(out - ref)))
    tol = 5e-2 + 5e-2 * float(jnp.max(jnp.abs(ref)))
    assert err <= tol, (err, tol)
    print("KERNEL_OK")
</pallas_src>

<mosaic_0001>
module attributes {stable_mosaic.version = 11 : i64} {
  func.func @_early_fusion_kernel(%arg0: i32, %arg1: memref<1x328x128xf32, #tpu.memory_space<vmem>>, %arg2: memref<1152x128xbf16, #tpu.memory_space<vmem>>, %arg3: memref<1152x128xbf16, #tpu.memory_space<vmem>>, %arg4: memref<5x128x128xbf16, #tpu.memory_space<vmem>>, %arg5: memref<8x128xf32, #tpu.memory_space<vmem>>, %arg6: memref<8x128xf32, #tpu.memory_space<vmem>>, %arg7: memref<1x8x128xf32, #tpu.memory_space<vmem>>, %arg8: memref<288x128xf32, #tpu.memory_space<vmem>>, %arg9: memref<128x128xf32, #tpu.memory_space<vmem>>, %arg10: memref<32x128xf32, #tpu.memory_space<vmem>>) attributes {dimension_semantics = [#tpu.dimension_semantics<parallel>], iteration_bounds = array<i64: 2>, scalar_prefetch = 0 : i64, scratch_operands = 3 : i64, tpu.core_type = #tpu.core_type<tc>, window_params = [{transform_indices = @transform_0, window_bounds = array<i64: 1, 328, 128>}, {pipeline_mode = #tpu.pipeline_mode<synchronous>, transform_indices = @transform_1, window_bounds = array<i64: 1152, 128>}, {pipeline_mode = #tpu.pipeline_mode<synchronous>, transform_indices = @transform_2, window_bounds = array<i64: 1152, 128>}, {pipeline_mode = #tpu.pipeline_mode<synchronous>, transform_indices = @transform_3, window_bounds = array<i64: 5, 128, 128>}, {pipeline_mode = #tpu.pipeline_mode<synchronous>, transform_indices = @transform_4, window_bounds = array<i64: 8, 128>}, {pipeline_mode = #tpu.pipeline_mode<synchronous>, transform_indices = @transform_5, window_bounds = array<i64: 8, 128>}, {transform_indices = @transform_6, window_bounds = array<i64: 1, 8, 128>}]} {
    %c0 = arith.constant 0 : index
    %c0_0 = arith.constant 0 : index
    %c0_1 = arith.constant 0 : index
    %0 = vector.load %arg1[%c0, %c0_0, %c0_1] : memref<1x328x128xf32, #tpu.memory_space<vmem>>, vector<1x288x128xf32>
    %1 = vector.shape_cast %0 : vector<1x288x128xf32> to vector<288x128xf32>
    %2 = arith.truncf %1 : vector<288x128xf32> to vector<288x128xbf16>
    %c0_2 = arith.constant 0 : index
    %c1 = arith.constant 1 : index
    %c0_3 = arith.constant 0 : index
    %3 = vector.load %arg1[%c0_2, %c1, %c0_3] : memref<1x328x128xf32, #tpu.memory_space<vmem>>, vector<1x288x128xf32>
    %4 = vector.shape_cast %3 : vector<1x288x128xf32> to vector<288x128xf32>
    %5 = arith.truncf %4 : vector<288x128xf32> to vector<288x128xbf16>
    %c0_4 = arith.constant 0 : index
    %c2 = arith.constant 2 : index
    %c0_5 = arith.constant 0 : index
    %6 = vector.load %arg1[%c0_4, %c2, %c0_5] : memref<1x328x128xf32, #tpu.memory_space<vmem>>, vector<1x288x128xf32>
    %7 = vector.shape_cast %6 : vector<1x288x128xf32> to vector<288x128xf32>
    %8 = arith.truncf %7 : vector<288x128xf32> to vector<288x128xbf16>
    %c0_6 = arith.constant 0 : index
    %c18 = arith.constant 18 : index
    %c0_7 = arith.constant 0 : index
    %9 = vector.load %arg1[%c0_6, %c18, %c0_7] : memref<1x328x128xf32, #tpu.memory_space<vmem>>, vector<1x288x128xf32>
    %10 = vector.shape_cast %9 : vector<1x288x128xf32> to vector<288x128xf32>
    %11 = arith.truncf %10 : vector<288x128xf32> to vector<288x128xbf16>
    %c0_8 = arith.constant 0 : index
    %c19 = arith.constant 19 : index
    %c0_9 = arith.constant 0 : index
    %12 = vector.load %arg1[%c0_8, %c19, %c0_9] : memref<1x328x128xf32, #tpu.memory_space<vmem>>, vector<1x288x128xf32>
    %13 = vector.shape_cast %12 : vector<1x288x128xf32> to vector<288x128xf32>
    %14 = arith.truncf %13 : vector<288x128xf32> to vector<288x128xbf16>
    %c0_10 = arith.constant 0 : index
    %c20 = arith.constant 20 : index
    %c0_11 = arith.constant 0 : index
    %15 = vector.load %arg1[%c0_10, %c20, %c0_11] : memref<1x328x128xf32, #tpu.memory_space<vmem>>, vector<1x288x128xf32>
    %16 = vector.shape_cast %15 : vector<1x288x128xf32> to vector<288x128xf32>
    %17 = arith.truncf %16 : vector<288x128xf32> to vector<288x128xbf16>
    %c0_12 = arith.constant 0 : index
    %c36 = arith.constant 36 : index
    %c0_13 = arith.constant 0 : index
    %18 = vector.load %arg1[%c0_12, %c36, %c0_13] : memref<1x328x128xf32, #tpu.memory_space<vmem>>, vector<1x288x128xf32>
    %19 = vector.shape_cast %18 : vector<1x288x128xf32> to vector<288x128xf32>
    %20 = arith.truncf %19 : vector<288x128xf32> to vector<288x128xbf16>
    %c0_14 = arith.constant 0 : index
    %c37 = arith.constant 37 : index
    %c0_15 = arith.constant 0 : index
    %21 = vector.load %arg1[%c0_14, %c37, %c0_15] : memref<1x328x128xf32, #tpu.memory_space<vmem>>, vector<1x288x128xf32>
    %22 = vector.shape_cast %21 : vector<1x288x128xf32> to vector<288x128xf32>
    %23 = arith.truncf %22 : vector<288x128xf32> to vector<288x128xbf16>
    %c0_16 = arith.constant 0 : index
    %c38 = arith.constant 38 : index
    %c0_17 = arith.constant 0 : index
    %24 = vector.load %arg1[%c0_16, %c38, %c0_17] : memref<1x328x128xf32, #tpu.memory_space<vmem>>, vector<1x288x128xf32>
    %25 = vector.shape_cast %24 : vector<1x288x128xf32> to vector<288x128xf32>
    %26 = arith.truncf %25 : vector<288x128xf32> to vector<288x128xbf16>
    %27 = tpu.concatenate %2, %5, %8, %11, %14, %17, %20, %23, %26 in 1 : vector<288x128xbf16>, vector<288x128xbf16>, vector<288x128xbf16>, vector<288x128xbf16>, vector<288x128xbf16>, vector<288x128xbf16>, vector<288x128xbf16>, vector<288x128xbf16>, vector<288x128xbf16> -> vector<288x1152xbf16>
    %c0_18 = arith.constant 0 : index
    %c0_19 = arith.constant 0 : index
    %28 = vector.load %arg2[%c0_18, %c0_19] : memref<1152x128xbf16, #tpu.memory_space<vmem>>, vector<1152x128xbf16>
    %cst = arith.constant dense<0.000000e+00> : vector<288x128xf32>
    %29 = tpu.matmul %27, %28, %cst {dimension_numbers = #tpu.dot_dimension_numbers<[1], [0], [0], [1], [0, 0, 1, 1], [], []>} : vector<288x1152xbf16>, vector<1152x128xbf16>, vector<288x128xf32> -> vector<288x128xf32>
    %c0_20 = arith.constant 0 : index
    %c0_21 = arith.constant 0 : index
    %30 = vector.load %arg5[%c0_20, %c0_21] : memref<8x128xf32, #tpu.memory_space<vmem>>, vector<1x128xf32>
    %c0_22 = arith.constant 0 : index
    %c0_23 = arith.constant 0 : index
    %31 = vector.load %arg6[%c0_22, %c0_23] : memref<8x128xf32, #tpu.memory_space<vmem>>, vector<1x128xf32>
    %32 = vector.broadcast %30 : vector<1x128xf32> to vector<288x128xf32>
    %33 = arith.mulf %29, %32 : vector<288x128xf32>
    %34 = vector.broadcast %31 : vector<1x128xf32> to vector<288x128xf32>
    %35 = arith.addf %33, %34 : vector<288x128xf32>
    %cst_24 = arith.constant 0.000000e+00 : f32
    %36 = vector.broadcast %cst_24 : f32 to vector<288x128xf32>
    %37 = arith.maximumf %35, %36 : vector<288x128xf32>
    %38 = arith.truncf %37 : vector<288x128xf32> to vector<288x128xbf16>
    %c0_25 = arith.constant 0 : index
    %c0_26 = arith.constant 0 : index
    %c0_27 = arith.constant 0 : index
    %39 = vector.load %arg4[%c0_25, %c0_26, %c0_27] : memref<5x128x128xbf16, #tpu.memory_space<vmem>>, vector<1x128x128xbf16>
    %40 = vector.shape_cast %39 : vector<1x128x128xbf16> to vector<128x128xbf16>
    %cst_28 = arith.constant dense<0.000000e+00> : vector<288x128xf32>
    %41 = tpu.matmul %38, %40, %cst_28 {dimension_numbers = #tpu.dot_dimension_numbers<[1], [0], [0], [1], [0, 0, 1, 1], [], []>} : vector<288x128xbf16>, vector<128x128xbf16>, vector<288x128xf32> -> vector<288x128xf32>
    %c1_29 = arith.constant 1 : index
    %c0_30 = arith.constant 0 : index
    %42 = vector.load %arg5[%c1_29, %c0_30] : memref<8x128xf32, #tpu.memory_space<vmem>>, vector<1x128xf32>
    %c1_31 = arith.constant 1 : index
    %c0_32 = arith.constant 0 : index
    %43 = vector.load %arg6[%c1_31, %c0_32] : memref<8x128xf32, #tpu.memory_space<vmem>>, vector<1x128xf32>
    %44 = vector.broadcast %42 : vector<1x128xf32> to vector<288x128xf32>
    %45 = arith.mulf %41, %44 : vector<288x128xf32>
    %46 = vector.broadcast %43 : vector<1x128xf32> to vector<288x128xf32>
    %47 = arith.addf %45, %46 : vector<288x128xf32>
    %cst_33 = arith.constant 0.000000e+00 : f32
    %48 = vector.broadcast %cst_33 : f32 to vector<288x128xf32>
    %49 = arith.maximumf %47, %48 : vector<288x128xf32>
    %c0_34 = arith.constant 0 : index
    %c0_35 = arith.constant 0 : index
    %50 = vector.load %arg8[%c0_34, %c0_35] : memref<288x128xf32, #tpu.memory_space<vmem>>, vector<288x128xf32>
    tpu.vector_store %arg8[%c0_34, %c0_35], %49 {strides = array<i32>} : memref<288x128xf32, #tpu.memory_space<vmem>>, vector<288x128xf32>,
    %cst_36 = arith.constant 0.000000e+00 : f32
    %51 = vector.broadcast %cst_36 : f32 to vector<128x128xf32>
    %c0_37 = arith.constant 0 : index
    %c0_38 = arith.constant 0 : index
    %52 = vector.load %arg9[%c0_37, %c0_38] : memref<128x128xf32, #tpu.memory_space<vmem>>, vector<128x128xf32>
    tpu.vector_store %arg9[%c0_37, %c0_38], %51 {strides = array<i32>} : memref<128x128xf32, #tpu.memory_space<vmem>>, vector<128x128xf32>,
    %c0_39 = arith.constant 0 : index
    %c0_40 = arith.constant 0 : index
    %53 = vector.load %arg8[%c0_39, %c0_40] : memref<288x128xf32, #tpu.memory_space<vmem>>, vector<16x128xf32>
    %54 = vector.extract_strided_slice %53 {offsets = [0, 0], sizes = [1, 128], strides = [1, 1]} : vector<16x128xf32> to vector<1x128xf32>
    %55 = vector.extract_strided_slice %53 {offsets = [1, 0], sizes = [1, 128], strides = [1, 1]} : vector<16x128xf32> to vector<1x128xf32>
    %56 = vector.extract_strided_slice %53 {offsets = [2, 0], sizes = [1, 128], strides = [1, 1]} : vector<16x128xf32> to vector<1x128xf32>
    %57 = arith.maximumf %55, %56 : vector<1x128xf32>
    %58 = vector.extract_strided_slice %53 {offsets = [3, 0], sizes = [1, 128], strides = [1, 1]} : vector<16x128xf32> to vector<1x128xf32>
    %59 = vector.extract_strided_slice %53 {offsets = [4, 0], sizes = [1, 128], strides = [1, 1]} : vector<16x128xf32> to vector<1x128xf32>
    %60 = arith.maximumf %58, %59 : vector<1x128xf32>
    %61 = vector.extract_strided_slice %53 {offsets = [5, 0], sizes = [1, 128], strides = [1, 1]} : vector<16x128xf32> to vector<1x128xf32>
    %62 = vector.extract_strided_slice %53 {offsets = [6, 0], sizes = [1, 128], strides = [1, 1]} : vector<16x128xf32> to vector<1x128xf32>
    %63 = arith.maximumf %61, %62 : vector<1x128xf32>
    %64 = vector.extract_strided_slice %53 {offsets = [7, 0], sizes = [1, 128], strides = [1, 1]} : vector<16x128xf32> to vector<1x128xf32>
    %65 = vector.extract_strided_slice %53 {offsets = [8, 0], sizes = [1, 128], strides = [1, 1]} : vector<16x128xf32> to vector<1x128xf32>
    %66 = arith.maximumf %64, %65 : vector<1x128xf32>
    %67 = vector.extract_strided_slice %53 {offsets = [9, 0], sizes = [1, 128], strides = [1, 1]} : vector<16x128xf32> to vector<1x128xf32>
    %68 = vector.extract_strided_slice %53 {offsets = [10, 0], sizes = [1, 128], strides = [1, 1]} : vector<16x128xf32> to vector<1x128xf32>
    %69 = arith.maximumf %67, %68 : vector<1x128xf32>
    %70 = vector.extract_strided_slice %53 {offsets = [11, 0], sizes = [1, 128], strides = [1, 1]} : vector<16x128xf32> to vector<1x128xf32>
    %71 = vector.extract_strided_slice %53 {offsets = [12, 0], sizes = [1, 128], strides = [1, 1]} : vector<16x128xf32> to vector<1x128xf32>
    %72 = arith.maximumf %70, %71 : vector<1x128xf32>
    %73 = vector.extract_strided_slice %53 {offsets = [13, 0], sizes = [1, 128], strides = [1, 1]} : vector<16x128xf32> to vector<1x128xf32>
    %74 = vector.extract_strided_slice %53 {offsets = [14, 0], sizes = [1, 128], strides = [1, 1]} : vector<16x128xf32> to vector<1x128xf32>
    %75 = arith.maximumf %73, %74 : vector<1x128xf32>
    %76 = vector.extract_strided_slice %53 {offsets = [15, 0], sizes = [1, 128], strides = [1, 1]} : vector<16x128xf32> to vector<1x128xf32>
    %77 = tpu.concatenate %54, %57, %60, %63, %66, %69, %72, %75, %76 in 0 : vector<1x128xf32>, vector<1x128xf32>, vector<1x128xf32>, vector<1x128xf32>, vector<1x128xf32>, vector<1x128xf32>, vector<1x128xf32>, vector<1x128xf32>, vector<1x128xf32> -> vector<9x128xf32>
    %c12 = arith.constant 12 : index
    %c0_41 = arith.constant 0 : index
    %78 = vector.load %arg9[%c12, %c0_41] : memref<128x128xf32, #tpu.memory_space<vmem>>, vector<9x128xf32>
    tpu.vector_store %arg9[%c12, %c0_41], %77 {strides = array<i32>} : memref<128x128xf32, #tpu.memory_space<vmem>>, vector<9x128xf32>,
    %c18_42 = arith.constant 18 : index
    %c0_43 = arith.constant 0 : index
    %79 = vector.load %arg8[%c18_42, %c0_43] : memref<288x128xf32, #tpu.memory_space<vmem>>, vector<16x128xf32>
    %c36_44 = arith.constant 36 : index
    %c0_45 = arith.constant 0 : index
    %80 = vector.load %arg8[%c36_44, %c0_45] : memref<288x128xf32, #tpu.memory_space<vmem>>, vector<16x128xf32>
    %81 = arith.maximumf %79, %80 : vector<16x128xf32>
    %82 = vector.extract_strided_slice %81 {offsets = [0, 0], sizes = [1, 128], strides = [1, 1]} : vector<16x128xf32> to vector<1x128xf32>
    %83 = vector.extract_strided_slice %81 {offsets = [1, 0], sizes = [1, 128], strides = [1, 1]} : vector<16x128xf32> to vector<1x128xf32>
    %84 = vector.extract_strided_slice %81 {offsets = [2, 0], sizes = [1, 128], strides = [1, 1]} : vector<16x128xf32> to vector<1x128xf32>
    %85 = arith.maximumf %83, %84 : vector<1x128xf32>
    %86 = vector.extract_strided_slice %81 {offsets = [3, 0], sizes = [1, 128], strides = [1, 1]} : vector<16x128xf32> to vector<1x128xf32>
    %87 = vector.extract_strided_slice %81 {offsets = [4, 0], sizes = [1, 128], strides = [1, 1]} : vector<16x128xf32> to vector<1x128xf32>
    %88 = arith.maximumf %86, %87 : vector<1x128xf32>
    %89 = vector.extract_strided_slice %81 {offsets = [5, 0], sizes = [1, 128], strides = [1, 1]} : vector<16x128xf32> to vector<1x128xf32>
    %90 = vector.extract_strided_slice %81 {offsets = [6, 0], sizes = [1, 128], strides = [1, 1]} : vector<16x128xf32> to vector<1x128xf32>
    %91 = arith.maximumf %89, %90 : vector<1x128xf32>
    %92 = vector.extract_strided_slice %81 {offsets = [7, 0], sizes = [1, 128], strides = [1, 1]} : vector<16x128xf32> to vector<1x128xf32>
    %93 = vector.extract_strided_slice %81 {offsets = [8, 0], sizes = [1, 128], strides = [1, 1]} : vector<16x128xf32> to vector<1x128xf32>
    %94 = arith.maximumf %92, %93 : vector<1x128xf32>
    %95 = vector.extract_strided_slice %81 {offsets = [9, 0], sizes = [1, 128], strides = [1, 1]} : vector<16x128xf32> to vector<1x128xf32>
    %96 = vector.extract_strided_slice %81 {offsets = [10, 0], sizes = [1, 128], strides = [1, 1]} : vector<16x128xf32> to vector<1x128xf32>
    %97 = arith.maximumf %95, %96 : vector<1x128xf32>
    %98 = vector.extract_strided_slice %81 {offsets = [11, 0], sizes = [1, 128], strides = [1, 1]} : vector<16x128xf32> to vector<1x128xf32>
    %99 = vector.extract_strided_slice %81 {offsets = [12, 0], sizes = [1, 128], strides = [1, 1]} : vector<16x128xf32> to vector<1x128xf32>
    %100 = arith.maximumf %98, %99 : vector<1x128xf32>
    %101 = vector.extract_strided_slice %81 {offsets = [13, 0], sizes = [1, 128], strides = [1, 1]} : vector<16x128xf32> to vector<1x128xf32>
    %102 = vector.extract_strided_slice %81 {offsets = [14, 0], sizes = [1, 128], strides = [1, 1]} : vector<16x128xf32> to vector<1x128xf32>
    %103 = arith.maximumf %101, %102 : vector<1x128xf32>
    %104 = vector.extract_strided_slice %81 {offsets = [15, 0], sizes = [1, 128], strides = [1, 1]} : vector<16x128xf32> to vector<1x128xf32>
    %105 = tpu.concatenate %82, %85, %88, %91, %94, %97, %100, %103, %104 in 0 : vector<1x128xf32>, vector<1x128xf32>, vector<1x128xf32>, vector<1x128xf32>, vector<1x128xf32>, vector<1x128xf32>, vector<1x128xf32>, vector<1x128xf32>, vector<1x128xf32> -> vector<9x128xf32>
    %c23 = arith.constant 23 : index
    %c0_46 = arith.constant 0 : index
    %106 = vector.load %arg9[%c23, %c0_46] : memref<128x128xf32, #tpu.memory_space<vmem>>, vector<9x128xf32>
    tpu.vector_store %arg9[%c23, %c0_46], %105 {strides = array<i32>} : memref<128x128xf32, #tpu.memory_space<vmem>>, vector<9x128xf32>,
    %c54 = arith.constant 54 : index
    %c0_47 = arith.constant 0 : index
    %107 = vector.load %arg8[%c54, %c0_47] : memref<288x128xf32, #tpu.memory_space<vmem>>, vector<16x128xf32>
    %c72 = arith.constant 72 : index
    %c0_48 = arith.constant 0 : index
    %108 = vector.load %arg8[%c72, %c0_48] : memref<288x128xf32, #tpu.memory_space<vmem>>, vector<16x128xf32>
    %109 = arith.maximumf %107, %108 : vector<16x128xf32>
    %110 = vector.extract_strided_slice %109 {offsets = [0, 0], sizes = [1, 128], strides = [1, 1]} : vector<16x128xf32> to vector<1x128xf32>
    %111 = vector.extract_strided_slice %109 {offsets = [1, 0], sizes = [1, 128], strides = [1, 1]} : vector<16x128xf32> to vector<1x128xf32>
    %112 = vector.extract_strided_slice %109 {offsets = [2, 0], sizes = [1, 128], strides = [1, 1]} : vector<16x128xf32> to vector<1x128xf32>
    %113 = arith.maximumf %111, %112 : vector<1x128xf32>
    %114 = vector.extract_strided_slice %109 {offsets = [3, 0], sizes = [1, 128], strides = [1, 1]} : vector<16x128xf32> to vector<1x128xf32>
    %115 = vector.extract_strided_slice %109 {offsets = [4, 0], sizes = [1, 128], strides = [1, 1]} : vector<16x128xf32> to vector<1x128xf32>
    %116 = arith.maximumf %114, %115 : vector<1x128xf32>
    %117 = vector.extract_strided_slice %109 {offsets = [5, 0], sizes = [1, 128], strides = [1, 1]} : vector<16x128xf32> to vector<1x128xf32>
    %118 = vector.extract_strided_slice %109 {offsets = [6, 0], sizes = [1, 128], strides = [1, 1]} : vector<16x128xf32> to vector<1x128xf32>
    %119 = arith.maximumf %117, %118 : vector<1x128xf32>
    %120 = vector.extract_strided_slice %109 {offsets = [7, 0], sizes = [1, 128], strides = [1, 1]} : vector<16x128xf32> to vector<1x128xf32>
    %121 = vector.extract_strided_slice %109 {offsets = [8, 0], sizes = [1, 128], strides = [1, 1]} : vector<16x128xf32> to vector<1x128xf32>
    %122 = arith.maximumf %120, %121 : vector<1x128xf32>
    %123 = vector.extract_strided_slice %109 {offsets = [9, 0], sizes = [1, 128], strides = [1, 1]} : vector<16x128xf32> to vector<1x128xf32>
    %124 = vector.extract_strided_slice %109 {offsets = [10, 0], sizes = [1, 128], strides = [1, 1]} : vector<16x128xf32> to vector<1x128xf32>
    %125 = arith.maximumf %123, %124 : vector<1x128xf32>
    %126 = vector.extract_strided_slice %109 {offsets = [11, 0], sizes = [1, 128], strides = [1, 1]} : vector<16x128xf32> to vector<1x128xf32>
    %127 = vector.extract_strided_slice %109 {offsets = [12, 0], sizes = [1, 128], strides = [1, 1]} : vector<16x128xf32> to vector<1x128xf32>
    %128 = arith.maximumf %126, %127 : vector<1x128xf32>
    %129 = vector.extract_strided_slice %109 {offsets = [13, 0], sizes = [1, 128], strides = [1, 1]} : vector<16x128xf32> to vector<1x128xf32>
    %130 = vector.extract_strided_slice %109 {offsets = [14, 0], sizes = [1, 128], strides = [1, 1]} : vector<16x128xf32> to vector<1x128xf32>
    %131 = arith.maximumf %129, %130 : vector<1x128xf32>
    %132 = vector.extract_strided_slice %109 {offsets = [15, 0], sizes = [1, 128], strides = [1, 1]} : vector<16x128xf32> to vector<1x128xf32>
    %133 = tpu.concatenate %110, %113, %116, %119, %122, %125, %128, %131, %132 in 0 : vector<1x128xf32>, vector<1x128xf32>, vector<1x128xf32>, vector<1x128xf32>, vector<1x128xf32>, vector<1x128xf32>, vector<1x128xf32>, vector<1x128xf32>, vector<1x128xf32> -> vector<9x128xf32>
    %c34 = arith.constant 34 : index
    %c0_49 = arith.constant 0 : index
    %134 = vector.load %arg9[%c34, %c0_49] : memref<128x128xf32, #tpu.memory_space<vmem>>, vector<9x128xf32>
    tpu.vector_store %arg9[%c34, %c0_49], %133 {strides = array<i32>} : memref<128x128xf32, #tpu.memory_space<vmem>>, vector<9x128xf32>,
    %c90 = arith.constant 90 : index
    %c0_50 = arith.constant 0 : index
    %135 = vector.load %arg8[%c90, %c0_50] : memref<288x128xf32, #tpu.memory_space<vmem>>, vector<16x128xf32>
    %c108 = arith.constant 108 : index
    %c0_51 = arith.constant 0 : index
    %136 = vector.load %arg8[%c108, %c0_51] : memref<288x128xf32, #tpu.memory_space<vmem>>, vector<16x128xf32>
    %137 = arith.maximumf %135, %136 : vector<16x128xf32>
    %138 = vector.extract_strided_slice %137 {offsets = [0, 0], sizes = [1, 128], strides = [1, 1]} : vector<16x128xf32> to vector<1x128xf32>
    %139 = vector.extract_strided_slice %137 {offsets = [1, 0], sizes = [1, 128], strides = [1, 1]} : vector<16x128xf32> to vector<1x128xf32>
    %140 = vector.extract_strided_slice %137 {offsets = [2, 0], sizes = [1, 128], strides = [1, 1]} : vector<16x128xf32> to vector<1x128xf32>
    %141 = arith.maximumf %139, %140 : vector<1x128xf32>
    %142 = vector.extract_strided_slice %137 {offsets = [3, 0], sizes = [1, 128], strides = [1, 1]} : vector<16x128xf32> to vector<1x128xf32>
    %143 = vector.extract_strided_slice %137 {offsets = [4, 0], sizes = [1, 128], strides = [1, 1]} : vector<16x128xf32> to vector<1x128xf32>
    %144 = arith.maximumf %142, %143 : vector<1x128xf32>
    %145 = vector.extract_strided_slice %137 {offsets = [5, 0], sizes = [1, 128], strides = [1, 1]} : vector<16x128xf32> to vector<1x128xf32>
    %146 = vector.extract_strided_slice %137 {offsets = [6, 0], sizes = [1, 128], strides = [1, 1]} : vector<16x128xf32> to vector<1x128xf32>
    %147 = arith.maximumf %145, %146 : vector<1x128xf32>
    %148 = vector.extract_strided_slice %137 {offsets = [7, 0], sizes = [1, 128], strides = [1, 1]} : vector<16x128xf32> to vector<1x128xf32>
    %149 = vector.extract_strided_slice %137 {offsets = [8, 0], sizes = [1, 128], strides = [1, 1]} : vector<16x128xf32> to vector<1x128xf32>
    %150 = arith.maximumf %148, %149 : vector<1x128xf32>
    %151 = vector.extract_strided_slice %137 {offsets = [9, 0], sizes = [1, 128], strides = [1, 1]} : vector<16x128xf32> to vector<1x128xf32>
    %152 = vector.extract_strided_slice %137 {offsets = [10, 0], sizes = [1, 128], strides = [1, 1]} : vector<16x128xf32> to vector<1x128xf32>
    %153 = arith.maximumf %151, %152 : vector<1x128xf32>
    %154 = vector.extract_strided_slice %137 {offsets = [11, 0], sizes = [1, 128], strides = [1, 1]} : vector<16x128xf32> to vector<1x128xf32>
    %155 = vector.extract_strided_slice %137 {offsets = [12, 0], sizes = [1, 128], strides = [1, 1]} : vector<16x128xf32> to vector<1x128xf32>
    %156 = arith.maximumf %154, %155 : vector<1x128xf32>
    %157 = vector.extract_strided_slice %137 {offsets = [13, 0], sizes = [1, 128], strides = [1, 1]} : vector<16x128xf32> to vector<1x128xf32>
    %158 = vector.extract_strided_slice %137 {offsets = [14, 0], sizes = [1, 128], strides = [1, 1]} : vector<16x128xf32> to vector<1x128xf32>
    %159 = arith.maximumf %157, %158 : vector<1x128xf32>
    %160 = vector.extract_strided_slice %137 {offsets = [15, 0], sizes = [1, 128], strides = [1, 1]} : vector<16x128xf32> to vector<1x128xf32>
    %161 = tpu.concatenate %138, %141, %144, %147, %150, %153, %156, %159, %160 in 0 : vector<1x128xf32>, vector<1x128xf32>, vector<1x128xf32>, vector<1x128xf32>, vector<1x128xf32>, vector<1x128xf32>, vector<1x128xf32>, vector<1x128xf32>, vector<1x128xf32> -> vector<9x128xf32>
    %c45 = arith.constant 45 : index
    %c0_52 = arith.constant 0 : index
    %162 = vector.load %arg9[%c45, %c0_52] : memref<128x128xf32, #tpu.memory_space<vmem>>, vector<9x128xf32>
    tpu.vector_store %arg9[%c45, %c0_52], %161 {strides = array<i32>} : memref<128x128xf32, #tpu.memory_space<vmem>>, vector<9x128xf32>,
    %c126 = arith.constant 126 : index
    %c0_53 = arith.constant 0 : index
    %163 = vector.load %arg8[%c126, %c0_53] : memref<288x128xf32, #tpu.memory_space<vmem>>, vector<16x128xf32>
    %c144 = arith.constant 144 : index
    %c0_54 = arith.constant 0 : index
    %164 = vector.load %arg8[%c144, %c0_54] : memref<288x128xf32, #tpu.memory_space<vmem>>, vector<16x128xf32>
    %165 = arith.maximumf %163, %164 : vector<16x128xf32>
    %166 = vector.extract_strided_slice %165 {offsets = [0, 0], sizes = [1, 128], strides = [1, 1]} : vector<16x128xf32> to vector<1x128xf32>
    %167 = vector.extract_strided_slice %165 {offsets = [1, 0], sizes = [1, 128], strides = [1, 1]} : vector<16x128xf32> to vector<1x128xf32>
    %168 = vector.extract_strided_slice %165 {offsets = [2, 0], sizes = [1, 128], strides = [1, 1]} : vector<16x128xf32> to vector<1x128xf32>
    %169 = arith.maximumf %167, %168 : vector<1x128xf32>
    %170 = vector.extract_strided_slice %165 {offsets = [3, 0], sizes = [1, 128], strides = [1, 1]} : vector<16x128xf32> to vector<1x128xf32>
    %171 = vector.extract_strided_slice %165 {offsets = [4, 0], sizes = [1, 128], strides = [1, 1]} : vector<16x128xf32> to vector<1x128xf32>
    %172 = arith.maximumf %170, %171 : vector<1x128xf32>
    %173 = vector.extract_strided_slice %165 {offsets = [5, 0], sizes = [1, 128], strides = [1, 1]} : vector<16x128xf32> to vector<1x128xf32>
    %174 = vector.extract_strided_slice %165 {offsets = [6, 0], sizes = [1, 128], strides = [1, 1]} : vector<16x128xf32> to vector<1x128xf32>
    %175 = arith.maximumf %173, %174 : vector<1x128xf32>
    %176 = vector.extract_strided_slice %165 {offsets = [7, 0], sizes = [1, 128], strides = [1, 1]} : vector<16x128xf32> to vector<1x128xf32>
    %177 = vector.extract_strided_slice %165 {offsets = [8, 0], sizes = [1, 128], strides = [1, 1]} : vector<16x128xf32> to vector<1x128xf32>
    %178 = arith.maximumf %176, %177 : vector<1x128xf32>
    %179 = vector.extract_strided_slice %165 {offsets = [9, 0], sizes = [1, 128], strides = [1, 1]} : vector<16x128xf32> to vector<1x128xf32>
    %180 = vector.extract_strided_slice %165 {offsets = [10, 0], sizes = [1, 128], strides = [1, 1]} : vector<16x128xf32> to vector<1x128xf32>
    %181 = arith.maximumf %179, %180 : vector<1x128xf32>
    %182 = vector.extract_strided_slice %165 {offsets = [11, 0], sizes = [1, 128], strides = [1, 1]} : vector<16x128xf32> to vector<1x128xf32>
    %183 = vector.extract_strided_slice %165 {offsets = [12, 0], sizes = [1, 128], strides = [1, 1]} : vector<16x128xf32> to vector<1x128xf32>
    %184 = arith.maximumf %182, %183 : vector<1x128xf32>
    %185 = vector.extract_strided_slice %165 {offsets = [13, 0], sizes = [1, 128], strides = [1, 1]} : vector<16x128xf32> to vector<1x128xf32>
    %186 = vector.extract_strided_slice %165 {offsets = [14, 0], sizes = [1, 128], strides = [1, 1]} : vector<16x128xf32> to vector<1x128xf32>
    %187 = arith.maximumf %185, %186 : vector<1x128xf32>
    %188 = vector.extract_strided_slice %165 {offsets = [15, 0], sizes = [1, 128], strides = [1, 1]} : vector<16x128xf32> to vector<1x128xf32>
    %189 = tpu.concatenate %166, %169, %172, %175, %178, %181, %184, %187, %188 in 0 : vector<1x128xf32>, vector<1x128xf32>, vector<1x128xf32>, vector<1x128xf32>, vector<1x128xf32>, vector<1x128xf32>, vector<1x128xf32>, vector<1x128xf32>, vector<1x128xf32> -> vector<9x128xf32>
    %c56 = arith.constant 56 : index
    %c0_55 = arith.constant 0 : index
    %190 = vector.load %arg9[%c56, %c0_55] : memref<128x128xf32, #tpu.memory_space<vmem>>, vector<9x128xf32>
    tpu.vector_store %arg9[%c56, %c0_55], %189 {strides = array<i32>} : memref<128x128xf32, #tpu.memory_space<vmem>>, vector<9x128xf32>,
    %c162 = arith.constant 162 : index
    %c0_56 = arith.constant 0 : index
    %191 = vector.load %arg8[%c162, %c0_56] : memref<288x128xf32, #tpu.memory_space<vmem>>, vector<16x128xf32>
    %c180 = arith.constant 180 : index
    %c0_57 = arith.constant 0 : index
    %192 = vector.load %arg8[%c180, %c0_57] : memref<288x128xf32, #tpu.memory_space<vmem>>, vector<16x128xf32>
    %193 = arith.maximumf %191, %192 : vector<16x128xf32>
    %194 = vector.extract_strided_slice %193 {offsets = [0, 0], sizes = [1, 128], strides = [1, 1]} : vector<16x128xf32> to vector<1x128xf32>
    %195 = vector.extract_strided_slice %193 {offsets = [1, 0], sizes = [1, 128], strides = [1, 1]} : vector<16x128xf32> to vector<1x128xf32>
    %196 = vector.extract_strided_slice %193 {offsets = [2, 0], sizes = [1, 128], strides = [1, 1]} : vector<16x128xf32> to vector<1x128xf32>
    %197 = arith.maximumf %195, %196 : vector<1x128xf32>
    %198 = vector.extract_strided_slice %193 {offsets = [3, 0], sizes = [1, 128], strides = [1, 1]} : vector<16x128xf32> to vector<1x128xf32>
    %199 = vector.extract_strided_slice %193 {offsets = [4, 0], sizes = [1, 128], strides = [1, 1]} : vector<16x128xf32> to vector<1x128xf32>
    %200 = arith.maximumf %198, %199 : vector<1x128xf32>
    %201 = vector.extract_strided_slice %193 {offsets = [5, 0], sizes = [1, 128], strides = [1, 1]} : vector<16x128xf32> to vector<1x128xf32>
    %202 = vector.extract_strided_slice %193 {offsets = [6, 0], sizes = [1, 128], strides = [1, 1]} : vector<16x128xf32> to vector<1x128xf32>
    %203 = arith.maximumf %201, %202 : vector<1x128xf32>
    %204 = vector.extract_strided_slice %193 {offsets = [7, 0], sizes = [1, 128], strides = [1, 1]} : vector<16x128xf32> to vector<1x128xf32>
    %205 = vector.extract_strided_slice %193 {offsets = [8, 0], sizes = [1, 128], strides = [1, 1]} : vector<16x128xf32> to vector<1x128xf32>
    %206 = arith.maximumf %204, %205 : vector<1x128xf32>
    %207 = vector.extract_strided_slice %193 {offsets = [9, 0], sizes = [1, 128], strides = [1, 1]} : vector<16x128xf32> to vector<1x128xf32>
    %208 = vector.extract_strided_slice %193 {offsets = [10, 0], sizes = [1, 128], strides = [1, 1]} : vector<16x128xf32> to vector<1x128xf32>
    %209 = arith.maximumf %207, %208 : vector<1x128xf32>
    %210 = vector.extract_strided_slice %193 {offsets = [11, 0], sizes = [1, 128], strides = [1, 1]} : vector<16x128xf32> to vector<1x128xf32>
    %211 = vector.extract_strided_slice %193 {offsets = [12, 0], sizes = [1, 128], strides = [1, 1]} : vector<16x128xf32> to vector<1x128xf32>
    %212 = arith.maximumf %210, %211 : vector<1x128xf32>
    %213 = vector.extract_strided_slice %193 {offsets = [13, 0], sizes = [1, 128], strides = [1, 1]} : vector<16x128xf32> to vector<1x128xf32>
    %214 = vector.extract_strided_slice %193 {offsets = [14, 0], sizes = [1, 128], strides = [1, 1]} : vector<16x128xf32> to vector<1x128xf32>
    %215 = arith.maximumf %213, %214 : vector<1x128xf32>
    %216 = vector.extract_strided_slice %193 {offsets = [15, 0], sizes = [1, 128], strides = [1, 1]} : vector<16x128xf32> to vector<1x128xf32>
    %217 = tpu.concatenate %194, %197, %200, %203, %206, %209, %212, %215, %216 in 0 : vector<1x128xf32>, vector<1x128xf32>, vector<1x128xf32>, vector<1x128xf32>, vector<1x128xf32>, vector<1x128xf32>, vector<1x128xf32>, vector<1x128xf32>, vector<1x128xf32> -> vector<9x128xf32>
    %c67 = arith.constant 67 : index
    %c0_58 = arith.constant 0 : index
    %218 = vector.load %arg9[%c67, %c0_58] : memref<128x128xf32, #tpu.memory_space<vmem>>, vector<9x128xf32>
    tpu.vector_store %arg9[%c67, %c0_58], %217 {strides = array<i32>} : memref<128x128xf32, #tpu.memory_space<vmem>>, vector<9x128xf32>,
    %c198 = arith.constant 198 : index
    %c0_59 = arith.constant 0 : index
    %219 = vector.load %arg8[%c198, %c0_59] : memref<288x128xf32, #tpu.memory_space<vmem>>, vector<16x128xf32>
    %c216 = arith.constant 216 : index
    %c0_60 = arith.constant 0 : index
    %220 = vector.load %arg8[%c216, %c0_60] : memref<288x128xf32, #tpu.memory_space<vmem>>, vector<16x128xf32>
    %221 = arith.maximumf %219, %220 : vector<16x128xf32>
    %222 = vector.extract_strided_slice %221 {offsets = [0, 0], sizes = [1, 128], strides = [1, 1]} : vector<16x128xf32> to vector<1x128xf32>
    %223 = vector.extract_strided_slice %221 {offsets = [1, 0], sizes = [1, 128], strides = [1, 1]} : vector<16x128xf32> to vector<1x128xf32>
    %224 = vector.extract_strided_slice %221 {offsets = [2, 0], sizes = [1, 128], strides = [1, 1]} : vector<16x128xf32> to vector<1x128xf32>
    %225 = arith.maximumf %223, %224 : vector<1x128xf32>
    %226 = vector.extract_strided_slice %221 {offsets = [3, 0], sizes = [1, 128], strides = [1, 1]} : vector<16x128xf32> to vector<1x128xf32>
    %227 = vector.extract_strided_slice %221 {offsets = [4, 0], sizes = [1, 128], strides = [1, 1]} : vector<16x128xf32> to vector<1x128xf32>
    %228 = arith.maximumf %226, %227 : vector<1x128xf32>
    %229 = vector.extract_strided_slice %221 {offsets = [5, 0], sizes = [1, 128], strides = [1, 1]} : vector<16x128xf32> to vector<1x128xf32>
    %230 = vector.extract_strided_slice %221 {offsets = [6, 0], sizes = [1, 128], strides = [1, 1]} : vector<16x128xf32> to vector<1x128xf32>
    %231 = arith.maximumf %229, %230 : vector<1x128xf32>
    %232 = vector.extract_strided_slice %221 {offsets = [7, 0], sizes = [1, 128], strides = [1, 1]} : vector<16x128xf32> to vector<1x128xf32>
    %233 = vector.extract_strided_slice %221 {offsets = [8, 0], sizes = [1, 128], strides = [1, 1]} : vector<16x128xf32> to vector<1x128xf32>
    %234 = arith.maximumf %232, %233 : vector<1x128xf32>
    %235 = vector.extract_strided_slice %221 {offsets = [9, 0], sizes = [1, 128], strides = [1, 1]} : vector<16x128xf32> to vector<1x128xf32>
    %236 = vector.extract_strided_slice %221 {offsets = [10, 0], sizes = [1, 128], strides = [1, 1]} : vector<16x128xf32> to vector<1x128xf32>
    %237 = arith.maximumf %235, %236 : vector<1x128xf32>
    %238 = vector.extract_strided_slice %221 {offsets = [11, 0], sizes = [1, 128], strides = [1, 1]} : vector<16x128xf32> to vector<1x128xf32>
    %239 = vector.extract_strided_slice %221 {offsets = [12, 0], sizes = [1, 128], strides = [1, 1]} : vector<16x128xf32> to vector<1x128xf32>
    %240 = arith.maximumf %238, %239 : vector<1x128xf32>
    %241 = vector.extract_strided_slice %221 {offsets = [13, 0], sizes = [1, 128], strides = [1, 1]} : vector<16x128xf32> to vector<1x128xf32>
    %242 = vector.extract_strided_slice %221 {offsets = [14, 0], sizes = [1, 128], strides = [1, 1]} : vector<16x128xf32> to vector<1x128xf32>
    %243 = arith.maximumf %241, %242 : vector<1x128xf32>
    %244 = vector.extract_strided_slice %221 {offsets = [15, 0], sizes = [1, 128], strides = [1, 1]} : vector<16x128xf32> to vector<1x128xf32>
    %245 = tpu.concatenate %222, %225, %228, %231, %234, %237, %240, %243, %244 in 0 : vector<1x128xf32>, vector<1x128xf32>, vector<1x128xf32>, vector<1x128xf32>, vector<1x128xf32>, vector<1x128xf32>, vector<1x128xf32>, vector<1x128xf32>, vector<1x128xf32> -> vector<9x128xf32>
    %c78 = arith.constant 78 : index
    %c0_61 = arith.constant 0 : index
    %246 = vector.load %arg9[%c78, %c0_61] : memref<128x128xf32, #tpu.memory_space<vmem>>, vector<9x128xf32>
    tpu.vector_store %arg9[%c78, %c0_61], %245 {strides = array<i32>} : memref<128x128xf32, #tpu.memory_space<vmem>>, vector<9x128xf32>,
    %c234 = arith.constant 234 : index
    %c0_62 = arith.constant 0 : index
    %247 = vector.load %arg8[%c234, %c0_62] : memref<288x128xf32, #tpu.memory_space<vmem>>, vector<16x128xf32>
    %c252 = arith.constant 252 : index
    %c0_63 = arith.constant 0 : index
    %248 = vector.load %arg8[%c252, %c0_63] : memref<288x128xf32, #tpu.memory_space<vmem>>, vector<16x128xf32>
    %249 = arith.maximumf %247, %248 : vector<16x128xf32>
    %250 = vector.extract_strided_slice %249 {offsets = [0, 0], sizes = [1, 128], strides = [1, 1]} : vector<16x128xf32> to vector<1x128xf32>
    %251 = vector.extract_strided_slice %249 {offsets = [1, 0], sizes = [1, 128], strides = [1, 1]} : vector<16x128xf32> to vector<1x128xf32>
    %252 = vector.extract_strided_slice %249 {offsets = [2, 0], sizes = [1, 128], strides = [1, 1]} : vector<16x128xf32> to vector<1x128xf32>
    %253 = arith.maximumf %251, %252 : vector<1x128xf32>
    %254 = vector.extract_strided_slice %249 {offsets = [3, 0], sizes = [1, 128], strides = [1, 1]} : vector<16x128xf32> to vector<1x128xf32>
    %255 = vector.extract_strided_slice %249 {offsets = [4, 0], sizes = [1, 128], strides = [1, 1]} : vector<16x128xf32> to vector<1x128xf32>
    %256 = arith.maximumf %254, %255 : vector<1x128xf32>
    %257 = vector.extract_strided_slice %249 {offsets = [5, 0], sizes = [1, 128], strides = [1, 1]} : vector<16x128xf32> to vector<1x128xf32>
    %258 = vector.extract_strided_slice %249 {offsets = [6, 0], sizes = [1, 128], strides = [1, 1]} : vector<16x128xf32> to vector<1x128xf32>
    %259 = arith.maximumf %257, %258 : vector<1x128xf32>
    %260 = vector.extract_strided_slice %249 {offsets = [7, 0], sizes = [1, 128], strides = [1, 1]} : vector<16x128xf32> to vector<1x128xf32>
    %261 = vector.extract_strided_slice %249 {offsets = [8, 0], sizes = [1, 128], strides = [1, 1]} : vector<16x128xf32> to vector<1x128xf32>
    %262 = arith.maximumf %260, %261 : vector<1x128xf32>
    %263 = vector.extract_strided_slice %249 {offsets = [9, 0], sizes = [1, 128], strides = [1, 1]} : vector<16x128xf32> to vector<1x128xf32>
    %264 = vector.extract_strided_slice %249 {offsets = [10, 0], sizes = [1, 128], strides = [1, 1]} : vector<16x128xf32> to vector<1x128xf32>
    %265 = arith.maximumf %263, %264 : vector<1x128xf32>
    %266 = vector.extract_strided_slice %249 {offsets = [11, 0], sizes = [1, 128], strides = [1, 1]} : vector<16x128xf32> to vector<1x128xf32>
    %267 = vector.extract_strided_slice %249 {offsets = [12, 0], sizes = [1, 128], strides = [1, 1]} : vector<16x128xf32> to vector<1x128xf32>
    %268 = arith.maximumf %266, %267 : vector<1x128xf32>
    %269 = vector.extract_strided_slice %249 {offsets = [13, 0], sizes = [1, 128], strides = [1, 1]} : vector<16x128xf32> to vector<1x128xf32>
    %270 = vector.extract_strided_slice %249 {offsets = [14, 0], sizes = [1, 128], strides = [1, 1]} : vector<16x128xf32> to vector<1x128xf32>
    %271 = arith.maximumf %269, %270 : vector<1x128xf32>
    %272 = vector.extract_strided_slice %249 {offsets = [15, 0], sizes = [1, 128], strides = [1, 1]} : vector<16x128xf32> to vector<1x128xf32>
    %273 = tpu.concatenate %250, %253, %256, %259, %262, %265, %268, %271, %272 in 0 : vector<1x128xf32>, vector<1x128xf32>, vector<1x128xf32>, vector<1x128xf32>, vector<1x128xf32>, vector<1x128xf32>, vector<1x128xf32>, vector<1x128xf32>, vector<1x128xf32> -> vector<9x128xf32>
    %c89 = arith.constant 89 : index
    %c0_64 = arith.constant 0 : index
    %274 = vector.load %arg9[%c89, %c0_64] : memref<128x128xf32, #tpu.memory_space<vmem>>, vector<9x128xf32>
    tpu.vector_store %arg9[%c89, %c0_64], %273 {strides = array<i32>} : memref<128x128xf32, #tpu.memory_space<vmem>>, vector<9x128xf32>,
    %c270 = arith.constant 270 : index
    %c0_65 = arith.constant 0 : index
    %275 = vector.load %arg8[%c270, %c0_65] : memref<288x128xf32, #tpu.memory_space<vmem>>, vector<16x128xf32>
    %276 = vector.extract_strided_slice %275 {offsets = [0, 0], sizes = [1, 128], strides = [1, 1]} : vector<16x128xf32> to vector<1x128xf32>
    %277 = vector.extract_strided_slice %275 {offsets = [1, 0], sizes = [1, 128], strides = [1, 1]} : vector<16x128xf32> to vector<1x128xf32>
    %278 = vector.extract_strided_slice %275 {offsets = [2, 0], sizes = [1, 128], strides = [1, 1]} : vector<16x128xf32> to vector<1x128xf32>
    %279 = arith.maximumf %277, %278 : vector<1x128xf32>
    %280 = vector.extract_strided_slice %275 {offsets = [3, 0], sizes = [1, 128], strides = [1, 1]} : vector<16x128xf32> to vector<1x128xf32>
    %281 = vector.extract_strided_slice %275 {offsets = [4, 0], sizes = [1, 128], strides = [1, 1]} : vector<16x128xf32> to vector<1x128xf32>
    %282 = arith.maximumf %280, %281 : vector<1x128xf32>
    %283 = vector.extract_strided_slice %275 {offsets = [5, 0], sizes = [1, 128], strides = [1, 1]} : vector<16x128xf32> to vector<1x128xf32>
    %284 = vector.extract_strided_slice %275 {offsets = [6, 0], sizes = [1, 128], strides = [1, 1]} : vector<16x128xf32> to vector<1x128xf32>
    %285 = arith.maximumf %283, %284 : vector<1x128xf32>
    %286 = vector.extract_strided_slice %275 {offsets = [7, 0], sizes = [1, 128], strides = [1, 1]} : vector<16x128xf32> to vector<1x128xf32>
    %287 = vector.extract_strided_slice %275 {offsets = [8, 0], sizes = [1, 128], strides = [1, 1]} : vector<16x128xf32> to vector<1x128xf32>
    %288 = arith.maximumf %286, %287 : vector<1x128xf32>
    %289 = vector.extract_strided_slice %275 {offsets = [9, 0], sizes = [1, 128], strides = [1, 1]} : vector<16x128xf32> to vector<1x128xf32>
    %290 = vector.extract_strided_slice %275 {offsets = [10, 0], sizes = [1, 128], strides = [1, 1]} : vector<16x128xf32> to vector<1x128xf32>
    %291 = arith.maximumf %289, %290 : vector<1x128xf32>
    %292 = vector.extract_strided_slice %275 {offsets = [11, 0], sizes = [1, 128], strides = [1, 1]} : vector<16x128xf32> to vector<1x128xf32>
    %293 = vector.extract_strided_slice %275 {offsets = [12, 0], sizes = [1, 128], strides = [1, 1]} : vector<16x128xf32> to vector<1x128xf32>
    %294 = arith.maximumf %292, %293 : vector<1x128xf32>
    %295 = vector.extract_strided_slice %275 {offsets = [13, 0], sizes = [1, 128], strides = [1, 1]} : vector<16x128xf32> to vector<1x128xf32>
    %296 = vector.extract_strided_slice %275 {offsets = [14, 0], sizes = [1, 128], strides = [1, 1]} : vector<16x128xf32> to vector<1x128xf32>
    %297 = arith.maximumf %295, %296 : vector<1x128xf32>
    %298 = vector.extract_strided_slice %275 {offsets = [15, 0], sizes = [1, 128], strides = [1, 1]} : vector<16x128xf32> to vector<1x128xf32>
    %299 = tpu.concatenate %276, %279, %282, %285, %288, %291, %294, %297, %298 in 0 : vector<1x128xf32>, vector<1x128xf32>, vector<1x128xf32>, vector<1x128xf32>, vector<1x128xf32>, vector<1x128xf32>, vector<1x128xf32>, vector<1x128xf32>, vector<1x128xf32> -> vector<9x128xf32>
    %c100 = arith.constant 100 : index
    %c0_66 = arith.constant 0 : index
    %300 = vector.load %arg9[%c100, %c0_66] : memref<128x128xf32, #tpu.memory_space<vmem>>, vector<9x128xf32>
    tpu.vector_store %arg9[%c100, %c0_66], %299 {strides = array<i32>} : memref<128x128xf32, #tpu.memory_space<vmem>>, vector<9x128xf32>,
    %c0_67 = arith.constant 0 : index
    %c0_68 = arith.constant 0 : index
    %301 = vector.load %arg9[%c0_67, %c0_68] : memref<128x128xf32, #tpu.memory_space<vmem>>, vector<99x128xf32>
    %302 = arith.truncf %301 : vector<99x128xf32> to vector<99x128xbf16>
    %c1_69 = arith.constant 1 : index
    %c0_70 = arith.constant 0 : index
    %303 = vector.load %arg9[%c1_69, %c0_70] : memref<128x128xf32, #tpu.memory_space<vmem>>, vector<99x128xf32>
    %304 = arith.truncf %303 : vector<99x128xf32> to vector<99x128xbf16>
    %c2_71 = arith.constant 2 : index
    %c0_72 = arith.constant 0 : index
    %305 = vector.load %arg9[%c2_71, %c0_72] : memref<128x128xf32, #tpu.memory_space<vmem>>, vector<99x128xf32>
    %306 = arith.truncf %305 : vector<99x128xf32> to vector<99x128xbf16>
    %c11 = arith.constant 11 : index
    %c0_73 = arith.constant 0 : index
    %307 = vector.load %arg9[%c11, %c0_73] : memref<128x128xf32, #tpu.memory_space<vmem>>, vector<99x128xf32>
    %308 = arith.truncf %307 : vector<99x128xf32> to vector<99x128xbf16>
    %c12_74 = arith.constant 12 : index
    %c0_75 = arith.constant 0 : index
    %309 = vector.load %arg9[%c12_74, %c0_75] : memref<128x128xf32, #tpu.memory_space<vmem>>, vector<99x128xf32>
    %310 = arith.truncf %309 : vector<99x128xf32> to vector<99x128xbf16>
    %c13 = arith.constant 13 : index
    %c0_76 = arith.constant 0 : index
    %311 = vector.load %arg9[%c13, %c0_76] : memref<128x128xf32, #tpu.memory_space<vmem>>, vector<99x128xf32>
    %312 = arith.truncf %311 : vector<99x128xf32> to vector<99x128xbf16>
    %c22 = arith.constant 22 : index
    %c0_77 = arith.constant 0 : index
    %313 = vector.load %arg9[%c22, %c0_77] : memref<128x128xf32, #tpu.memory_space<vmem>>, vector<99x128xf32>
    %314 = arith.truncf %313 : vector<99x128xf32> to vector<99x128xbf16>
    %c23_78 = arith.constant 23 : index
    %c0_79 = arith.constant 0 : index
    %315 = vector.load %arg9[%c23_78, %c0_79] : memref<128x128xf32, #tpu.memory_space<vmem>>, vector<99x128xf32>
    %316 = arith.truncf %315 : vector<99x128xf32> to vector<99x128xbf16>
    %c24 = arith.constant 24 : index
    %c0_80 = arith.constant 0 : index
    %317 = vector.load %arg9[%c24, %c0_80] : memref<128x128xf32, #tpu.memory_space<vmem>>, vector<99x128xf32>
    %318 = arith.truncf %317 : vector<99x128xf32> to vector<99x128xbf16>
    %319 = tpu.concatenate %302, %304, %306, %308, %310, %312, %314, %316, %318 in 1 : vector<99x128xbf16>, vector<99x128xbf16>, vector<99x128xbf16>, vector<99x128xbf16>, vector<99x128xbf16>, vector<99x128xbf16>, vector<99x128xbf16>, vector<99x128xbf16>, vector<99x128xbf16> -> vector<99x1152xbf16>
    %c0_81 = arith.constant 0 : index
    %c0_82 = arith.constant 0 : index
    %320 = vector.load %arg3[%c0_81, %c0_82] : memref<1152x128xbf16, #tpu.memory_space<vmem>>, vector<1152x128xbf16>
    %cst_83 = arith.constant dense<0.000000e+00> : vector<99x128xf32>
    %321 = tpu.matmul %319, %320, %cst_83 {dimension_numbers = #tpu.dot_dimension_numbers<[1], [0], [0], [1], [0, 0, 1, 1], [], []>} : vector<99x1152xbf16>, vector<1152x128xbf16>, vector<99x128xf32> -> vector<99x128xf32>
    %c2_84 = arith.constant 2 : index
    %c0_85 = arith.constant 0 : index
    %322 = vector.load %arg5[%c2_84, %c0_85] : memref<8x128xf32, #tpu.memory_space<vmem>>, vector<1x128xf32>
    %c2_86 = arith.constant 2 : index
    %c0_87 = arith.constant 0 : index
    %323 = vector.load %arg6[%c2_86, %c0_87] : memref<8x128xf32, #tpu.memory_space<vmem>>, vector<1x128xf32>
    %324 = vector.broadcast %322 : vector<1x128xf32> to vector<99x128xf32>
    %325 = arith.mulf %321, %324 : vector<99x128xf32>
    %326 = vector.broadcast %323 : vector<1x128xf32> to vector<99x128xf32>
    %327 = arith.addf %325, %326 : vector<99x128xf32>
    %cst_88 = arith.constant 0.000000e+00 : f32
    %328 = vector.broadcast %cst_88 : f32 to vector<99x128xf32>
    %329 = arith.maximumf %327, %328 : vector<99x128xf32>
    %330 = arith.truncf %329 : vector<99x128xf32> to vector<99x128xbf16>
    %c1_89 = arith.constant 1 : index
    %c0_90 = arith.constant 0 : index
    %c0_91 = arith.constant 0 : index
    %331 = vector.load %arg4[%c1_89, %c0_90, %c0_91] : memref<5x128x128xbf16, #tpu.memory_space<vmem>>, vector<1x128x128xbf16>
    %332 = vector.shape_cast %331 : vector<1x128x128xbf16> to vector<128x128xbf16>
    %cst_92 = arith.constant dense<0.000000e+00> : vector<99x128xf32>
    %333 = tpu.matmul %330, %332, %cst_92 {dimension_numbers = #tpu.dot_dimension_numbers<[1], [0], [0], [1], [0, 0, 1, 1], [], []>} : vector<99x128xbf16>, vector<128x128xbf16>, vector<99x128xf32> -> vector<99x128xf32>
    %c3 = arith.constant 3 : index
    %c0_93 = arith.constant 0 : index
    %334 = vector.load %arg5[%c3, %c0_93] : memref<8x128xf32, #tpu.memory_space<vmem>>, vector<1x128xf32>
    %c3_94 = arith.constant 3 : index
    %c0_95 = arith.constant 0 : index
    %335 = vector.load %arg6[%c3_94, %c0_95] : memref<8x128xf32, #tpu.memory_space<vmem>>, vector<1x128xf32>
    %336 = vector.broadcast %334 : vector<1x128xf32> to vector<99x128xf32>
    %337 = arith.mulf %333, %336 : vector<99x128xf32>
    %338 = vector.broadcast %335 : vector<1x128xf32> to vector<99x128xf32>
    %339 = arith.addf %337, %338 : vector<99x128xf32>
    %cst_96 = arith.constant 0.000000e+00 : f32
    %340 = vector.broadcast %cst_96 : f32 to vector<99x128xf32>
    %341 = arith.maximumf %339, %340 : vector<99x128xf32>
    %c0_97 = arith.constant 0 : index
    %c0_98 = arith.constant 0 : index
    %342 = vector.load %arg8[%c0_97, %c0_98] : memref<288x128xf32, #tpu.memory_space<vmem>>, vector<99x128xf32>
    tpu.vector_store %arg8[%c0_97, %c0_98], %341 {strides = array<i32>} : memref<288x128xf32, #tpu.memory_space<vmem>>, vector<99x128xf32>,
    %c0_99 = arith.constant 0 : index
    %c0_100 = arith.constant 0 : index
    %343 = vector.load %arg8[%c0_99, %c0_100] : memref<288x128xf32, #tpu.memory_space<vmem>>, vector<9x128xf32>
    %344 = vector.extract_strided_slice %343 {offsets = [0, 0], sizes = [1, 128], strides = [1, 1]} : vector<9x128xf32> to vector<1x128xf32>
    %345 = vector.extract_strided_slice %343 {offsets = [1, 0], sizes = [1, 128], strides = [1, 1]} : vector<9x128xf32> to vector<1x128xf32>
    %346 = vector.extract_strided_slice %343 {offsets = [2, 0], sizes = [1, 128], strides = [1, 1]} : vector<9x128xf32> to vector<1x128xf32>
    %347 = arith.maximumf %345, %346 : vector<1x128xf32>
    %348 = vector.extract_strided_slice %343 {offsets = [3, 0], sizes = [1, 128], strides = [1, 1]} : vector<9x128xf32> to vector<1x128xf32>
    %349 = vector.extract_strided_slice %343 {offsets = [4, 0], sizes = [1, 128], strides = [1, 1]} : vector<9x128xf32> to vector<1x128xf32>
    %350 = arith.maximumf %348, %349 : vector<1x128xf32>
    %351 = vector.extract_strided_slice %343 {offsets = [5, 0], sizes = [1, 128], strides = [1, 1]} : vector<9x128xf32> to vector<1x128xf32>
    %352 = vector.extract_strided_slice %343 {offsets = [6, 0], sizes = [1, 128], strides = [1, 1]} : vector<9x128xf32> to vector<1x128xf32>
    %353 = arith.maximumf %351, %352 : vector<1x128xf32>
    %354 = vector.extract_strided_slice %343 {offsets = [7, 0], sizes = [1, 128], strides = [1, 1]} : vector<9x128xf32> to vector<1x128xf32>
    %355 = vector.extract_strided_slice %343 {offsets = [8, 0], sizes = [1, 128], strides = [1, 1]} : vector<9x128xf32> to vector<1x128xf32>
    %356 = arith.maximumf %354, %355 : vector<1x128xf32>
    %357 = tpu.concatenate %344, %347, %350, %353, %356 in 0 : vector<1x128xf32>, vector<1x128xf32>, vector<1x128xf32>, vector<1x128xf32>, vector<1x128xf32> -> vector<5x128xf32>
    %c0_101 = arith.constant 0 : index
    %c0_102 = arith.constant 0 : index
    %358 = vector.load %arg10[%c0_101, %c0_102] : memref<32x128xf32, #tpu.memory_space<vmem>>, vector<5x128xf32>
    tpu.vector_store %arg10[%c0_101, %c0_102], %357 {strides = array<i32>} : memref<32x128xf32, #tpu.memory_space<vmem>>, vector<5x128xf32>,
    %c11_103 = arith.constant 11 : index
    %c0_104 = arith.constant 0 : index
    %359 = vector.load %arg8[%c11_103, %c0_104] : memref<288x128xf32, #tpu.memory_space<vmem>>, vector<9x128xf32>
    %c22_105 = arith.constant 22 : index
    %c0_106 = arith.constant 0 : index
    %360 = vector.load %arg8[%c22_105, %c0_106] : memref<288x128xf32, #tpu.memory_space<vmem>>, vector<9x128xf32>
    %361 = arith.maximumf %359, %360 : vector<9x128xf32>
    %362 = vector.extract_strided_slice %361 {offsets = [0, 0], sizes = [1, 128], strides = [1, 1]} : vector<9x128xf32> to vector<1x128xf32>
    %363 = vector.extract_strided_slice %361 {offsets = [1, 0], sizes = [1, 128], strides = [1, 1]} : vector<9x128xf32> to vector<1x128xf32>
    %364 = vector.extract_strided_slice %361 {offsets = [2, 0], sizes = [1, 128], strides = [1, 1]} : vector<9x128xf32> to vector<1x128xf32>
    %365 = arith.maximumf %363, %364 : vector<1x128xf32>
    %366 = vector.extract_strided_slice %361 {offsets = [3, 0], sizes = [1, 128], strides = [1, 1]} : vector<9x128xf32> to vector<1x128xf32>
    %367 = vector.extract_strided_slice %361 {offsets = [4, 0], sizes = [1, 128], strides = [1, 1]} : vector<9x128xf32> to vector<1x128xf32>
    %368 = arith.maximumf %366, %367 : vector<1x128xf32>
    %369 = vector.extract_strided_slice %361 {offsets = [5, 0], sizes = [1, 128], strides = [1, 1]} : vector<9x128xf32> to vector<1x128xf32>
    %370 = vector.extract_strided_slice %361 {offsets = [6, 0], sizes = [1, 128], strides = [1, 1]} : vector<9x128xf32> to vector<1x128xf32>
    %371 = arith.maximumf %369, %370 : vector<1x128xf32>
    %372 = vector.extract_strided_slice %361 {offsets = [7, 0], sizes = [1, 128], strides = [1, 1]} : vector<9x128xf32> to vector<1x128xf32>
    %373 = vector.extract_strided_slice %361 {offsets = [8, 0], sizes = [1, 128], strides = [1, 1]} : vector<9x128xf32> to vector<1x128xf32>
    %374 = arith.maximumf %372, %373 : vector<1x128xf32>
    %375 = tpu.concatenate %362, %365, %368, %371, %374 in 0 : vector<1x128xf32>, vector<1x128xf32>, vector<1x128xf32>, vector<1x128xf32>, vector<1x128xf32> -> vector<5x128xf32>
    %c5 = arith.constant 5 : index
    %c0_107 = arith.constant 0 : index
    %376 = vector.load %arg10[%c5, %c0_107] : memref<32x128xf32, #tpu.memory_space<vmem>>, vector<5x128xf32>
    tpu.vector_store %arg10[%c5, %c0_107], %375 {strides = array<i32>} : memref<32x128xf32, #tpu.memory_space<vmem>>, vector<5x128xf32>,
    %c33 = arith.constant 33 : index
    %c0_108 = arith.constant 0 : index
    %377 = vector.load %arg8[%c33, %c0_108] : memref<288x128xf32, #tpu.memory_space<vmem>>, vector<9x128xf32>
    %c44 = arith.constant 44 : index
    %c0_109 = arith.constant 0 : index
    %378 = vector.load %arg8[%c44, %c0_109] : memref<288x128xf32, #tpu.memory_space<vmem>>, vector<9x128xf32>
    %379 = arith.maximumf %377, %378 : vector<9x128xf32>
    %380 = vector.extract_strided_slice %379 {offsets = [0, 0], sizes = [1, 128], strides = [1, 1]} : vector<9x128xf32> to vector<1x128xf32>
    %381 = vector.extract_strided_slice %379 {offsets = [1, 0], sizes = [1, 128], strides = [1, 1]} : vector<9x128xf32> to vector<1x128xf32>
    %382 = vector.extract_strided_slice %379 {offsets = [2, 0], sizes = [1, 128], strides = [1, 1]} : vector<9x128xf32> to vector<1x128xf32>
    %383 = arith.maximumf %381, %382 : vector<1x128xf32>
    %384 = vector.extract_strided_slice %379 {offsets = [3, 0], sizes = [1, 128], strides = [1, 1]} : vector<9x128xf32> to vector<1x128xf32>
    %385 = vector.extract_strided_slice %379 {offsets = [4, 0], sizes = [1, 128], strides = [1, 1]} : vector<9x128xf32> to vector<1x128xf32>
    %386 = arith.maximumf %384, %385 : vector<1x128xf32>
    %387 = vector.extract_strided_slice %379 {offsets = [5, 0], sizes = [1, 128], strides = [1, 1]} : vector<9x128xf32> to vector<1x128xf32>
    %388 = vector.extract_strided_slice %379 {offsets = [6, 0], sizes = [1, 128], strides = [1, 1]} : vector<9x128xf32> to vector<1x128xf32>
    %389 = arith.maximumf %387, %388 : vector<1x128xf32>
    %390 = vector.extract_strided_slice %379 {offsets = [7, 0], sizes = [1, 128], strides = [1, 1]} : vector<9x128xf32> to vector<1x128xf32>
    %391 = vector.extract_strided_slice %379 {offsets = [8, 0], sizes = [1, 128], strides = [1, 1]} : vector<9x128xf32> to vector<1x128xf32>
    %392 = arith.maximumf %390, %391 : vector<1x128xf32>
    %393 = tpu.concatenate %380, %383, %386, %389, %392 in 0 : vector<1x128xf32>, vector<1x128xf32>, vector<1x128xf32>, vector<1x128xf32>, vector<1x128xf32> -> vector<5x128xf32>
    %c10 = arith.constant 10 : index
    %c0_110 = arith.constant 0 : index
    %394 = vector.load %arg10[%c10, %c0_110] : memref<32x128xf32, #tpu.memory_space<vmem>>, vector<5x128xf32>
    tpu.vector_store %arg10[%c10, %c0_110], %393 {strides = array<i32>} : memref<32x128xf32, #tpu.memory_space<vmem>>, vector<5x128xf32>,
    %c55 = arith.constant 55 : index
    %c0_111 = arith.constant 0 : index
    %395 = vector.load %arg8[%c55, %c0_111] : memref<288x128xf32, #tpu.memory_space<vmem>>, vector<9x128xf32>
    %c66 = arith.constant 66 : index
    %c0_112 = arith.constant 0 : index
    %396 = vector.load %arg8[%c66, %c0_112] : memref<288x128xf32, #tpu.memory_space<vmem>>, vector<9x128xf32>
    %397 = arith.maximumf %395, %396 : vector<9x128xf32>
    %398 = vector.extract_strided_slice %397 {offsets = [0, 0], sizes = [1, 128], strides = [1, 1]} : vector<9x128xf32> to vector<1x128xf32>
    %399 = vector.extract_strided_slice %397 {offsets = [1, 0], sizes = [1, 128], strides = [1, 1]} : vector<9x128xf32> to vector<1x128xf32>
    %400 = vector.extract_strided_slice %397 {offsets = [2, 0], sizes = [1, 128], strides = [1, 1]} : vector<9x128xf32> to vector<1x128xf32>
    %401 = arith.maximumf %399, %400 : vector<1x128xf32>
    %402 = vector.extract_strided_slice %397 {offsets = [3, 0], sizes = [1, 128], strides = [1, 1]} : vector<9x128xf32> to vector<1x128xf32>
    %403 = vector.extract_strided_slice %397 {offsets = [4, 0], sizes = [1, 128], strides = [1, 1]} : vector<9x128xf32> to vector<1x128xf32>
    %404 = arith.maximumf %402, %403 : vector<1x128xf32>
    %405 = vector.extract_strided_slice %397 {offsets = [5, 0], sizes = [1, 128], strides = [1, 1]} : vector<9x128xf32> to vector<1x128xf32>
    %406 = vector.extract_strided_slice %397 {offsets = [6, 0], sizes = [1, 128], strides = [1, 1]} : vector<9x128xf32> to vector<1x128xf32>
    %407 = arith.maximumf %405, %406 : vector<1x128xf32>
    %408 = vector.extract_strided_slice %397 {offsets = [7, 0], sizes = [1, 128], strides = [1, 1]} : vector<9x128xf32> to vector<1x128xf32>
    %409 = vector.extract_strided_slice %397 {offsets = [8, 0], sizes = [1, 128], strides = [1, 1]} : vector<9x128xf32> to vector<1x128xf32>
    %410 = arith.maximumf %408, %409 : vector<1x128xf32>
    %411 = tpu.concatenate %398, %401, %404, %407, %410 in 0 : vector<1x128xf32>, vector<1x128xf32>, vector<1x128xf32>, vector<1x128xf32>, vector<1x128xf32> -> vector<5x128xf32>
    %c15 = arith.constant 15 : index
    %c0_113 = arith.constant 0 : index
    %412 = vector.load %arg10[%c15, %c0_113] : memref<32x128xf32, #tpu.memory_space<vmem>>, vector<5x128xf32>
    tpu.vector_store %arg10[%c15, %c0_113], %411 {strides = array<i32>} : memref<32x128xf32, #tpu.memory_space<vmem>>, vector<5x128xf32>,
    %c77 = arith.constant 77 : index
    %c0_114 = arith.constant 0 : index
    %413 = vector.load %arg8[%c77, %c0_114] : memref<288x128xf32, #tpu.memory_space<vmem>>, vector<9x128xf32>
    %c88 = arith.constant 88 : index
    %c0_115 = arith.constant 0 : index
    %414 = vector.load %arg8[%c88, %c0_115] : memref<288x128xf32, #tpu.memory_space<vmem>>, vector<9x128xf32>
    %415 = arith.maximumf %413, %414 : vector<9x128xf32>
    %416 = vector.extract_strided_slice %415 {offsets = [0, 0], sizes = [1, 128], strides = [1, 1]} : vector<9x128xf32> to vector<1x128xf32>
    %417 = vector.extract_strided_slice %415 {offsets = [1, 0], sizes = [1, 128], strides = [1, 1]} : vector<9x128xf32> to vector<1x128xf32>
    %418 = vector.extract_strided_slice %415 {offsets = [2, 0], sizes = [1, 128], strides = [1, 1]} : vector<9x128xf32> to vector<1x128xf32>
    %419 = arith.maximumf %417, %418 : vector<1x128xf32>
    %420 = vector.extract_strided_slice %415 {offsets = [3, 0], sizes = [1, 128], strides = [1, 1]} : vector<9x128xf32> to vector<1x128xf32>
    %421 = vector.extract_strided_slice %415 {offsets = [4, 0], sizes = [1, 128], strides = [1, 1]} : vector<9x128xf32> to vector<1x128xf32>
    %422 = arith.maximumf %420, %421 : vector<1x128xf32>
    %423 = vector.extract_strided_slice %415 {offsets = [5, 0], sizes = [1, 128], strides = [1, 1]} : vector<9x128xf32> to vector<1x128xf32>
    %424 = vector.extract_strided_slice %415 {offsets = [6, 0], sizes = [1, 128], strides = [1, 1]} : vector<9x128xf32> to vector<1x128xf32>
    %425 = arith.maximumf %423, %424 : vector<1x128xf32>
    %426 = vector.extract_strided_slice %415 {offsets = [7, 0], sizes = [1, 128], strides = [1, 1]} : vector<9x128xf32> to vector<1x128xf32>
    %427 = vector.extract_strided_slice %415 {offsets = [8, 0], sizes = [1, 128], strides = [1, 1]} : vector<9x128xf32> to vector<1x128xf32>
    %428 = arith.maximumf %426, %427 : vector<1x128xf32>
    %429 = tpu.concatenate %416, %419, %422, %425, %428 in 0 : vector<1x128xf32>, vector<1x128xf32>, vector<1x128xf32>, vector<1x128xf32>, vector<1x128xf32> -> vector<5x128xf32>
    %c20_116 = arith.constant 20 : index
    %c0_117 = arith.constant 0 : index
    %430 = vector.load %arg10[%c20_116, %c0_117] : memref<32x128xf32, #tpu.memory_space<vmem>>, vector<5x128xf32>
    tpu.vector_store %arg10[%c20_116, %c0_117], %429 {strides = array<i32>} : memref<32x128xf32, #tpu.memory_space<vmem>>, vector<5x128xf32>,
    %c0_118 = arith.constant 0 : index
    %c0_119 = arith.constant 0 : index
    %431 = vector.load %arg10[%c0_118, %c0_119] : memref<32x128xf32, #tpu.memory_space<vmem>>, vector<25x128xf32>
    %432 = arith.truncf %431 : vector<25x128xf32> to vector<25x128xbf16>
    %c2_120 = arith.constant 2 : index
    %c0_121 = arith.constant 0 : index
    %c0_122 = arith.constant 0 : index
    %433 = vector.load %arg4[%c2_120, %c0_121, %c0_122] : memref<5x128x128xbf16, #tpu.memory_space<vmem>>, vector<1x128x128xbf16>
    %434 = vector.shape_cast %433 : vector<1x128x128xbf16> to vector<128x128xbf16>
    %cst_123 = arith.constant dense<0.000000e+00> : vector<25x128xf32>
    %435 = tpu.matmul %432, %434, %cst_123 {dimension_numbers = #tpu.dot_dimension_numbers<[1], [0], [0], [1], [0, 0, 1, 1], [], []>} : vector<25x128xbf16>, vector<128x128xbf16>, vector<25x128xf32> -> vector<25x128xf32>
    %c4 = arith.constant 4 : index
    %c0_124 = arith.constant 0 : index
    %436 = vector.load %arg5[%c4, %c0_124] : memref<8x128xf32, #tpu.memory_space<vmem>>, vector<1x128xf32>
    %c4_125 = arith.constant 4 : index
    %c0_126 = arith.constant 0 : index
    %437 = vector.load %arg6[%c4_125, %c0_126] : memref<8x128xf32, #tpu.memory_space<vmem>>, vector<1x128xf32>
    %438 = vector.broadcast %436 : vector<1x128xf32> to vector<25x128xf32>
    %439 = arith.mulf %435, %438 : vector<25x128xf32>
    %440 = vector.broadcast %437 : vector<1x128xf32> to vector<25x128xf32>
    %441 = arith.addf %439, %440 : vector<25x128xf32>
    %cst_127 = arith.constant 0.000000e+00 : f32
    %442 = vector.broadcast %cst_127 : f32 to vector<25x128xf32>
    %443 = arith.maximumf %441, %442 : vector<25x128xf32>
    %444 = arith.truncf %443 : vector<25x128xf32> to vector<25x128xbf16>
    %c3_128 = arith.constant 3 : index
    %c0_129 = arith.constant 0 : index
    %c0_130 = arith.constant 0 : index
    %445 = vector.load %arg4[%c3_128, %c0_129, %c0_130] : memref<5x128x128xbf16, #tpu.memory_space<vmem>>, vector<1x128x128xbf16>
    %446 = vector.shape_cast %445 : vector<1x128x128xbf16> to vector<128x128xbf16>
    %cst_131 = arith.constant dense<0.000000e+00> : vector<25x128xf32>
    %447 = tpu.matmul %444, %446, %cst_131 {dimension_numbers = #tpu.dot_dimension_numbers<[1], [0], [0], [1], [0, 0, 1, 1], [], []>} : vector<25x128xbf16>, vector<128x128xbf16>, vector<25x128xf32> -> vector<25x128xf32>
    %c5_132 = arith.constant 5 : index
    %c0_133 = arith.constant 0 : index
    %448 = vector.load %arg5[%c5_132, %c0_133] : memref<8x128xf32, #tpu.memory_space<vmem>>, vector<1x128xf32>
    %c5_134 = arith.constant 5 : index
    %c0_135 = arith.constant 0 : index
    %449 = vector.load %arg6[%c5_134, %c0_135] : memref<8x128xf32, #tpu.memory_space<vmem>>, vector<1x128xf32>
    %450 = vector.broadcast %448 : vector<1x128xf32> to vector<25x128xf32>
    %451 = arith.mulf %447, %450 : vector<25x128xf32>
    %452 = vector.broadcast %449 : vector<1x128xf32> to vector<25x128xf32>
    %453 = arith.addf %451, %452 : vector<25x128xf32>
    %cst_136 = arith.constant 0.000000e+00 : f32
    %454 = vector.broadcast %cst_136 : f32 to vector<25x128xf32>
    %455 = arith.maximumf %453, %454 : vector<25x128xf32>
    %cst_137 = arith.constant dense<0.000000e+00> : vector<128xf32>
    %456 = vector.multi_reduction <add>, %455, %cst_137 [0] : vector<25x128xf32> to vector<128xf32>
    %457 = vector.shape_cast %456 : vector<128xf32> to vector<1x128xf32>
    %cst_138 = arith.constant 4.000000e-02 : f32
    %458 = vector.broadcast %cst_138 : f32 to vector<1x128xf32>
    %459 = arith.mulf %457, %458 : vector<1x128xf32>
    %460 = arith.truncf %459 : vector<1x128xf32> to vector<1x128xbf16>
    %c4_139 = arith.constant 4 : index
    %c0_140 = arith.constant 0 : index
    %c0_141 = arith.constant 0 : index
    %461 = vector.load %arg4[%c4_139, %c0_140, %c0_141] : memref<5x128x128xbf16, #tpu.memory_space<vmem>>, vector<1x128x128xbf16>
    %462 = vector.shape_cast %461 : vector<1x128x128xbf16> to vector<128x128xbf16>
    %cst_142 = arith.constant dense<0.000000e+00> : vector<1x128xf32>
    %463 = tpu.matmul %460, %462, %cst_142 {dimension_numbers = #tpu.dot_dimension_numbers<[1], [0], [0], [1], [0, 0, 1, 1], [], []>} : vector<1x128xbf16>, vector<128x128xbf16>, vector<1x128xf32> -> vector<1x128xf32>
    %c6 = arith.constant 6 : index
    %c0_143 = arith.constant 0 : index
    %464 = vector.load %arg6[%c6, %c0_143] : memref<8x128xf32, #tpu.memory_space<vmem>>, vector<1x128xf32>
    %465 = arith.addf %463, %464 : vector<1x128xf32>
    %466 = vector.shape_cast %465 : vector<1x128xf32> to vector<1x1x128xf32>
    %467 = vector.shape_cast %466 : vector<1x1x128xf32> to vector<1x1x128xf32>
    %468 = vector.broadcast %467 : vector<1x1x128xf32> to vector<1x8x128xf32>
    %c0_144 = arith.constant 0 : index
    %c0_145 = arith.constant 0 : index
    %c0_146 = arith.constant 0 : index
    %469 = vector.load %arg7[%c0_144, %c0_145, %c0_146] : memref<1x8x128xf32, #tpu.memory_space<vmem>>, vector<1x8x128xf32>
    tpu.vector_store %arg7[%c0_144, %c0_145, %c0_146], %468 {strides = array<i32>} : memref<1x8x128xf32, #tpu.memory_space<vmem>>, vector<1x8x128xf32>,
    return
  }
  func.func @transform_0(%arg0: i32) -> (i32, i32, i32) {
    %c0_i32 = arith.constant 0 : i32
    %c0_i32_0 = arith.constant 0 : i32
    %c0_i32_1 = arith.constant 0 : i32
    return %arg0, %c0_i32, %c0_i32_0 : i32, i32, i32
  }
  func.func @transform_1(%arg0: i32) -> (i32, i32) {
    %c0_i32 = arith.constant 0 : i32
    %c0_i32_0 = arith.constant 0 : i32
    %c0_i32_1 = arith.constant 0 : i32
    return %c0_i32, %c0_i32_0 : i32, i32
  }
  func.func @transform_2(%arg0: i32) -> (i32, i32) {
    %c0_i32 = arith.constant 0 : i32
    %c0_i32_0 = arith.constant 0 : i32
    %c0_i32_1 = arith.constant 0 : i32
    return %c0_i32, %c0_i32_0 : i32, i32
  }
  func.func @transform_3(%arg0: i32) -> (i32, i32, i32) {
    %c0_i32 = arith.constant 0 : i32
    %c0_i32_0 = arith.constant 0 : i32
    %c0_i32_1 = arith.constant 0 : i32
    %c0_i32_2 = arith.constant 0 : i32
    return %c0_i32, %c0_i32_0, %c0_i32_1 : i32, i32, i32
  }
  func.func @transform_4(%arg0: i32) -> (i32, i32) {
    %c0_i32 = arith.constant 0 : i32
    %c0_i32_0 = arith.constant 0 : i32
    %c0_i32_1 = arith.constant 0 : i32
    return %c0_i32, %c0_i32_0 : i32, i32
  }
  func.func @transform_5(%arg0: i32) -> (i32, i32) {
    %c0_i32 = arith.constant 0 : i32
    %c0_i32_0 = arith.constant 0 : i32
    %c0_i32_1 = arith.constant 0 : i32
    return %c0_i32, %c0_i32_0 : i32, i32
  }
  func.func @transform_6(%arg0: i32) -> (i32, i32, i32) {
    %c0_i32 = arith.constant 0 : i32
    %c0_i32_0 = arith.constant 0 : i32
    %c0_i32_1 = arith.constant 0 : i32
    return %arg0, %c0_i32, %c0_i32_0 : i32, i32, i32
  }
}

</mosaic_0001>

<bundles_post_ra>
// kernel: _lambda_.1
= control target key start
LH: loop header
LB: loop body
LE: loop exit
PB: predicated region body
PF: predicated region fallthrough
CT: control target
= control target key end

     0   :  { %s6380_s21 = smov 0   ;;  %s8007_s0 = inlined_call_operand.vmem [shape: f32[2,328,128], index: 0, kind: input, shape index: {}]   ;;  %s8008_s1 = inlined_call_operand.vmem [shape: bf16[1152,128], index: 1, kind: input, shape index: {}]   ;;  %s8009_s2 = inlined_call_operand.vmem [shape: bf16[1152,128], index: 2, kind: input, shape index: {}]   ;;  %s8010_s3 = inlined_call_operand.vmem [shape: bf16[5,128,128], index: 3, kind: input, shape index: {}]   ;;  %s8011_s4 = inlined_call_operand.vmem [shape: f32[8,128], index: 4, kind: input, shape index: {}]   ;;  %s8012_s5 = inlined_call_operand.vmem [shape: f32[8,128], index: 5, kind: input, shape index: {}]   ;;  %s8013_s6 = inlined_call_operand.vmem [shape: f32[2,8,128], index: 6, kind: output, shape index: {}]  }
   0x1 LB: > { %s5056_s22 = sadd.s32 4294967295, %s6340_s21   ;;  %p5060_p0 = scmp.ge.s32.totalorder %s6340_s21, 1  ;;  %s6340_s21 = sphi %s6380_s21, %s16_s21  }
   0x2   : > { %p212_p1 = scmp.lt.s32.totalorder %s6340_s21, 3 }
   0x4   : > { %p213_p2 = pnand %p5060_p0, %p212_p1 }
   0x5   : > { %v6148_v0 = vld [vmem:[%s8008_s1] sm:$0xff] (!%p213_p2)   ;;  %v6342_v1 = vmov (!%p213_p2), 0   ;;  %p241_p3 = scmp.lt.s32.totalorder (!%p213_p2), %s5056_s22, 1  ;;  %v6149_v2 = vld [vmem:[%s8008_s1 + $0x8] sm:$0xff] (!%p213_p2)   ;;  %v6150_v3 = vld [vmem:[%s8008_s1 + $0x10] sm:$0xff] (!%p213_p2)   ;;  %vm2671_vm0 = vcmask (!%p213_p2), 1040384  }
   0x6   : > { %216 = sbr.rel (%p213_p2) target bundleno = 2498 (0x9c2), region = 44  ;;  %1211 = vmatprep.subr.bf16.mxu0 (!%p213_p2), %v6342_v1  ;;  %v6151_v4 = vld [vmem:[%s8008_s1 + $0x18] sm:$0xff] (!%p213_p2)   ;;  %v6152_v5 = vld [vmem:[%s8008_s1 + $0x20] sm:$0xff] (!%p213_p2)   ;;  %v6153_v9 = vld [vmem:[%s8008_s1 + $0x28] sm:$0xff] (!%p213_p2)   ;;  %vm2673_vm1 = vcmask (!%p213_p2), 1041408   ;;  %vm2675_vm2 = vcmask (!%p213_p2), 1042432  }
   0x7   : > { %1212 = vmatpush1.bf16.msra.mxu0 (!%p213_p2), %v6148_v0  ;;  %v6154_v10 = vld [vmem:[%s8008_s1 + $0x30] sm:$0xff] (!%p213_p2)   ;;  %v6155_v11 = vld [vmem:[%s8008_s1 + $0x38] sm:$0xff] (!%p213_p2)   ;;  %v6156_v12 = vld [vmem:[%s8008_s1 + $0x40] sm:$0xff] (!%p213_p2)   ;;  %vm2677_vm3 = vcmask (!%p213_p2), 1043456   ;;  %vm2679_vm4 = vcmask (!%p213_p2), 1044480   ;;  %vm2681_vm5 = vcmask (!%p213_p2), 1045504  }
   0x8   : > { %1213 = vmatprep.subr.bf16.mxu0 (!%p213_p2), %v6342_v1  ;;  %v6157_v13 = vld [vmem:[%s8008_s1 + $0x48] sm:$0xff] (!%p213_p2)   ;;  %v6158_v14 = vld [vmem:[%s8008_s1 + $0x50] sm:$0xff] (!%p213_p2)   ;;  %v6159_v15 = vld [vmem:[%s8008_s1 + $0x58] sm:$0xff] (!%p213_p2)   ;;  %vm2683_vm6 = vcmask (!%p213_p2), 1046528   ;;  %vm6344_vm7 = vmmov (!%p213_p2), 0  }
   0x9   : > { %v6160_v16 = vld [vmem:[%s8008_s1 + $0x60] sm:$0xff] (!%p213_p2)   ;;  %v6161_v17 = vld [vmem:[%s8008_s1 + $0x68] sm:$0xff] (!%p213_p2)   ;;  %v6162_v18 = vld [vmem:[%s8008_s1 + $0x70] sm:$0xff] (!%p213_p2)  }
   0xa   : > { %v6163_v19 = vld [vmem:[%s8008_s1 + $0x78] sm:$0xff] (!%p213_p2)   ;;  %v6164_v24 = vld [vmem:[%s8008_s1 + $0x80] sm:$0xff] (!%p213_p2)   ;;  %v6165_v29 = vld [vmem:[%s8008_s1 + $0x88] sm:$0xff] (!%p213_p2)  }
   0xb   : > { %1214 = vmatpush1.bf16.msra.mxu0 (!%p213_p2), %v6149_v2  ;;  %v6166_v32 = vld [vmem:[%s8008_s1 + $0x90] sm:$0xff] (!%p213_p2)   ;;  %v6167_v39 = vld [vmem:[%s8008_s1 + $0x98] sm:$0xff] (!%p213_p2)   ;;  %v6168_v40 = vld [vmem:[%s8008_s1 + $0xa0] sm:$0xff] (!%p213_p2)  }
   0xc   : > { %1215 = vmatprep.subr.bf16.mxu0 (!%p213_p2), %v6342_v1  ;;  %v6169_v47 = vld [vmem:[%s8008_s1 + $0xa8] sm:$0xff] (!%p213_p2)   ;;  %v6170_v48 = vld [vmem:[%s8008_s1 + $0xb0] sm:$0xff] (!%p213_p2)   ;;  %v6171_v55 = vld [vmem:[%s8008_s1 + $0xb8] sm:$0xff] (!%p213_p2)  }
   0xd   : > { %s8015_s22 = smov (!%p241_p3, %s5056_s22), 1  ;;  %v6172_v56 = vld [vmem:[%s8008_s1 + $0xc0] sm:$0xff]   ;;  %v6173_v63 = vld [vmem:[%s8008_s1 + $0xc8] sm:$0xff]   ;;  %v6174_v0 = vld [vmem:[%s8008_s1 + $0xd0] sm:$0xff]  }
   0xe   : > { %s6136_s29 = smul.u32 328, %s8015_s22  ;;  %s5062_s7 = sshll.u32 %s8015_s22, 3 }
   0xf   : > { %1216 = vmatpush1.bf16.msra.mxu0 %v6150_v3  ;;  %s249_s11 = scalar_lea.vmem %s8013_s6, %s5062_s7 }
  0x10   : > { %1217 = vmatprep.subr.bf16.mxu0 %v6342_v1  ;;  %s6410_s10 = scalar_lea.vmem %s8007_s0, %s6136_s29 }
  0x11   : > { %v305_v6 = vld [vmem:[%s6410_s10 + $0x1] sm:$0xff]  ;;  %v306_v7 = vld [vmem:[%s6410_s10 + $0x9] sm:$0xff]  ;;  %v307_v22 = vld [vmem:[%s6410_s10 + $0x11] sm:$0xff] }
  0x12   : > { %v341_v8 = vpack.c.bf16 %v306_v7, %v305_v6  ;;  %v251_v20 = vld [vmem:[%s6410_s10] sm:$0xff]  ;;  %v252_v21 = vld [vmem:[%s6410_s10 + $0x8] sm:$0xff]  ;;  %v253_v27 = vld [vmem:[%s6410_s10 + $0x10] sm:$0xff] }
  0x13   : > { %1218 = vmatpush1.bf16.msra.mxu0 %v6151_v4  ;;  %v308_v23 = vld [vmem:[%s6410_s10 + $0x19] sm:$0xff]  ;;  %v287_v25 = vpack.c.bf16 %v252_v21, %v251_v20  ;;  %v309_v30 = vld [vmem:[%s6410_s10 + $0x21] sm:$0xff]  ;;  %v310_v31 = vld [vmem:[%s6410_s10 + $0x29] sm:$0xff] }
  0x14   : > { %1219 = vmatprep.subr.bf16.mxu0 %v6342_v1  ;;  %1243 = vmatprep.mubr.bf16.mxu0 %v341_v8  ;;  %v342_v26 = vpack.c.bf16 %v308_v23, %v307_v22  ;;  %v254_v28 = vld [vmem:[%s6410_s10 + $0x18] sm:$0xff]  ;;  %v343_v34 = vpack.c.bf16 %v310_v31, %v309_v30  ;;  %v255_v35 = vld [vmem:[%s6410_s10 + $0x20] sm:$0xff]  ;;  %v256_v36 = vld [vmem:[%s6410_s10 + $0x28] sm:$0xff] }
  0x15   : > { %v288_v33 = vpack.c.bf16 %v254_v28, %v253_v27  ;;  %v311_v37 = vld [vmem:[%s6410_s10 + $0x31] sm:$0xff]  ;;  %v312_v38 = vld [vmem:[%s6410_s10 + $0x39] sm:$0xff]  ;;  %v289_v41 = vpack.c.bf16 %v256_v36, %v255_v35  ;;  %v313_v45 = vld [vmem:[%s6410_s10 + $0x41] sm:$0xff] }
  0x16   : > { %v344_v42 = vpack.c.bf16 %v312_v38, %v311_v37  ;;  %v257_v43 = vld [vmem:[%s6410_s10 + $0x30] sm:$0xff]  ;;  %v258_v44 = vld [vmem:[%s6410_s10 + $0x38] sm:$0xff]  ;;  %v259_v51 = vld [vmem:[%s6410_s10 + $0x40] sm:$0xff] }
  0x17   : > { %1220 = vmatpush1.bf16.msra.mxu0 %v6152_v5  ;;  %v314_v46 = vld [vmem:[%s6410_s10 + $0x49] sm:$0xff]  ;;  %v290_v49 = vpack.c.bf16 %v258_v44, %v257_v43  ;;  %v315_v53 = vld [vmem:[%s6410_s10 + $0x51] sm:$0xff]  ;;  %v316_v54 = vld [vmem:[%s6410_s10 + $0x59] sm:$0xff] }
  0x18   : > { %1221 = vmatprep.subr.bf16.mxu0 %v6342_v1  ;;  %v345_v50 = vpack.c.bf16 %v314_v46, %v313_v45  ;;  %v260_v52 = vld [vmem:[%s6410_s10 + $0x48] sm:$0xff]  ;;  %v346_v58 = vpack.c.bf16 %v316_v54, %v315_v53  ;;  %v261_v59 = vld [vmem:[%s6410_s10 + $0x50] sm:$0xff]  ;;  %v262_v60 = vld [vmem:[%s6410_s10 + $0x58] sm:$0xff] }
  0x19   : > { %v291_v57 = vpack.c.bf16 %v260_v52, %v259_v51  ;;  %v317_v61 = vld [vmem:[%s6410_s10 + $0x61] sm:$0xff]  ;;  %v318_v62 = vld [vmem:[%s6410_s10 + $0x69] sm:$0xff]  ;;  %v292_v2 = vpack.c.bf16 %v262_v60, %v261_v59  ;;  %v319_v6 = vld [vmem:[%s6410_s10 + $0x71] sm:$0xff] }
  0x1a   : > { %v347_v3 = vpack.c.bf16 %v318_v62, %v317_v61  ;;  %v263_v4 = vld [vmem:[%s6410_s10 + $0x60] sm:$0xff]  ;;  %v264_v5 = vld [vmem:[%s6410_s10 + $0x68] sm:$0xff]  ;;  %v6175_v8 = vld [vmem:[%s8008_s1 + $0xd8] sm:$0xff]  }
  0x1b   : > { %1222 = vmatpush1.bf16.msra.mxu0 %v6153_v9  ;;  %v320_v7 = vld [vmem:[%s6410_s10 + $0x79] sm:$0xff]  ;;  %v268_v21 = vld [vmem:[%s6410_s10 + $0x88] sm:$0xff]  ;;  %v323_v22 = vld [vmem:[%s6410_s10 + $0x91] sm:$0xff] }
  0x1c   : > { %1223 = vmatprep.subr.bf16.mxu0 %v6342_v1  ;;  %v6176_v9 = vld [vmem:[%s8008_s1 + $0xe0] sm:$0xff]   ;;  %v269_v27 = vld [vmem:[%s6410_s10 + $0x90] sm:$0xff]  ;;  %v270_v28 = vld [vmem:[%s6410_s10 + $0x98] sm:$0xff] }
  0x1d   : > { %v267_v20 = vld [vmem:[%s6410_s10 + $0x80] sm:$0xff]  ;;  %v326_v30 = vld [vmem:[%s6410_s10 + $0xa9] sm:$0xff]  ;;  %v296_v31 = vpack.c.bf16 %v270_v28, %v269_v27  ;;  %v327_v35 = vld [vmem:[%s6410_s10 + $0xb1] sm:$0xff] }
  0x1e   : > { %v324_v23 = vld [vmem:[%s6410_s10 + $0x99] sm:$0xff]  ;;  %v276_v46 = vld [vmem:[%s6410_s10 + $0xc8] sm:$0xff]  ;;  %v277_v51 = vld [vmem:[%s6410_s10 + $0xd0] sm:$0xff] }
  0x1f   : > { %1224 = vmatpush1.bf16.msra.mxu0 %v6154_v10  ;;  %v293_v10 = vpack.c.bf16 %v264_v5, %v263_v4  ;;  %v328_v36 = vld [vmem:[%s6410_s10 + $0xb9] sm:$0xff]  ;;  %v333_v53 = vld [vmem:[%s6410_s10 + $0xe1] sm:$0xff]  ;;  %v334_v54 = vld [vmem:[%s6410_s10 + $0xe9] sm:$0xff] }
  0x20   : > { %1225 = vmatprep.subr.bf16.mxu0 %v6342_v1  ;;  %v352_v38 = vpack.c.bf16 %v328_v36, %v327_v35  ;;  %v275_v45 = vld [vmem:[%s6410_s10 + $0xc0] sm:$0xff]  ;;  %v278_v52 = vld [vmem:[%s6410_s10 + $0xd8] sm:$0xff]  ;;  %v6185_v35 = vld [vmem:[%s8008_s1 + $0x128] sm:$0xff]  }
  0x21   : > { %v335_v59 = vld [vmem:[%s6410_s10 + $0xf1] sm:$0xff]  ;;  %v336_v60 = vld [vmem:[%s6410_s10 + $0xf9] sm:$0xff] }
  0x22   : > { %v356_v62 = vpack.c.bf16 %v336_v60, %v335_v59  ;;  %v366_v27 = vld [vmem:[%s6410_s10 + $0x3a] sm:$0xff]  ;;  %v369_v36 = vld [vmem:[%s6410_s10 + $0x52] sm:$0xff] }
  0x23   : > { %1226 = vmatpush1.bf16.msra.mxu0 %v6155_v11  ;;  %v348_v11 = vpack.c.bf16 %v320_v7, %v319_v6  ;;  %v283_v6 = vld [vmem:[%s6410_s10 + $0x100] sm:$0xff]  ;;  %v284_v7 = vld [vmem:[%s6410_s10 + $0x108] sm:$0xff]  ;;  %v6194_v59 = vld [vmem:[%s8008_s1 + $0x170] sm:$0xff]  }
  0x24   : > { %1227 = vmatprep.subr.bf16.mxu0 %v6342_v1  ;;  %v6195_v60 = vld [vmem:[%s8008_s1 + $0x178] sm:$0xff]  }
  0x27   : > { %1228 = vmatpush1.bf16.msra.mxu0 %v6156_v12  ;;  %v265_v12 = vld [vmem:[%s6410_s10 + $0x70] sm:$0xff] }
  0x28   : > { %1229 = vmatprep.subr.bf16.mxu0 %v6342_v1 }
  0x2b   : > { %1230 = vmatpush1.bf16.msra.mxu0 %v6157_v13  ;;  %v266_v13 = vld [vmem:[%s6410_s10 + $0x78] sm:$0xff] }
  0x2c   : > { %1231 = vmatprep.subr.bf16.mxu0 %v6342_v1 }
  0x2f   : > { %1232 = vmatpush1.bf16.msra.mxu0 %v6158_v14  ;;  %v321_v14 = vld [vmem:[%s6410_s10 + $0x81] sm:$0xff] }
  0x30   : > { %1233 = vmatprep.subr.bf16.mxu0 %v6342_v1 }
  0x33   : > { %1234 = vmatpush1.bf16.msra.mxu0 %v6159_v15  ;;  %v322_v15 = vld [vmem:[%s6410_s10 + $0x89] sm:$0xff] }
  0x34   : > { %1235 = vmatprep.subr.bf16.mxu0 %v6342_v1 }
  0x37   : > { %1236 = vmatpush1.bf16.msra.mxu0 %v6160_v16  ;;  %v6177_v16 = vld [vmem:[%s8008_s1 + $0xe8] sm:$0xff]  }
  0x38   : > { %1237 = vmatprep.subr.bf16.mxu0 %v6342_v1 }
  0x3b   : > { %1238 = vmatpush1.bf16.msra.mxu0 %v6161_v17  ;;  %v6178_v17 = vld [vmem:[%s8008_s1 + $0xf0] sm:$0xff]  }
  0x3c   : > { %1239 = vmatprep.subr.bf16.mxu0 %v6342_v1 }
  0x3f   : > { %1240 = vmatpush1.bf16.msra.mxu0 %v6162_v18  ;;  %v294_v18 = vpack.c.bf16 %v266_v13, %v265_v12  ;;  %v285_v12 = vld [vmem:[%s6410_s10 + $0x110] sm:$0xff]  ;;  %v286_v13 = vld [vmem:[%s6410_s10 + $0x118] sm:$0xff] }
  0x40   : > { %1241 = vmatprep.subr.bf16.mxu0 %v6342_v1 }
  0x43   : > { %1242 = vmatpush1.bf16.msra.mxu0 %v6163_v19  ;;  %v349_v19 = vpack.c.bf16 %v322_v15, %v321_v14  ;;  %v361_v14 = vld [vmem:[%s6410_s10 + $0x12] sm:$0xff]  ;;  %v362_v15 = vld [vmem:[%s6410_s10 + $0x1a] sm:$0xff] }
  0x44   : > { %1388 = vmatprep.subr.bf16.mxu0 %v6342_v1 }
  0x46   : > { %1244 = vmatmul.mubr.bf16.vlgmr.msra.gmra.mrb[0].mxu0 %v287_v25  ;;  %v295_v25 = vpack.c.bf16 %v268_v21, %v267_v20  ;;  %v363_v20 = vld [vmem:[%s6410_s10 + $0x22] sm:$0xff]  ;;  %v364_v21 = vld [vmem:[%s6410_s10 + $0x2a] sm:$0xff] }
  0x47   : > { %1389 = vmatpush1.bf16.msra.mxu0 %v6164_v24  ;;  %1251 = vmatprep.mubr.bf16.mxu0 %v342_v26  ;;  %v6179_v24 = vld [vmem:[%s8008_s1 + $0xf8] sm:$0xff]   ;;  %v350_v26 = vpack.c.bf16 %v324_v23, %v323_v22  ;;  %v6180_v23 = vld [vmem:[%s8008_s1 + $0x100] sm:$0xff]  }
  0x48   : > { %1390 = vmatprep.subr.bf16.mxu0 %v6342_v1 }
  0x4b   : > { %1391 = vmatpush1.bf16.msra.mxu0 %v6165_v29  ;;  %v325_v29 = vld [vmem:[%s6410_s10 + $0xa1] sm:$0xff] }
  0x4c   : > { %1392 = vmatprep.subr.bf16.mxu0 %v6342_v1 }
  0x4e   : > { %1252 = vmatmul.mubr.bf16.gmra.mrb[4].mxu0 %v288_v33  ;;  %v271_v33 = vld [vmem:[%s6410_s10 + $0xa0] sm:$0xff] }
  0x4f   : > { %1259 = vmatprep.mubr.bf16.mxu0 %v343_v34  ;;  %1393 = vmatpush1.bf16.msra.mxu0 %v6166_v32  ;;  %v351_v32 = vpack.c.bf16 %v326_v30, %v325_v29  ;;  %v272_v34 = vld [vmem:[%s6410_s10 + $0xa8] sm:$0xff]  ;;  %v6182_v29 = vld [vmem:[%s8008_s1 + $0x110] sm:$0xff]   ;;  %v6183_v30 = vld [vmem:[%s8008_s1 + $0x118] sm:$0xff]  }
  0x50   : > { %1394 = vmatprep.subr.bf16.mxu0 %v6342_v1  ;;  %v297_v37 = vpack.c.bf16 %v272_v34, %v271_v33  ;;  %v6184_v34 = vld [vmem:[%s8008_s1 + $0x120] sm:$0xff]  }
  0x53   : > { %1395 = vmatpush1.bf16.msra.mxu0 %v6167_v39  ;;  %v273_v39 = vld [vmem:[%s6410_s10 + $0xb0] sm:$0xff] }
  0x54   : > { %1396 = vmatprep.subr.bf16.mxu0 %v6342_v1 }
  0x56   : > { %1260 = vmatmul.mubr.bf16.gmra.mrb[8].mxu0 %v289_v41  ;;  %v329_v41 = vld [vmem:[%s6410_s10 + $0xc1] sm:$0xff] }
  0x57   : > { %1267 = vmatprep.mubr.bf16.mxu0 %v344_v42  ;;  %1397 = vmatpush1.bf16.msra.mxu0 %v6168_v40  ;;  %v274_v40 = vld [vmem:[%s6410_s10 + $0xb8] sm:$0xff]  ;;  %v330_v42 = vld [vmem:[%s6410_s10 + $0xc9] sm:$0xff] }
  0x58   : > { %1398 = vmatprep.subr.bf16.mxu0 %v6342_v1  ;;  %v298_v43 = vpack.c.bf16 %v274_v40, %v273_v39  ;;  %v353_v44 = vpack.c.bf16 %v330_v42, %v329_v41  ;;  %v6186_v39 = vld [vmem:[%s8008_s1 + $0x130] sm:$0xff]   ;;  %v6187_v40 = vld [vmem:[%s8008_s1 + $0x138] sm:$0xff]   ;;  %v371_v41 = vld [vmem:[%s6410_s10 + $0x62] sm:$0xff] }
  0x59   : > { %v372_v42 = vld [vmem:[%s6410_s10 + $0x6a] sm:$0xff] }
  0x5b   : > { %1399 = vmatpush1.bf16.msra.mxu0 %v6169_v47  ;;  %v331_v47 = vld [vmem:[%s6410_s10 + $0xd1] sm:$0xff] }
  0x5c   : > { %1400 = vmatprep.subr.bf16.mxu0 %v6342_v1 }
  0x5e   : > { %1268 = vmatmul.mubr.bf16.gmra.mrb[12].mxu0 %v290_v49  ;;  %v299_v49 = vpack.c.bf16 %v276_v46, %v275_v45  ;;  %v6189_v45 = vld [vmem:[%s8008_s1 + $0x148] sm:$0xff]   ;;  %v373_v46 = vld [vmem:[%s6410_s10 + $0x72] sm:$0xff] }
  0x5f   : > { %1275 = vmatprep.mubr.bf16.mxu0 %v345_v50  ;;  %1401 = vmatpush1.bf16.msra.mxu0 %v6170_v48  ;;  %v332_v48 = vld [vmem:[%s6410_s10 + $0xd9] sm:$0xff] }
  0x60   : > { %1402 = vmatprep.subr.bf16.mxu0 %v6342_v1  ;;  %v354_v50 = vpack.c.bf16 %v332_v48, %v331_v47  ;;  %v374_v47 = vld [vmem:[%s6410_s10 + $0x7a] sm:$0xff] }
  0x61   : > { %v402_v48 = vpack.c.bf16 %v374_v47, %v373_v46  ;;  %v475_v46 = vld [vmem:[%s6410_s10 + $0x3c] sm:$0xff] }
  0x63   : > { %1403 = vmatpush1.bf16.msra.mxu0 %v6171_v55  ;;  %v300_v55 = vpack.c.bf16 %v278_v52, %v277_v51  ;;  %v375_v51 = vld [vmem:[%s6410_s10 + $0x82] sm:$0xff]  ;;  %v376_v52 = vld [vmem:[%s6410_s10 + $0x8a] sm:$0xff] }
  0x64   : > { %1404 = vmatprep.subr.bf16.mxu0 %v6342_v1 }
  0x66   : > { %1276 = vmatmul.mubr.bf16.gmra.mrb[16].mxu0 %v291_v57  ;;  %v279_v57 = vld [vmem:[%s6410_s10 + $0xe0] sm:$0xff] }
  0x67   : > { %1283 = vmatprep.mubr.bf16.mxu0 %v346_v58  ;;  %1405 = vmatpush1.bf16.msra.mxu0 %v6172_v56  ;;  %v355_v56 = vpack.c.bf16 %v334_v54, %v333_v53  ;;  %v280_v58 = vld [vmem:[%s6410_s10 + $0xe8] sm:$0xff]  ;;  %v403_v53 = vpack.c.bf16 %v376_v52, %v375_v51  ;;  %v6192_v54 = vld [vmem:[%s8008_s1 + $0x160] sm:$0xff]   ;;  %v6219_v52 = vld [vmem:[%s8008_s1 + $0x238] sm:$0xff]  }
  0x68   : > { %1406 = vmatprep.subr.bf16.mxu0 %v6342_v1  ;;  %v301_v61 = vpack.c.bf16 %v280_v58, %v279_v57  ;;  %v378_v57 = vld [vmem:[%s6410_s10 + $0x9a] sm:$0xff] }
  0x69   : > { %v421_v51 = vld [vmem:[%s6410_s10 + $0x3b] sm:$0xff] }
  0x6b   : > { %1407 = vmatpush1.bf16.msra.mxu0 %v6173_v63  ;;  %v281_v63 = vld [vmem:[%s6410_s10 + $0xf0] sm:$0xff] }
  0x6c   : > { %1408 = vmatprep.subr.bf16.mxu0 %v6342_v1 }
  0x6e   : > { %1284 = vmatmul.mubr.bf16.gmra.mrb[20].mxu0 %v292_v2  ;;  %v337_v2 = vld [vmem:[%s6410_s10 + $0x101] sm:$0xff] }
  0x6f   : > { %1291 = vmatprep.mubr.bf16.mxu0 %v347_v3  ;;  %1409 = vmatpush1.bf16.msra.mxu0 %v6174_v0  ;;  %v282_v0 = vld [vmem:[%s6410_s10 + $0xf8] sm:$0xff]  ;;  %v338_v3 = vld [vmem:[%s6410_s10 + $0x109] sm:$0xff] }
  0x70   : > { %1410 = vmatprep.subr.bf16.mxu0 %v6342_v1  ;;  %v302_v4 = vpack.c.bf16 %v282_v0, %v281_v63  ;;  %v357_v5 = vpack.c.bf16 %v338_v3, %v337_v2  ;;  %v381_v0 = vld [vmem:[%s6410_s10 + $0xb2] sm:$0xff]  ;;  %v382_v2 = vld [vmem:[%s6410_s10 + $0xba] sm:$0xff] }
  0x71   : > { %v406_v3 = vpack.c.bf16 %v382_v2, %v381_v0  ;;  %v6200_v0 = vld [vmem:[%s8008_s1 + $0x1a0] sm:$0xff]  }
  0x72   : > { %v422_v2 = vld [vmem:[%s6410_s10 + $0x43] sm:$0xff] }
  0x73   : > { %1411 = vmatpush1.bf16.msra.mxu0 %v6175_v8  ;;  %v339_v8 = vld [vmem:[%s6410_s10 + $0x111] sm:$0xff] }
  0x74   : > { %1412 = vmatprep.subr.bf16.mxu0 %v6342_v1 }
  0x76   : > { %1292 = vmatmul.mubr.bf16.gmra.mrb[24].mxu0 %v293_v10  ;;  %v303_v10 = vpack.c.bf16 %v284_v7, %v283_v6  ;;  %v385_v7 = vld [vmem:[%s6410_s10 + $0xd2] sm:$0xff] }
  0x77   : > { %1299 = vmatprep.mubr.bf16.mxu0 %v348_v11  ;;  %1413 = vmatpush1.bf16.msra.mxu0 %v6176_v9  ;;  %v340_v9 = vld [vmem:[%s6410_s10 + $0x119] sm:$0xff] }
  0x78   : > { %1414 = vmatprep.subr.bf16.mxu0 %v6342_v1  ;;  %v358_v11 = vpack.c.bf16 %v340_v9, %v339_v8  ;;  %v386_v8 = vld [vmem:[%s6410_s10 + $0xda] sm:$0xff] }
  0x79   : > { %v408_v9 = vpack.c.bf16 %v386_v8, %v385_v7 }
  0x7b   : > { %1415 = vmatpush1.bf16.msra.mxu0 %v6177_v16  ;;  %v304_v16 = vpack.c.bf16 %v286_v13, %v285_v12  ;;  %v389_v13 = vld [vmem:[%s6410_s10 + $0xf2] sm:$0xff] }
  0x7c   : > { %1416 = vmatprep.subr.bf16.mxu0 %v6342_v1 }
  0x7e   : > { %1300 = vmatmul.mubr.bf16.gmra.mrb[28].mxu0 %v294_v18  ;;  %v359_v18 = vld [vmem:[%s6410_s10 + $0x2] sm:$0xff] }
  0x7f   : > { %1307 = vmatprep.mubr.bf16.mxu0 %v349_v19  ;;  %1417 = vmatpush1.bf16.msra.mxu0 %v6178_v17  ;;  %v396_v17 = vpack.c.bf16 %v362_v15, %v361_v14  ;;  %v360_v19 = vld [vmem:[%s6410_s10 + $0xa] sm:$0xff]  ;;  %v390_v14 = vld [vmem:[%s6410_s10 + $0xfa] sm:$0xff] }
  0x80   : > { %1418 = vmatprep.subr.bf16.mxu0 %v6342_v1  ;;  %v395_v22 = vpack.c.bf16 %v360_v19, %v359_v18  ;;  %v410_v15 = vpack.c.bf16 %v390_v14, %v389_v13  ;;  %v393_v19 = vld [vmem:[%s6410_s10 + $0x112] sm:$0xff] }
  0x81   : > { %v586_v13 = vld [vmem:[%s6410_s10 + $0x4e] sm:$0xff]  ;;  %v6203_v14 = vld [vmem:[%s8008_s1 + $0x1b8] sm:$0xff]  }
  0x83   : > { %1419 = vmatpush1.bf16.msra.mxu0 %v6179_v24  ;;  %v397_v24 = vpack.c.bf16 %v364_v21, %v363_v20  ;;  %v394_v20 = vld [vmem:[%s6410_s10 + $0x11a] sm:$0xff] }
  0x84   : > { %1565 = vmatprep.subr.bf16.mxu0 %v6342_v1  ;;  %v412_v21 = vpack.c.bf16 %v394_v20, %v393_v19  ;;  %v481_v19 = vld [vmem:[%s6410_s10 + $0x6c] sm:$0xff] }
  0x86   : > { %1308 = vmatmul.mubr.bf16.gmra.mrb[32].mxu0 %v295_v25  ;;  %v6181_v25 = vld [vmem:[%s8008_s1 + $0x108] sm:$0xff]  }
  0x87   : > { %1315 = vmatprep.mubr.bf16.mxu0 %v350_v26  ;;  %v365_v26 = vld [vmem:[%s6410_s10 + $0x32] sm:$0xff] }
  0x88   : > { %v398_v28 = vpack.c.bf16 %v366_v27, %v365_v26  ;;  %v6210_v26 = vld [vmem:[%s8008_s1 + $0x208] sm:$0xff]   ;;  %v6212_v27 = vld [vmem:[%s8008_s1 + $0x210] sm:$0xff]  }
  0x8e   : > { %1316 = vmatmul.mubr.bf16.gmra.mrb[36].mxu0 %v296_v31  ;;  %v367_v31 = vld [vmem:[%s6410_s10 + $0x42] sm:$0xff] }
  0x8f   : > { %1323 = vmatprep.mubr.bf16.mxu0 %v351_v32  ;;  %v368_v32 = vld [vmem:[%s6410_s10 + $0x4a] sm:$0xff] }
  0x90   : > { %v399_v33 = vpack.c.bf16 %v368_v32, %v367_v31  ;;  %v6213_v31 = vld [vmem:[%s8008_s1 + $0x218] sm:$0xff]  }
  0x91   : > { %v416_v32 = vld [vmem:[%s6410_s10 + $0x13] sm:$0xff] }
  0x96   : > { %1324 = vmatmul.mubr.bf16.gmra.mrb[40].mxu0 %v297_v37  ;;  %v370_v37 = vld [vmem:[%s6410_s10 + $0x5a] sm:$0xff] }
  0x97   : > { %1331 = vmatprep.mubr.bf16.mxu0 %v352_v38  ;;  %v400_v38 = vpack.c.bf16 %v370_v37, %v369_v36  ;;  %v473_v36 = vld [vmem:[%s6410_s10 + $0x2c] sm:$0xff] }
  0x9e   : > { %1332 = vmatmul.mubr.bf16.gmra.mrb[44].mxu0 %v298_v43  ;;  %v401_v43 = vpack.c.bf16 %v372_v42, %v371_v41  ;;  %v6216_v41 = vld [vmem:[%s8008_s1 + $0x228] sm:$0xff]  }
  0x9f   : > { %1339 = vmatprep.mubr.bf16.mxu0 %v353_v44  ;;  %v6188_v44 = vld [vmem:[%s8008_s1 + $0x140] sm:$0xff]   ;;  %v419_v42 = vld [vmem:[%s6410_s10 + $0x2b] sm:$0xff] }
  0xa6   : > { %1340 = vmatmul.mubr.bf16.gmra.mrb[48].mxu0 %v299_v49  ;;  %v6190_v49 = vld [vmem:[%s8008_s1 + $0x150] sm:$0xff]  }
  0xa7   : > { %1347 = vmatprep.mubr.bf16.mxu0 %v354_v50  ;;  %v6191_v50 = vld [vmem:[%s8008_s1 + $0x158] sm:$0xff]  }
  0xae   : > { %1348 = vmatmul.mubr.bf16.gmra.mrb[52].mxu0 %v300_v55  ;;  %v6193_v55 = vld [vmem:[%s8008_s1 + $0x168] sm:$0xff]  }
  0xaf   : > { %1355 = vmatprep.mubr.bf16.mxu0 %v355_v56  ;;  %v377_v56 = vld [vmem:[%s6410_s10 + $0x92] sm:$0xff] }
  0xb0   : > { %v404_v58 = vpack.c.bf16 %v378_v57, %v377_v56  ;;  %v582_v56 = vld [vmem:[%s6410_s10 + $0x2e] sm:$0xff] }
  0xb1   : > { %v477_v57 = vld [vmem:[%s6410_s10 + $0x4c] sm:$0xff] }
  0xb6   : > { %1356 = vmatmul.mubr.bf16.gmra.mrb[56].mxu0 %v301_v61  ;;  %v379_v61 = vld [vmem:[%s6410_s10 + $0xa2] sm:$0xff] }
  0xb7   : > { %1363 = vmatprep.mubr.bf16.mxu0 %v356_v62  ;;  %v380_v62 = vld [vmem:[%s6410_s10 + $0xaa] sm:$0xff] }
  0xb8   : > { %v405_v63 = vpack.c.bf16 %v380_v62, %v379_v61 }
  0xbe   : > { %1364 = vmatmul.mubr.bf16.gmra.mrb[60].mxu0 %v302_v4  ;;  %v383_v4 = vld [vmem:[%s6410_s10 + $0xc2] sm:$0xff] }
  0xbf   : > { %1371 = vmatprep.mubr.bf16.mxu0 %v357_v5  ;;  %v384_v5 = vld [vmem:[%s6410_s10 + $0xca] sm:$0xff] }
  0xc0   : > { %v407_v6 = vpack.c.bf16 %v384_v5, %v383_v4  ;;  %v6201_v4 = vld [vmem:[%s8008_s1 + $0x1a8] sm:$0xff]   ;;  %v478_v5 = vld [vmem:[%s6410_s10 + $0x54] sm:$0xff] }
  0xc6   : > { %1372 = vmatmul.mubr.bf16.gmra.mrb[64].mxu0 %v303_v10  ;;  %v387_v10 = vld [vmem:[%s6410_s10 + $0xe2] sm:$0xff] }
  0xc7   : > { %1379 = vmatprep.mubr.bf16.mxu0 %v358_v11  ;;  %v388_v11 = vld [vmem:[%s6410_s10 + $0xea] sm:$0xff] }
  0xc8   : > { %v409_v12 = vpack.c.bf16 %v388_v11, %v387_v10  ;;  %v424_v10 = vld [vmem:[%s6410_s10 + $0x53] sm:$0xff]  ;;  %v425_v11 = vld [vmem:[%s6410_s10 + $0x5b] sm:$0xff] }
  0xce   : > { %1380 = vmatmul.mubr.bf16.gmra.mrb[68].mxu0 %v304_v16  ;;  %v391_v16 = vld [vmem:[%s6410_s10 + $0x102] sm:$0xff] }
  0xcf   : > { %1420 = vmatprep.mubr.bf16.mxu0 %v396_v17 }
  0xd6   : > { %1421 = vmatmul.mubr.bf16.vlgmr.msra.gmra.mrb[0].mxu0 %v395_v22  ;;  %v6209_v22 = vld [vmem:[%s8008_s1 + $0x200] sm:$0xff]  }
  0xd7   : > { %1566 = vmatpush1.bf16.msra.mxu0 %v6180_v23  ;;  %1428 = vmatprep.mubr.bf16.mxu0 %v397_v24  ;;  %v413_v23 = vld [vmem:[%s6410_s10 + $0x122] sm:$0xff] }
  0xd8   : > { %1567 = vmatprep.subr.bf16.mxu0 %v6342_v1  ;;  %5668 = vmatprep.subr.bf16.mxu1 %v6209_v22 }
  0xd9   : > { %5669 = vmatpush3.bf16.msra.mxu1 %v6209_v22 }
  0xda   : > { %5670 = vmatprep.subr.bf16.mxu1 %v6210_v26 }
  0xdb   : > { %1568 = vmatpush1.bf16.msra.mxu0 %v6181_v25 }
  0xdc   : > { %1569 = vmatprep.subr.bf16.mxu0 %v6342_v1 }
  0xdd   : > { %5671 = vmatpush3.bf16.msra.mxu1 %v6210_v26  ;;  %v6205_v26 = vld [vmem:[%s8008_s1 + $0x1c8] sm:$0xff]  }
  0xde   : > { %1429 = vmatmul.mubr.bf16.gmra.mrb[4].mxu0 %v396_v17  ;;  %v392_v17 = vld [vmem:[%s6410_s10 + $0x10a] sm:$0xff]  ;;  %5672 = vmatprep.subr.bf16.mxu1 %v6212_v27 }
  0xdf   : > { %1436 = vmatprep.mubr.bf16.mxu0 %v398_v28  ;;  %1570 = vmatpush1.bf16.msra.mxu0 %v6182_v29  ;;  %v411_v18 = vpack.c.bf16 %v392_v17, %v391_v16  ;;  %v471_v29 = vld [vmem:[%s6410_s10 + $0x1c] sm:$0xff] }
  0xe0   : > { %1571 = vmatprep.subr.bf16.mxu0 %v6342_v1  ;;  %v587_v16 = vld [vmem:[%s6410_s10 + $0x56] sm:$0xff]  ;;  %v588_v17 = vld [vmem:[%s6410_s10 + $0x5e] sm:$0xff] }
  0xe1   : > { %5673 = vmatpush3.bf16.msra.mxu1 %v6212_v27  ;;  %v620_v20 = vpack.c.bf16 %v588_v17, %v587_v16  ;;  %v482_v27 = vld [vmem:[%s6410_s10 + $0x74] sm:$0xff] }
  0xe2   : > { %5674 = vmatprep.subr.bf16.mxu1 %v6213_v31  ;;  %v437_v16 = vld [vmem:[%s6410_s10 + $0xbb] sm:$0xff] }
  0xe3   : > { %1572 = vmatpush1.bf16.msra.mxu0 %v6183_v30 }
  0xe4   : > { %1573 = vmatprep.subr.bf16.mxu0 %v6342_v1 }
  0xe5   : > { %5675 = vmatpush3.bf16.msra.mxu1 %v6213_v31  ;;  %v6206_v31 = vld [vmem:[%s8008_s1 + $0x1d0] sm:$0xff]  }
  0xe6   : > { %1437 = vmatmul.mubr.bf16.gmra.mrb[8].mxu0 %v397_v24  ;;  %v414_v24 = vld [vmem:[%s6410_s10 + $0x12a] sm:$0xff] }
  0xe7   : > { %1444 = vmatprep.mubr.bf16.mxu0 %v399_v33  ;;  %1574 = vmatpush1.bf16.msra.mxu0 %v6184_v34  ;;  %v415_v25 = vpack.c.bf16 %v414_v24, %v413_v23  ;;  %v6215_v34 = vld [vmem:[%s8008_s1 + $0x220] sm:$0xff]  }
  0xe8   : > { %1575 = vmatprep.subr.bf16.mxu0 %v6342_v1  ;;  %5676 = vmatprep.subr.bf16.mxu1 %v6215_v34  ;;  %v6204_v23 = vld [vmem:[%s8008_s1 + $0x1c0] sm:$0xff]  }
  0xe9   : > { %5677 = vmatpush3.bf16.msra.mxu1 %v6215_v34  ;;  %v426_v24 = vld [vmem:[%s6410_s10 + $0x63] sm:$0xff] }
  0xea   : > { %5678 = vmatprep.subr.bf16.mxu1 %v6216_v41  ;;  %v589_v34 = vld [vmem:[%s6410_s10 + $0x66] sm:$0xff] }
  0xeb   : > { %1576 = vmatpush1.bf16.msra.mxu0 %v6185_v35  ;;  %v472_v35 = vld [vmem:[%s6410_s10 + $0x24] sm:$0xff] }
  0xec   : > { %1577 = vmatprep.subr.bf16.mxu0 %v6342_v1 }
  0xed   : > { %5679 = vmatpush3.bf16.msra.mxu1 %v6216_v41  ;;  %v484_v41 = vld [vmem:[%s6410_s10 + $0x84] sm:$0xff] }
  0xee   : > { %1445 = vmatmul.mubr.bf16.gmra.mrb[12].mxu0 %v398_v28  ;;  %v470_v28 = vld [vmem:[%s6410_s10 + $0x14] sm:$0xff] }
  0xef   : > { %1452 = vmatprep.mubr.bf16.mxu0 %v400_v38  ;;  %1578 = vmatpush1.bf16.msra.mxu0 %v6186_v39  ;;  %v506_v30 = vpack.c.bf16 %v471_v29, %v470_v28  ;;  %v6723_v39 = vpack.c.bf16 %v473_v36, %v472_v35  ;;  %v483_v28 = vld [vmem:[%s6410_s10 + $0x7c] sm:$0xff]  ;;  %v590_v35 = vld [vmem:[%s6410_s10 + $0x6e] sm:$0xff] }
  0xf0   : > { %1579 = vmatprep.subr.bf16.mxu0 %v6342_v1  ;;  %v6207_v36 = vld [vmem:[%s8008_s1 + $0x1d8] sm:$0xff]  }
  0xf3   : > { %1580 = vmatpush1.bf16.msra.mxu0 %v6187_v40  ;;  %v418_v40 = vld [vmem:[%s6410_s10 + $0x23] sm:$0xff] }
  0xf4   : > { %1581 = vmatprep.subr.bf16.mxu0 %v6342_v1  ;;  %v453_v47 = vpack.c.bf16 %v419_v42, %v418_v40  ;;  %v592_v40 = vld [vmem:[%s6410_s10 + $0x7e] sm:$0xff]  ;;  %v485_v42 = vld [vmem:[%s6410_s10 + $0x8c] sm:$0xff] }
  0xf6   : > { %1453 = vmatmul.mubr.bf16.gmra.mrb[16].mxu0 %v399_v33  ;;  %v417_v33 = vld [vmem:[%s6410_s10 + $0x1b] sm:$0xff] }
  0xf7   : > { %1460 = vmatprep.mubr.bf16.mxu0 %v401_v43  ;;  %1582 = vmatpush1.bf16.msra.mxu0 %v6188_v44  ;;  %v452_v37 = vpack.c.bf16 %v417_v33, %v416_v32  ;;  %v6217_v44 = vld [vmem:[%s8008_s1 + $0x230] sm:$0xff]   ;;  %v429_v33 = vld [vmem:[%s6410_s10 + $0x7b] sm:$0xff] }
  0xf8   : > { %1583 = vmatprep.subr.bf16.mxu0 %v6342_v1  ;;  %5680 = vmatprep.subr.bf16.mxu1 %v6217_v44  ;;  %v428_v32 = vld [vmem:[%s6410_s10 + $0x73] sm:$0xff] }
  0xf9   : > { %5681 = vmatpush3.bf16.msra.mxu1 %v6217_v44  ;;  %v458_v44 = vpack.c.bf16 %v429_v33, %v428_v32  ;;  %v440_v33 = vld [vmem:[%s6410_s10 + $0xd3] sm:$0xff] }
  0xfa   : > { %5682 = vmatprep.subr.bf16.mxu1 %v6219_v52 }
  0xfb   : > { %1584 = vmatpush1.bf16.msra.mxu0 %v6189_v45  ;;  %v474_v45 = vld [vmem:[%s6410_s10 + $0x34] sm:$0xff] }
  0xfc   : > { %1585 = vmatprep.subr.bf16.mxu0 %v6342_v1 }
  0xfd   : > { %5683 = vmatpush3.bf16.msra.mxu1 %v6219_v52  ;;  %v487_v52 = vld [vmem:[%s6410_s10 + $0x9c] sm:$0xff] }
  0xfe   : > { %1461 = vmatmul.mubr.bf16.gmra.mrb[20].mxu0 %v400_v38  ;;  %v6196_v38 = vld [vmem:[%s8008_s1 + $0x180] sm:$0xff]  }
  0xff   : > { %1468 = vmatprep.mubr.bf16.mxu0 %v402_v48  ;;  %1586 = vmatpush1.bf16.msra.mxu0 %v6190_v49  ;;  %v6198_v49 = vld [vmem:[%s8008_s1 + $0x190] sm:$0xff]  }
 0x100   : > { %1587 = vmatprep.subr.bf16.mxu0 %v6342_v1 }
 0x103   : > { %1588 = vmatpush1.bf16.msra.mxu0 %v6191_v50  ;;  %v420_v50 = vld [vmem:[%s6410_s10 + $0x33] sm:$0xff] }
 0x104   : > { %1589 = vmatprep.subr.bf16.mxu0 %v6342_v1  ;;  %v454_v62 = vpack.c.bf16 %v421_v51, %v420_v50  ;;  %v6211_v50 = vld [vmem:[%s8008_s1 + $0x1e8] sm:$0xff]   ;;  %v486_v51 = vld [vmem:[%s6410_s10 + $0x94] sm:$0xff] }
 0x106   : > { %1469 = vmatmul.mubr.bf16.gmra.mrb[24].mxu0 %v401_v43  ;;  %v6197_v43 = vld [vmem:[%s8008_s1 + $0x188] sm:$0xff]  }
 0x107   : > { %1476 = vmatprep.mubr.bf16.mxu0 %v403_v53  ;;  %1590 = vmatpush1.bf16.msra.mxu0 %v6192_v54  ;;  %v476_v54 = vld [vmem:[%s6410_s10 + $0x44] sm:$0xff] }
 0x108   : > { %1591 = vmatprep.subr.bf16.mxu0 %v6342_v1 }
 0x10b   : > { %1592 = vmatpush1.bf16.msra.mxu0 %v6193_v55  ;;  %v6199_v55 = vld [vmem:[%s8008_s1 + $0x198] sm:$0xff]  }
 0x10c   : > { %1593 = vmatprep.subr.bf16.mxu0 %v6342_v1 }
 0x10e   : > { %1477 = vmatmul.mubr.bf16.gmra.mrb[28].mxu0 %v402_v48  ;;  %v6740_v48 = vpack.c.bf16 %v475_v46, %v474_v45  ;;  %v6830_v45 = vpack.c.bf16 %v485_v42, %v484_v41  ;;  %v6208_v46 = vld [vmem:[%s8008_s1 + $0x1e0] sm:$0xff]   ;;  %v497_v42 = vld [vmem:[%s6410_s10 + $0xec] sm:$0xff] }
 0x10f   : > { %1484 = vmatprep.mubr.bf16.mxu0 %v404_v58  ;;  %1594 = vmatpush1.bf16.msra.mxu0 %v6194_v59  ;;  %v583_v59 = vld [vmem:[%s6410_s10 + $0x36] sm:$0xff]  ;;  %v496_v41 = vld [vmem:[%s6410_s10 + $0xe4] sm:$0xff] }
 0x110   : > { %1595 = vmatprep.subr.bf16.mxu0 %v6342_v1 }
 0x113   : > { %1596 = vmatpush1.bf16.msra.mxu0 %v6195_v60  ;;  %v584_v60 = vld [vmem:[%s6410_s10 + $0x3e] sm:$0xff] }
 0x114   : > { %1742 = vmatprep.subr.bf16.mxu0 %v6342_v1  ;;  %v618_v61 = vpack.c.bf16 %v584_v60, %v583_v59  ;;  %v594_v59 = vld [vmem:[%s6410_s10 + $0x8e] sm:$0xff]  ;;  %v6218_v60 = vld [vmem:[%s8008_s1 + $0x1f8] sm:$0xff]  }
 0x116   : > { %1485 = vmatmul.mubr.bf16.gmra.mrb[32].mxu0 %v403_v53  ;;  %v581_v53 = vld [vmem:[%s6410_s10 + $0x26] sm:$0xff] }
 0x117   : > { %1492 = vmatprep.mubr.bf16.mxu0 %v405_v63 }
 0x11e   : > { %1493 = vmatmul.mubr.bf16.gmra.mrb[36].mxu0 %v404_v58  ;;  %v617_v58 = vpack.c.bf16 %v582_v56, %v581_v53  ;;  %v432_v56 = vld [vmem:[%s6410_s10 + $0x93] sm:$0xff] }
 0x11f   : > { %1500 = vmatprep.mubr.bf16.mxu0 %v406_v3 }
 0x120   : > { %5684 = vmatprep.mubr.bf16.mxu1 %v617_v58  ;;  %v593_v58 = vld [vmem:[%s6410_s10 + $0x86] sm:$0xff] }
 0x121   : > { %5685 = vmatmul.mubr.bf16.vlgmr.msra.gmra.mrb[0].mxu1 %v618_v61  ;;  %v623_v61 = vpack.c.bf16 %v594_v59, %v593_v58  ;;  %v445_v58 = vld [vmem:[%s6410_s10 + $0xfb] sm:$0xff] }
 0x126   : > { %1501 = vmatmul.mubr.bf16.gmra.mrb[40].mxu0 %v405_v63  ;;  %v6762_v63 = vpack.c.bf16 %v477_v57, %v476_v54  ;;  %v6845_v54 = vpack.c.bf16 %v487_v52, %v486_v51  ;;  %v433_v57 = vld [vmem:[%s6410_s10 + $0x9b] sm:$0xff] }
 0x127   : > { %1508 = vmatprep.mubr.bf16.mxu0 %v407_v6  ;;  %v499_v51 = vld [vmem:[%s6410_s10 + $0xfc] sm:$0xff] }
 0x12e   : > { %1509 = vmatmul.mubr.bf16.gmra.mrb[44].mxu0 %v406_v3  ;;  %v423_v3 = vld [vmem:[%s6410_s10 + $0x4b] sm:$0xff] }
 0x12f   : > { %1516 = vmatprep.mubr.bf16.mxu0 %v408_v9  ;;  %v455_v7 = vpack.c.bf16 %v423_v3, %v422_v2  ;;  %v488_v2 = vld [vmem:[%s6410_s10 + $0xa4] sm:$0xff]  ;;  %v489_v3 = vld [vmem:[%s6410_s10 + $0xac] sm:$0xff] }
 0x136   : > { %1517 = vmatmul.mubr.bf16.gmra.mrb[48].mxu0 %v407_v6  ;;  %v479_v6 = vld [vmem:[%s6410_s10 + $0x5c] sm:$0xff] }
 0x137   : > { %1524 = vmatprep.mubr.bf16.mxu0 %v409_v12  ;;  %v6777_v8 = vpack.c.bf16 %v479_v6, %v478_v5  ;;  %v460_v5 = vpack.c.bf16 %v433_v57, %v432_v56  ;;  %v6864_v6 = vpack.c.bf16 %v489_v3, %v488_v2  ;;  %v605_v56 = vld [vmem:[%s6410_s10 + $0xe6] sm:$0xff]  ;;  %v606_v57 = vld [vmem:[%s6410_s10 + $0xee] sm:$0xff] }
 0x138   : > { %v629_v59 = vpack.c.bf16 %v606_v57, %v605_v56  ;;  %v534_v56 = vld [vmem:[%s6410_s10 + $0x5d] sm:$0xff]  ;;  %v535_v57 = vld [vmem:[%s6410_s10 + $0x65] sm:$0xff] }
 0x13e   : > { %1525 = vmatmul.mubr.bf16.gmra.mrb[52].mxu0 %v408_v9  ;;  %v6202_v9 = vld [vmem:[%s8008_s1 + $0x1b0] sm:$0xff]  }
 0x13f   : > { %1532 = vmatprep.mubr.bf16.mxu0 %v410_v15 }
 0x146   : > { %1533 = vmatmul.mubr.bf16.gmra.mrb[56].mxu0 %v409_v12  ;;  %v585_v12 = vld [vmem:[%s6410_s10 + $0x46] sm:$0xff] }
 0x147   : > { %1540 = vmatprep.mubr.bf16.mxu0 %v411_v18 }
 0x14e   : > { %1541 = vmatmul.mubr.bf16.gmra.mrb[60].mxu0 %v410_v15  ;;  %v619_v15 = vpack.c.bf16 %v586_v13, %v585_v12  ;;  %v436_v13 = vld [vmem:[%s6410_s10 + $0xb3] sm:$0xff] }
 0x14f   : > { %1548 = vmatprep.mubr.bf16.mxu0 %v412_v21 }
 0x150   : > { %5688 = vmatprep.mubr.bf16.mxu1 %v619_v15  ;;  %v598_v15 = vld [vmem:[%s6410_s10 + $0xae] sm:$0xff] }
 0x151   : > { %5689 = vmatmul.mubr.bf16.gmra.mrb[4].mxu1 %v620_v20  ;;  %v492_v20 = vld [vmem:[%s6410_s10 + $0xc4] sm:$0xff] }
 0x156   : > { %1549 = vmatmul.mubr.bf16.gmra.mrb[64].mxu0 %v411_v18  ;;  %v480_v18 = vld [vmem:[%s6410_s10 + $0x64] sm:$0xff] }
 0x157   : > { %1556 = vmatprep.mubr.bf16.mxu0 %v415_v25  ;;  %v6796_v22 = vpack.c.bf16 %v481_v19, %v480_v18  ;;  %v427_v25 = vld [vmem:[%s6410_s10 + $0x6b] sm:$0xff]  ;;  %v599_v18 = vld [vmem:[%s6410_s10 + $0xb6] sm:$0xff]  ;;  %v600_v19 = vld [vmem:[%s6410_s10 + $0xbe] sm:$0xff] }
 0x158   : > { %v457_v29 = vpack.c.bf16 %v427_v25, %v426_v24  ;;  %v462_v24 = vpack.c.bf16 %v437_v16, %v436_v13  ;;  %v448_v13 = vld [vmem:[%s6410_s10 + $0x113] sm:$0xff]  ;;  %v449_v16 = vld [vmem:[%s6410_s10 + $0x11b] sm:$0xff] }
 0x15e   : > { %1557 = vmatmul.mubr.bf16.gmra.mrb[68].mxu0 %v412_v21  ;;  %v456_v21 = vpack.c.bf16 %v425_v11, %v424_v10  ;;  %v491_v10 = vld [vmem:[%s6410_s10 + $0xbc] sm:$0xff] }
 0x15f   : > { %1597 = vmatprep.mubr.bf16.mxu0 %v506_v30  ;;  %v6811_v30 = vpack.c.bf16 %v483_v28, %v482_v27  ;;  %v439_v27 = vld [vmem:[%s6410_s10 + $0xcb] sm:$0xff]  ;;  %v494_v28 = vld [vmem:[%s6410_s10 + $0xd4] sm:$0xff] }
 0x166   : > { %1598 = vmatmul.mubr.bf16.vlgmr.msra.gmra.mrb[0].mxu0 %v452_v37  ;;  %v621_v37 = vpack.c.bf16 %v590_v35, %v589_v34  ;;  %v601_v34 = vld [vmem:[%s6410_s10 + $0xc6] sm:$0xff]  ;;  %v602_v35 = vld [vmem:[%s6410_s10 + $0xce] sm:$0xff] }
 0x167   : > { %1743 = vmatpush1.bf16.msra.mxu0 %v6196_v38  ;;  %1605 = vmatprep.mubr.bf16.mxu0 %v6723_v39  ;;  %v591_v38 = vld [vmem:[%s6410_s10 + $0x76] sm:$0xff] }
 0x168   : > { %1744 = vmatprep.subr.bf16.mxu0 %v6342_v1  ;;  %5692 = vmatprep.mubr.bf16.mxu1 %v621_v37  ;;  %v627_v37 = vpack.c.bf16 %v602_v35, %v601_v34  ;;  %v613_v35 = vld [vmem:[%s6410_s10 + $0x126] sm:$0xff] }
 0x16b   : > { %1745 = vmatpush1.bf16.msra.mxu0 %v6197_v43  ;;  %v622_v43 = vpack.c.bf16 %v592_v40, %v591_v38  ;;  %v603_v38 = vld [vmem:[%s6410_s10 + $0xd6] sm:$0xff]  ;;  %v604_v40 = vld [vmem:[%s6410_s10 + $0xde] sm:$0xff] }
 0x16c   : > { %1746 = vmatprep.subr.bf16.mxu0 %v6342_v1 }
 0x16d   : > { %5693 = vmatmul.mubr.bf16.gmra.mrb[8].mxu1 %v622_v43  ;;  %v628_v43 = vpack.c.bf16 %v604_v40, %v603_v38  ;;  %v615_v38 = vld [vmem:[%s6410_s10 + $0x136] sm:$0xff]  ;;  %v616_v40 = vld [vmem:[%s6410_s10 + $0x13e] sm:$0xff] }
 0x16e   : > { %1606 = vmatmul.mubr.bf16.gmra.mrb[4].mxu0 %v453_v47  ;;  %v430_v47 = vld [vmem:[%s6410_s10 + $0x83] sm:$0xff]  ;;  %5696 = vmatprep.mubr.bf16.mxu1 %v623_v61 }
 0x16f   : > { %1613 = vmatprep.mubr.bf16.mxu0 %v6740_v48  ;;  %1747 = vmatpush1.bf16.msra.mxu0 %v6198_v49  ;;  %v431_v49 = vld [vmem:[%s6410_s10 + $0x8b] sm:$0xff]  ;;  %v608_v61 = vld [vmem:[%s6410_s10 + $0xfe] sm:$0xff] }
 0x170   : > { %1748 = vmatprep.subr.bf16.mxu0 %v6342_v1  ;;  %v459_v53 = vpack.c.bf16 %v431_v49, %v430_v47  ;;  %v442_v47 = vld [vmem:[%s6410_s10 + $0xe3] sm:$0xff]  ;;  %v443_v49 = vld [vmem:[%s6410_s10 + $0xeb] sm:$0xff] }
 0x171   : > { %v465_v52 = vpack.c.bf16 %v443_v49, %v442_v47  ;;  %v531_v47 = vld [vmem:[%s6410_s10 + $0x45] sm:$0xff]  ;;  %v532_v49 = vld [vmem:[%s6410_s10 + $0x4d] sm:$0xff] }
 0x173   : > { %1749 = vmatpush1.bf16.msra.mxu0 %v6199_v55  ;;  %v6214_v55 = vld [vmem:[%s8008_s1 + $0x1f0] sm:$0xff]  }
 0x174   : > { %1750 = vmatprep.subr.bf16.mxu0 %v6342_v1 }
 0x176   : > { %1614 = vmatmul.mubr.bf16.gmra.mrb[8].mxu0 %v454_v62  ;;  %v595_v62 = vld [vmem:[%s6410_s10 + $0x96] sm:$0xff] }
 0x177   : > { %1621 = vmatprep.mubr.bf16.mxu0 %v6762_v63  ;;  %1751 = vmatpush1.bf16.msra.mxu0 %v6200_v0  ;;  %v596_v0 = vld [vmem:[%s6410_s10 + $0x9e] sm:$0xff] }
 0x178   : > { %1752 = vmatprep.subr.bf16.mxu0 %v6342_v1 }
 0x17b   : > { %1753 = vmatpush1.bf16.msra.mxu0 %v6201_v4  ;;  %v624_v4 = vpack.c.bf16 %v596_v0, %v595_v62  ;;  %v500_v62 = vld [vmem:[%s6410_s10 + $0x104] sm:$0xff]  ;;  %v501_v0 = vld [vmem:[%s6410_s10 + $0x10c] sm:$0xff] }
 0x17c   : > { %1754 = vmatprep.subr.bf16.mxu0 %v6342_v1 }
 0x17d   : > { %5697 = vmatmul.mubr.bf16.gmra.mrb[12].mxu1 %v624_v4  ;;  %v6918_v4 = vpack.c.bf16 %v501_v0, %v500_v62  ;;  %v540_v0 = vld [vmem:[%s6410_s10 + $0x8d] sm:$0xff] }
 0x17e   : > { %1622 = vmatmul.mubr.bf16.gmra.mrb[12].mxu0 %v455_v7  ;;  %v434_v7 = vld [vmem:[%s6410_s10 + $0xa3] sm:$0xff] }
 0x17f   : > { %1629 = vmatprep.mubr.bf16.mxu0 %v6777_v8  ;;  %1755 = vmatpush1.bf16.msra.mxu0 %v6202_v9  ;;  %v490_v9 = vld [vmem:[%s6410_s10 + $0xb4] sm:$0xff] }
 0x180   : > { %1756 = vmatprep.subr.bf16.mxu0 %v6342_v1  ;;  %v6871_v12 = vpack.c.bf16 %v491_v10, %v490_v9  ;;  %v503_v9 = vld [vmem:[%s6410_s10 + $0x11c] sm:$0xff] }
 0x183   : > { %1757 = vmatpush1.bf16.msra.mxu0 %v6203_v14  ;;  %v597_v14 = vld [vmem:[%s6410_s10 + $0xa6] sm:$0xff] }
 0x184   : > { %1758 = vmatprep.subr.bf16.mxu0 %v6342_v1  ;;  %v625_v17 = vpack.c.bf16 %v598_v15, %v597_v14  ;;  %v609_v14 = vld [vmem:[%s6410_s10 + $0x106] sm:$0xff]  ;;  %v610_v15 = vld [vmem:[%s6410_s10 + $0x10e] sm:$0xff] }
 0x186   : > { %1630 = vmatmul.mubr.bf16.gmra.mrb[16].mxu0 %v456_v21  ;;  %v493_v21 = vld [vmem:[%s6410_s10 + $0xcc] sm:$0xff]  ;;  %5700 = vmatprep.mubr.bf16.mxu1 %v625_v17  ;;  %v631_v17 = vpack.c.bf16 %v610_v15, %v609_v14  ;;  %v549_v15 = vld [vmem:[%s6410_s10 + $0xd5] sm:$0xff] }
 0x187   : > { %1637 = vmatprep.mubr.bf16.mxu0 %v6796_v22  ;;  %1759 = vmatpush1.bf16.msra.mxu0 %v6204_v23  ;;  %v626_v23 = vpack.c.bf16 %v600_v19, %v599_v18  ;;  %v6882_v25 = vpack.c.bf16 %v493_v21, %v492_v20  ;;  %v611_v18 = vld [vmem:[%s6410_s10 + $0x116] sm:$0xff]  ;;  %v612_v19 = vld [vmem:[%s6410_s10 + $0x11e] sm:$0xff]  ;;  %v505_v21 = vld [vmem:[%s6410_s10 + $0x12c] sm:$0xff] }
 0x188   : > { %1760 = vmatprep.subr.bf16.mxu0 %v6342_v1  ;;  %v504_v20 = vld [vmem:[%s6410_s10 + $0x124] sm:$0xff]  ;;  %v548_v14 = vld [vmem:[%s6410_s10 + $0xcd] sm:$0xff] }
 0x189   : > { %5701 = vmatmul.mubr.bf16.gmra.mrb[16].mxu1 %v626_v23  ;;  %v632_v23 = vpack.c.bf16 %v612_v19, %v611_v18  ;;  %v551_v18 = vld [vmem:[%s6410_s10 + $0xe5] sm:$0xff]  ;;  %v552_v19 = vld [vmem:[%s6410_s10 + $0xed] sm:$0xff] }
 0x18a   : > { %5704 = vmatprep.mubr.bf16.mxu1 %v627_v37 }
 0x18b   : > { %1761 = vmatpush1.bf16.msra.mxu0 %v6205_v26  ;;  %v438_v26 = vld [vmem:[%s6410_s10 + $0xc3] sm:$0xff] }
 0x18c   : > { %1762 = vmatprep.subr.bf16.mxu0 %v6342_v1 }
 0x18e   : > { %1638 = vmatmul.mubr.bf16.gmra.mrb[20].mxu0 %v457_v29  ;;  %v495_v29 = vld [vmem:[%s6410_s10 + $0xdc] sm:$0xff] }
 0x18f   : > { %1645 = vmatprep.mubr.bf16.mxu0 %v6811_v30  ;;  %1763 = vmatpush1.bf16.msra.mxu0 %v6206_v31  ;;  %v463_v31 = vpack.c.bf16 %v439_v27, %v438_v26  ;;  %v6889_v32 = vpack.c.bf16 %v495_v29, %v494_v28  ;;  %v6936_v26 = vpack.c.bf16 %v505_v21, %v504_v20  ;;  %v450_v27 = vld [vmem:[%s6410_s10 + $0x123] sm:$0xff]  ;;  %v451_v28 = vld [vmem:[%s6410_s10 + $0x12b] sm:$0xff] }
 0x190   : > { %1764 = vmatprep.subr.bf16.mxu0 %v6342_v1  ;;  %v527_v29 = vld [vmem:[%s6410_s10 + $0x25] sm:$0xff]  ;;  %v575_v21 = vpack.c.bf16 %v552_v19, %v551_v18  ;;  %v7103_v19 = vld [vmem:[%s8012_s5] ss:$0 sm:$0xff] }
 0x191   : > { %5705 = vmatmul.mubr.bf16.gmra.mrb[20].mxu1 %v628_v43  ;;  %v634_v43 = vpack.c.bf16 %v616_v40, %v615_v38  ;;  %v557_v40 = vld [vmem:[%s6410_s10 + $0x115] sm:$0xff] }
 0x192   : > { %5708 = vmatprep.mubr.bf16.mxu1 %v629_v59 }
 0x193   : > { %1765 = vmatpush1.bf16.msra.mxu0 %v6207_v36  ;;  %v441_v36 = vld [vmem:[%s6410_s10 + $0xdb] sm:$0xff] }
 0x194   : > { %1766 = vmatprep.subr.bf16.mxu0 %v6342_v1 }
 0x196   : > { %1646 = vmatmul.mubr.bf16.gmra.mrb[24].mxu0 %v458_v44  ;;  %v464_v44 = vpack.c.bf16 %v441_v36, %v440_v33  ;;  %v469_v33 = vpack.c.bf16 %v451_v28, %v450_v27  ;;  %v614_v36 = vld [vmem:[%s6410_s10 + $0x12e] sm:$0xff]  ;;  %v554_v27 = vld [vmem:[%s6410_s10 + $0xfd] sm:$0xff] }
 0x197   : > { %1653 = vmatprep.mubr.bf16.mxu0 %v6830_v45  ;;  %1767 = vmatpush1.bf16.msra.mxu0 %v6208_v46  ;;  %v6900_v46 = vpack.c.bf16 %v497_v42, %v496_v41  ;;  %v633_v37 = vpack.c.bf16 %v614_v36, %v613_v35  ;;  %v529_v41 = vld [vmem:[%s6410_s10 + $0x35] sm:$0xff]  ;;  %v530_v42 = vld [vmem:[%s6410_s10 + $0x3d] sm:$0xff]  ;;  %v6225_v28 = vld [vmem:[%s8010_s3 + $0x28] sm:$0xff]  }
 0x198   : > { %1768 = vmatprep.subr.bf16.mxu0 %v6342_v1  ;;  %v6227_v35 = vld [vmem:[%s8010_s3 + $0x38] sm:$0xff]  }
 0x19b   : > { %1769 = vmatpush1.bf16.msra.mxu0 %v6211_v50  ;;  %v498_v50 = vld [vmem:[%s6410_s10 + $0xf4] sm:$0xff] }
 0x19c   : > { %1770 = vmatprep.subr.bf16.mxu0 %v6342_v1 }
 0x19e   : > { %1654 = vmatmul.mubr.bf16.gmra.mrb[28].mxu0 %v459_v53  ;;  %v6907_v53 = vpack.c.bf16 %v499_v51, %v498_v50  ;;  %v565_v50 = vpack.c.bf16 %v532_v49, %v531_v47  ;;  %v6220_v51 = vld [vmem:[%s8010_s3] sm:$0xff]  }
 0x19f   : > { %1661 = vmatprep.mubr.bf16.mxu0 %v6845_v54  ;;  %1771 = vmatpush1.bf16.msra.mxu0 %v6214_v55  ;;  %v444_v55 = vld [vmem:[%s6410_s10 + $0xf3] sm:$0xff] }
 0x1a0   : > { %1772 = vmatprep.subr.bf16.mxu0 %v6342_v1  ;;  %v435_v1 = vld [vmem:[%s6410_s10 + $0xab] sm:$0xff]  ;;  %v466_v3 = vpack.c.bf16 %v445_v58, %v444_v55  ;;  %v533_v55 = vld [vmem:[%s6410_s10 + $0x55] sm:$0xff]  ;;  %5720 = vmatprep.subr.bf16.mxu1 %v6220_v51 }
 0x1a1   : > { %v461_v11 = vpack.c.bf16 %v435_v1, %v434_v7  ;;  %v447_v7 = vld [vmem:[%s6410_s10 + $0x10b] sm:$0xff]  ;;  %v502_v1 = vld [vmem:[%s6410_s10 + $0x114] sm:$0xff]  ;;  %5721 = vmatpush3.bf16.msra.mxu1 %v6220_v51 }
 0x1a2   : > { %v536_v58 = vld [vmem:[%s6410_s10 + $0x6d] sm:$0xff] }
 0x1a3   : > { %1773 = vmatpush1.bf16.msra.mxu0 %v6218_v60  ;;  %v607_v60 = vld [vmem:[%s6410_s10 + $0xf6] sm:$0xff]  ;;  %v567_v59 = vpack.c.bf16 %v536_v58, %v535_v57 }
 0x1a4   : > { %v630_v2 = vpack.c.bf16 %v608_v61, %v607_v60  ;;  %v537_v60 = vld [vmem:[%s6410_s10 + $0x75] sm:$0xff]  ;;  %v538_v61 = vld [vmem:[%s6410_s10 + $0x7d] sm:$0xff] }
 0x1a5   : > { %v568_v62 = vpack.c.bf16 %v538_v61, %v537_v60 }
 0x1a6   : > { %1662 = vmatmul.mubr.bf16.gmra.mrb[32].mxu0 %v460_v5  ;;  %5709 = vmatmul.mubr.bf16.gmra.mrb[24].mxu1 %v630_v2  ;;  %v446_v5 = vld [vmem:[%s6410_s10 + $0x103] sm:$0xff] }
 0x1a7   : > { %1669 = vmatprep.mubr.bf16.mxu0 %v6864_v6  ;;  %v467_v10 = vpack.c.bf16 %v447_v7, %v446_v5  ;;  %5712 = vmatprep.mubr.bf16.mxu1 %v631_v17  ;;  %v543_v7 = vld [vmem:[%s6410_s10 + $0xa5] sm:$0xff] }
 0x1ae   : > { %1670 = vmatmul.mubr.bf16.gmra.mrb[36].mxu0 %v461_v11  ;;  %v6925_v11 = vpack.c.bf16 %v503_v9, %v502_v1  ;;  %5713 = vmatmul.mubr.bf16.gmra.mrb[28].mxu1 %v632_v23  ;;  %v545_v9 = vld [vmem:[%s6410_s10 + $0xb5] sm:$0xff] }
 0x1af   : > { %1677 = vmatprep.mubr.bf16.mxu0 %v6871_v12  ;;  %5716 = vmatprep.mubr.bf16.mxu1 %v633_v37 }
 0x1b6   : > { %1678 = vmatmul.mubr.bf16.gmra.mrb[40].mxu0 %v462_v24  ;;  %v468_v24 = vpack.c.bf16 %v449_v16, %v448_v13  ;;  %5717 = vmatmul.mubr.bf16.gmra.mrb[32].mxu1 %v634_v43  ;;  %v547_v13 = vld [vmem:[%s6410_s10 + $0xc5] sm:$0xff]  ;;  %v550_v16 = vld [vmem:[%s6410_s10 + $0xdd] sm:$0xff] }
 0x1b7   : > { %1685 = vmatprep.mubr.bf16.mxu0 %v6882_v25  ;;  %v574_v17 = vpack.c.bf16 %v550_v16, %v549_v15  ;;  %v559_v43 = vld [vmem:[%s6410_s10 + $0x125] sm:$0xff] }
 0x1be   : > { %1686 = vmatmul.mubr.bf16.gmra.mrb[44].mxu0 %v463_v31  ;;  %v528_v31 = vld [vmem:[%s6410_s10 + $0x2d] sm:$0xff] }
 0x1bf   : > { %1693 = vmatprep.mubr.bf16.mxu0 %v6889_v32  ;;  %v563_v34 = vpack.c.bf16 %v528_v31, %v527_v29  ;;  %v6226_v31 = vld [vmem:[%s8010_s3 + $0x30] sm:$0xff]  }
 0x1c6   : > { %1694 = vmatmul.mubr.bf16.gmra.mrb[48].mxu0 %v464_v44  ;;  %v564_v44 = vpack.c.bf16 %v530_v42, %v529_v41  ;;  %v558_v41 = vld [vmem:[%s6410_s10 + $0x11d] sm:$0xff] }
 0x1c7   : > { %1701 = vmatprep.mubr.bf16.mxu0 %v6900_v46  ;;  %v578_v42 = vpack.c.bf16 %v558_v41, %v557_v40 }
 0x1ce   : > { %1702 = vmatmul.mubr.bf16.gmra.mrb[52].mxu0 %v465_v52  ;;  %v6221_v52 = vld [vmem:[%s8010_s3 + $0x8] sm:$0xff]  }
 0x1cf   : > { %1709 = vmatprep.mubr.bf16.mxu0 %v6907_v53  ;;  %5722 = vmatprep.subr.bf16.mxu1 %v6221_v52 }
 0x1d0   : > { %5723 = vmatpush3.bf16.msra.mxu1 %v6221_v52  ;;  %v561_v52 = vld [vmem:[%s6410_s10 + $0x135] sm:$0xff] }
 0x1d6   : > { %1710 = vmatmul.mubr.bf16.gmra.mrb[56].mxu0 %v466_v3  ;;  %v541_v3 = vld [vmem:[%s6410_s10 + $0x95] sm:$0xff] }
 0x1d7   : > { %1717 = vmatprep.mubr.bf16.mxu0 %v6918_v4 }
 0x1de   : > { %1718 = vmatmul.mubr.bf16.gmra.mrb[60].mxu0 %v467_v10 }
 0x1df   : > { %1725 = vmatprep.mubr.bf16.mxu0 %v6925_v11 }
 0x1e6   : > { %1726 = vmatmul.mubr.bf16.gmra.mrb[64].mxu0 %v468_v24  ;;  %v553_v24 = vld [vmem:[%s6410_s10 + $0xf5] sm:$0xff] }
 0x1e7   : > { %1733 = vmatprep.mubr.bf16.mxu0 %v6936_v26  ;;  %v576_v29 = vpack.c.bf16 %v554_v27, %v553_v24 }
 0x1ee   : > { %1734 = vmatmul.mubr.bf16.gmra.mrb[68].mxu0 %v469_v33  ;;  %v556_v33 = vld [vmem:[%s6410_s10 + $0x10d] sm:$0xff] }
 0x1ef   : > { %1774 = vmatprep.mubr.bf16.mxu0 %v563_v34 }
 0x1f6   : > { %1775 = vmatmul.mubr.bf16.vlgmr.msra.gmra.mrb[0].mxu0 %v6723_v39  ;;  %v6222_v39 = vld [vmem:[%s8010_s3 + $0x10] sm:$0xff]  }
 0x1f7   : > { %1782 = vmatprep.mubr.bf16.mxu0 %v564_v44  ;;  %5724 = vmatprep.subr.bf16.mxu1 %v6222_v39  ;;  %v560_v44 = vld [vmem:[%s6410_s10 + $0x12d] sm:$0xff] }
 0x1f8   : > { %5725 = vmatpush3.bf16.msra.mxu1 %v6222_v39  ;;  %v525_v39 = vld [vmem:[%s6410_s10 + $0x13c] sm:$0xff] }
 0x1fe   : > { %1783 = vmatmul.mubr.bf16.gmra.mrb[4].mxu0 %v6740_v48  ;;  %v566_v48 = vpack.c.bf16 %v534_v56, %v533_v55  ;;  %v562_v55 = vld [vmem:[%s6410_s10 + $0x13d] sm:$0xff]  ;;  %v524_v56 = vld [vmem:[%s6410_s10 + $0x134] sm:$0xff] }
 0x1ff   : > { %1790 = vmatprep.mubr.bf16.mxu0 %v565_v50  ;;  %v526_v58 = vpack.c.bf16 %v525_v39, %v524_v56 }
 0x206   : > { %1791 = vmatmul.mubr.bf16.gmra.mrb[8].mxu0 %v6762_v63  ;;  %v539_v63 = vld [vmem:[%s6410_s10 + $0x85] sm:$0xff] }
 0x207   : > { %1798 = vmatprep.mubr.bf16.mxu0 %v566_v48  ;;  %v569_v2 = vpack.c.bf16 %v540_v0, %v539_v63 }
 0x20e   : > { %1799 = vmatmul.mubr.bf16.gmra.mrb[12].mxu0 %v6777_v8  ;;  %v542_v8 = vld [vmem:[%s6410_s10 + $0x9d] sm:$0xff] }
 0x20f   : > { %1806 = vmatprep.mubr.bf16.mxu0 %v567_v59  ;;  %v570_v5 = vpack.c.bf16 %v542_v8, %v541_v3 }
 0x216   : > { %1807 = vmatmul.mubr.bf16.gmra.mrb[16].mxu0 %v6796_v22  ;;  %v544_v22 = vld [vmem:[%s6410_s10 + $0xad] sm:$0xff] }
 0x217   : > { %1814 = vmatprep.mubr.bf16.mxu0 %v568_v62  ;;  %v571_v1 = vpack.c.bf16 %v544_v22, %v543_v7 }
 0x21e   : > { %1815 = vmatmul.mubr.bf16.gmra.mrb[20].mxu0 %v6811_v30  ;;  %v546_v30 = vld [vmem:[%s6410_s10 + $0xbd] sm:$0xff] }
 0x21f   : > { %1822 = vmatprep.mubr.bf16.mxu0 %v569_v2  ;;  %v572_v10 = vpack.c.bf16 %v546_v30, %v545_v9 }
 0x226   : > { %1823 = vmatmul.mubr.bf16.gmra.mrb[24].mxu0 %v6830_v45  ;;  %v573_v45 = vpack.c.bf16 %v548_v14, %v547_v13 }
 0x227   : > { %1830 = vmatprep.mubr.bf16.mxu0 %v570_v5 }
 0x22e   : > { %1831 = vmatmul.mubr.bf16.gmra.mrb[28].mxu0 %v6845_v54  ;;  %v6989_v54 = vpop.f32.mrb[0].mxu1 }
 0x22f   : > { %1838 = vmatprep.mubr.bf16.mxu0 %v571_v1  ;;  %v6996_v20 = vpop.f32.mrb[1].mxu1 }
 0x236   : > { %1839 = vmatmul.mubr.bf16.gmra.mrb[32].mxu0 %v6864_v6  ;;  %v6223_v6 = vld [vmem:[%s8010_s3 + $0x18] sm:$0xff]  }
 0x237   : > { %1846 = vmatprep.mubr.bf16.mxu0 %v572_v10  ;;  %5726 = vmatprep.subr.bf16.mxu1 %v6223_v6 }
 0x238   : > { %5727 = vmatpush3.bf16.msra.mxu1 %v6223_v6 }
 0x23e   : > { %1847 = vmatmul.mubr.bf16.gmra.mrb[36].mxu0 %v6871_v12  ;;  %v6998_v12 = vpop.f32.mrb[2].mxu1 }
 0x23f   : > { %1854 = vmatprep.mubr.bf16.mxu0 %v573_v45  ;;  %v7000_v23 = vpop.f32.mrb[3].mxu1  ;;  %v7093_v45 = vld [vmem:[%s8011_s4] ss:$0 sm:$0xff] }
 0x240   : > { %v7017_v34 = vpop.f32.mrb[4].mxu1 }
 0x241   : > { %v7022_v36 = vpop.f32.mrb[5].mxu1 }
 0x242   : > { %v7024_v37 = vpop.f32.mrb[6].mxu1 }
 0x243   : > { %v7026_v38 = vpop.f32.mrb[7].mxu1 }
 0x244   : > { %v7034_v47 = vpop.f32.mrb[8].mxu1 }
 0x245   : > { %v7036_v49 = vpop.f32.mrb[9].mxu1 }
 0x246   : > { %1855 = vmatmul.mubr.bf16.gmra.mrb[40].mxu0 %v6882_v25  ;;  %v6224_v25 = vld [vmem:[%s8010_s3 + $0x20] sm:$0xff]   ;;  %v7038_v50 = vpop.f32.mrb[10].mxu1 }
 0x247   : > { %1862 = vmatprep.mubr.bf16.mxu0 %v574_v17  ;;  %5728 = vmatprep.subr.bf16.mxu1 %v6224_v25  ;;  %v7040_v51 = vpop.f32.mrb[11].mxu1 }
 0x248   : > { %5729 = vmatpush3.bf16.msra.mxu1 %v6224_v25 }
 0x249   : > { %5730 = vmatprep.subr.bf16.mxu1 %v6225_v28 }
 0x24c   : > { %5731 = vmatpush3.bf16.msra.mxu1 %v6225_v28 }
 0x24d   : > { %5732 = vmatprep.subr.bf16.mxu1 %v6226_v31 }
 0x24e   : > { %1863 = vmatmul.mubr.bf16.gmra.mrb[44].mxu0 %v6889_v32  ;;  %v555_v32 = vld [vmem:[%s6410_s10 + $0x105] sm:$0xff] }
 0x24f   : > { %1870 = vmatprep.mubr.bf16.mxu0 %v575_v21 }
 0x250   : > { %5733 = vmatpush3.bf16.msra.mxu1 %v6226_v31  ;;  %v7048_v48 = vpop.f32.mrb[12].mxu1 }
 0x251   : > { %5734 = vmatprep.subr.bf16.mxu1 %v6227_v35  ;;  %v7050_v57 = vpop.f32.mrb[13].mxu1 }
 0x252   : > { %v7052_v59 = vpop.f32.mrb[14].mxu1 }
 0x253   : > { %v7054_v60 = vpop.f32.mrb[15].mxu1 }
 0x254   : > { %5735 = vmatpush3.bf16.msra.mxu1 %v6227_v35 }
 0x256   : > { %1871 = vmatmul.mubr.bf16.gmra.mrb[48].mxu0 %v6900_v46  ;;  %v577_v46 = vpack.c.bf16 %v556_v33, %v555_v32 }
 0x257   : > { %1878 = vmatprep.mubr.bf16.mxu0 %v576_v29 }
 0x25e   : > { %1879 = vmatmul.mubr.bf16.gmra.mrb[52].mxu0 %v6907_v53  ;;  %v579_v53 = vpack.c.bf16 %v560_v44, %v559_v43 }
 0x25f   : > { %1886 = vmatprep.mubr.bf16.mxu0 %v577_v46 }
 0x266   : > { %1887 = vmatmul.mubr.bf16.gmra.mrb[56].mxu0 %v6918_v4  ;;  %v580_v4 = vpack.c.bf16 %v562_v55, %v561_v52 }
 0x267   : > { %1894 = vmatprep.mubr.bf16.mxu0 %v578_v42 }
 0x26e   : > { %1895 = vmatmul.mubr.bf16.gmra.mrb[60].mxu0 %v6925_v11  ;;  %v7056_v11 = vpop.f32.mrb[16].mxu1 }
 0x26f   : > { %1902 = vmatprep.mubr.bf16.mxu0 %v579_v53  ;;  %v7058_v61 = vpop.f32.mrb[17].mxu1 }
 0x270   : > { %v7060_v62 = vpop.f32.mrb[18].mxu1 }
 0x276   : > { %1903 = vmatmul.mubr.bf16.gmra.mrb[64].mxu0 %v6936_v26  ;;  %v7062_v26 = vpop.f32.mrb[19].mxu1 }
 0x277   : > { %1910 = vmatprep.mubr.bf16.mxu0 %v580_v4  ;;  %v7064_v63 = vpop.f32.mrb[20].mxu1 }
 0x278   : > { %v7066_v0 = vpop.f32.mrb[21].mxu1 }
 0x279   : > { %v7068_v2 = vpop.f32.mrb[22].mxu1 }
 0x27a   : > { %v7070_v3 = vpop.f32.mrb[23].mxu1 }
 0x27b   : > { %v7072_v8 = vpop.f32.mrb[24].mxu1 }
 0x27c   : > { %v7074_v5 = vpop.f32.mrb[25].mxu1 }
 0x27d   : > { %v7076_v7 = vpop.f32.mrb[26].mxu1 }
 0x27e   : > { %1911 = vmatmul.mubr.bf16.gmra.mrb[68].mxu0 %v526_v58  ;;  %v7078_v22 = vpop.f32.mrb[27].mxu1 }
 0x281   : > { %v7080_v1 = vpop.f32.mrb[28].mxu1 }
 0x282   : > { %v7082_v9 = vpop.f32.mrb[29].mxu1 }
 0x283   : > { %v7084_v30 = vpop.f32.mrb[30].mxu1 }
 0x284   : > { %v7086_v10 = vpop.f32.mrb[31].mxu1 }
 0x289   : > { %v7088_v13 = vpop.f32.mrb[32].mxu1 }
 0x28a   : > { %v7095_v15 = vpop.f32.mrb[33].mxu1 }
 0x28b   : > { %v7098_v18 = vpop.f32.mrb[34].mxu1 }
 0x28c   : > { %v7105_v21 = vpop.f32.mrb[35].mxu1 }
 0x2c9   : > { %v1776_v14 = vpop.f32.mrb[0].mxu0 }
 0x2ca   : > { %v1954_v16 = vadd.f32 %v6996_v20, %v1776_v14  ;;  %v1778_v17 = vpop.f32.mrb[1].mxu0 }
 0x2cb   : > { %v1779_v6 = vpop.f32.mrb[2].mxu0 }
 0x2cc   : > { %v2102_v25 = vmul.f32 %v7093_v45, %v1954_v16  ;;  %v1957_v24 = vadd.f32 %v7000_v23, %v1779_v6  ;;  %v1781_v27 = vpop.f32.mrb[3].mxu0 }
 0x2ce   : > { %v2142_v28 = vadd.f32 %v7103_v19, %v2102_v25  ;;  %v2103_v20 = vmul.f32 %v7093_v45, %v1957_v24 }
 0x2d0   : > { %v2143_v29 = vadd.f32 %v7103_v19, %v2103_v20  ;;  %v2178_v32 = vmax.f32 %v2142_v28, 0.0 }
 0x2d1   : > { %v1784_v31 = vpop.f32.mrb[4].mxu0 }
 0x2d2   : > { %v2179_v33 = vmax.f32 %v2143_v29, 0.0  ;;  %v1962_v35 = vadd.f32 %v6989_v54, %v1784_v31  ;;  %v1786_v46 = vpop.f32.mrb[5].mxu0 }
 0x2d3   : > { %v1787_v40 = vpop.f32.mrb[6].mxu0 }
 0x2d4   : > { %v2104_v41 = vmul.f32 %v7093_v45, %v1962_v35  ;;  %v1965_v42 = vadd.f32 %v6998_v12, %v1787_v40  ;;  %v1789_v43 = vpop.f32.mrb[7].mxu0  ;;  %v2214_v23 = vpack.c.bf16 %v2179_v33, %v2178_v32 }
 0x2d6   : > { %v2144_v44 = vadd.f32 %v7103_v19, %v2104_v41  ;;  %v2105_v53 = vmul.f32 %v7093_v45, %v1965_v42  ;;  %5736 = vmatprep.mubr.bf16.mxu1 %v2214_v23 }
 0x2d8   : > { %v2145_v52 = vadd.f32 %v7103_v19, %v2105_v53  ;;  %v2180_v4 = vmax.f32 %v2144_v44, 0.0 }
 0x2d9   : > { %v1792_v55 = vpop.f32.mrb[8].mxu0 }
 0x2da   : > { %v2181_v56 = vmax.f32 %v2145_v52, 0.0  ;;  %v1970_v54 = vadd.f32 %v7022_v36, %v1792_v55  ;;  %v1794_v39 = vpop.f32.mrb[9].mxu0 }
 0x2db   : > { %v1795_v58 = vpop.f32.mrb[10].mxu0 }
 0x2dc   : > { %v2215_v14 = vpack.c.bf16 %v2181_v56, %v2180_v4  ;;  %v2106_v16 = vmul.f32 %v7093_v45, %v1970_v54  ;;  %v1973_v12 = vadd.f32 %v7026_v38, %v1795_v58  ;;  %v1797_v17 = vpop.f32.mrb[11].mxu0 }
 0x2de   : > { %v2146_v6 = vadd.f32 %v7103_v19, %v2106_v16  ;;  %v2107_v25 = vmul.f32 %v7093_v45, %v1973_v12  ;;  %5737 = vmatmul.mubr.bf16.vlgmr.msra.gmra.mrb[36].mxu1 %v2215_v14 }
 0x2e0   : > { %v2147_v24 = vadd.f32 %v7103_v19, %v2107_v25  ;;  %v2182_v28 = vmax.f32 %v2146_v6, 0.0 }
 0x2e1   : > { %v1800_v27 = vpop.f32.mrb[12].mxu0 }
 0x2e2   : > { %v2183_v20 = vmax.f32 %v2147_v24, 0.0  ;;  %v1978_v36 = vadd.f32 %v7017_v34, %v1800_v27  ;;  %v1802_v29 = vpop.f32.mrb[13].mxu0 }
 0x2e3   : > { %v1803_v31 = vpop.f32.mrb[14].mxu0 }
 0x2e4   : > { %v2108_v32 = vmul.f32 %v7093_v45, %v1978_v36  ;;  %v1981_v33 = vadd.f32 %v7024_v37, %v1803_v31  ;;  %v1805_v38 = vpop.f32.mrb[15].mxu0  ;;  %v2216_v35 = vpack.c.bf16 %v2183_v20, %v2182_v28 }
 0x2e6   : > { %v2148_v46 = vadd.f32 %v7103_v19, %v2108_v32  ;;  %v2109_v40 = vmul.f32 %v7093_v45, %v1981_v33  ;;  %5740 = vmatprep.mubr.bf16.mxu1 %v2216_v35 }
 0x2e8   : > { %v2149_v41 = vadd.f32 %v7103_v19, %v2109_v40  ;;  %v2184_v43 = vmax.f32 %v2148_v46, 0.0 }
 0x2e9   : > { %v1808_v42 = vpop.f32.mrb[16].mxu0 }
 0x2ea   : > { %v2185_v23 = vmax.f32 %v2149_v41, 0.0  ;;  %v1986_v34 = vadd.f32 %v7036_v49, %v1808_v42  ;;  %v1810_v44 = vpop.f32.mrb[17].mxu0 }
 0x2eb   : > { %v1811_v53 = vpop.f32.mrb[18].mxu0 }
 0x2ec   : > { %v2110_v52 = vmul.f32 %v7093_v45, %v1986_v34  ;;  %v1989_v37 = vadd.f32 %v7040_v51, %v1811_v53  ;;  %v1813_v55 = vpop.f32.mrb[19].mxu0  ;;  %v2217_v4 = vpack.c.bf16 %v2185_v23, %v2184_v43 }
 0x2ee   : > { %v2150_v56 = vadd.f32 %v7103_v19, %v2110_v52  ;;  %v2111_v54 = vmul.f32 %v7093_v45, %v1989_v37  ;;  %5741 = vmatmul.mubr.bf16.gmra.mrb[40].mxu1 %v2217_v4 }
 0x2f0   : > { %v2151_v39 = vadd.f32 %v7103_v19, %v2111_v54  ;;  %v2186_v14 = vmax.f32 %v2150_v56, 0.0 }
 0x2f1   : > { %v1816_v58 = vpop.f32.mrb[20].mxu0 }
 0x2f2   : > { %v2187_v16 = vmax.f32 %v2151_v39, 0.0  ;;  %v1994_v49 = vadd.f32 %v7034_v47, %v1816_v58  ;;  %v1818_v12 = vpop.f32.mrb[21].mxu0 }
 0x2f3   : > { %v1819_v17 = vpop.f32.mrb[22].mxu0 }
 0x2f4   : > { %v2112_v6 = vmul.f32 %v7093_v45, %v1994_v49  ;;  %v1997_v51 = vadd.f32 %v7038_v50, %v1819_v17  ;;  %v1821_v25 = vpop.f32.mrb[23].mxu0  ;;  %v2218_v24 = vpack.c.bf16 %v2187_v16, %v2186_v14 }
 0x2f6   : > { %v2152_v27 = vadd.f32 %v7103_v19, %v2112_v6  ;;  %v2113_v28 = vmul.f32 %v7093_v45, %v1997_v51  ;;  %5744 = vmatprep.mubr.bf16.mxu1 %v2218_v24 }
 0x2f8   : > { %v2153_v20 = vadd.f32 %v7103_v19, %v2113_v28  ;;  %v2188_v29 = vmax.f32 %v2152_v27, 0.0 }
 0x2f9   : > { %v1824_v36 = vpop.f32.mrb[24].mxu0 }
 0x2fa   : > { %v2189_v31 = vmax.f32 %v2153_v20, 0.0  ;;  %v2002_v47 = vadd.f32 %v7050_v57, %v1824_v36  ;;  %v1826_v32 = vpop.f32.mrb[25].mxu0 }
 0x2fb   : > { %v1827_v33 = vpop.f32.mrb[26].mxu0 }
 0x2fc   : > { %v2114_v38 = vmul.f32 %v7093_v45, %v2002_v47  ;;  %v2005_v50 = vadd.f32 %v7054_v60, %v1827_v33  ;;  %v1829_v35 = vpop.f32.mrb[27].mxu0  ;;  %v2219_v46 = vpack.c.bf16 %v2189_v31, %v2188_v29 }
 0x2fe   : > { %v2154_v40 = vadd.f32 %v7103_v19, %v2114_v38  ;;  %v2115_v41 = vmul.f32 %v7093_v45, %v2005_v50  ;;  %5745 = vmatmul.mubr.bf16.gmra.mrb[44].mxu1 %v2219_v46 }
 0x300   : > { %v2155_v42 = vadd.f32 %v7103_v19, %v2115_v41  ;;  %v2190_v23 = vmax.f32 %v2154_v40, 0.0 }
 0x301   : > { %v1832_v43 = vpop.f32.mrb[28].mxu0 }
 0x302   : > { %v2191_v34 = vmax.f32 %v2155_v42, 0.0  ;;  %v2010_v57 = vadd.f32 %v7048_v48, %v1832_v43  ;;  %v1834_v44 = vpop.f32.mrb[29].mxu0 }
 0x303   : > { %v1835_v53 = vpop.f32.mrb[30].mxu0 }
 0x304   : > { %v2116_v52 = vmul.f32 %v7093_v45, %v2010_v57  ;;  %v2013_v60 = vadd.f32 %v7052_v59, %v1835_v53  ;;  %v1837_v37 = vpop.f32.mrb[31].mxu0  ;;  %v2220_v55 = vpack.c.bf16 %v2191_v34, %v2190_v23 }
 0x306   : > { %v2156_v4 = vadd.f32 %v7103_v19, %v2116_v52  ;;  %v2117_v56 = vmul.f32 %v7093_v45, %v2013_v60  ;;  %5748 = vmatprep.mubr.bf16.mxu1 %v2220_v55 }
 0x308   : > { %v2157_v54 = vadd.f32 %v7103_v19, %v2117_v56  ;;  %v2192_v58 = vmax.f32 %v2156_v4, 0.0 }
 0x309   : > { %v1840_v39 = vpop.f32.mrb[32].mxu0 }
 0x30a   : > { %v2193_v14 = vmax.f32 %v2157_v54, 0.0  ;;  %v2018_v48 = vadd.f32 %v7058_v61, %v1840_v39  ;;  %v1842_v16 = vpop.f32.mrb[33].mxu0 }
 0x30b   : > { %v1843_v49 = vpop.f32.mrb[34].mxu0 }
 0x30c   : > { %v2118_v12 = vmul.f32 %v7093_v45, %v2018_v48  ;;  %v2021_v59 = vadd.f32 %v7062_v26, %v1843_v49  ;;  %v1845_v17 = vpop.f32.mrb[35].mxu0  ;;  %v2221_v6 = vpack.c.bf16 %v2193_v14, %v2192_v58 }
 0x30e   : > { %v2158_v51 = vadd.f32 %v7103_v19, %v2118_v12  ;;  %v2119_v25 = vmul.f32 %v7093_v45, %v2021_v59  ;;  %5749 = vmatmul.mubr.bf16.gmra.mrb[48].mxu1 %v2221_v6 }
 0x310   : > { %v2159_v24 = vadd.f32 %v7103_v19, %v2119_v25  ;;  %v2194_v28 = vmax.f32 %v2158_v51, 0.0 }
 0x311   : > { %v1848_v27 = vpop.f32.mrb[36].mxu0 }
 0x312   : > { %v2195_v20 = vmax.f32 %v2159_v24, 0.0  ;;  %v2026_v61 = vadd.f32 %v7056_v11, %v1848_v27  ;;  %v1850_v36 = vpop.f32.mrb[37].mxu0 }
 0x313   : > { %v1851_v29 = vpop.f32.mrb[38].mxu0 }
 0x314   : > { %v2120_v31 = vmul.f32 %v7093_v45, %v2026_v61  ;;  %v2029_v26 = vadd.f32 %v7060_v62, %v1851_v29  ;;  %v1853_v47 = vpop.f32.mrb[39].mxu0  ;;  %v2222_v32 = vpack.c.bf16 %v2195_v20, %v2194_v28  ;;  %v6228_v28 = vld [vmem:[%s8009_s2 + $0x40] sm:$0xff]  }
 0x315   : > { %5377 = vmatprep.subr.bf16.mxu1 %v6228_v28  ;;  %v6230_v47 = vld [vmem:[%s8009_s2 + $0x48] sm:$0xff]  }
 0x316   : > { %v2160_v33 = vadd.f32 %v7103_v19, %v2120_v31  ;;  %v2121_v38 = vmul.f32 %v7093_v45, %v2029_v26  ;;  %5752 = vmatprep.mubr.bf16.mxu1 %v2222_v32 }
 0x318   : > { %v2161_v50 = vadd.f32 %v7103_v19, %v2121_v38  ;;  %v2196_v46 = vmax.f32 %v2160_v33, 0.0 }
 0x319   : > { %v1856_v35 = vpop.f32.mrb[40].mxu0 }
 0x31a   : > { %v2197_v40 = vmax.f32 %v2161_v50, 0.0  ;;  %v2034_v11 = vadd.f32 %v7066_v0, %v1856_v35  ;;  %v1858_v41 = vpop.f32.mrb[41].mxu0  ;;  %v6231_v35 = vld [vmem:[%s8009_s2 + $0x8] sm:$0xff]  }
 0x31b   : > { %v1859_v42 = vpop.f32.mrb[42].mxu0 }
 0x31c   : > { %v2122_v43 = vmul.f32 %v7093_v45, %v2034_v11  ;;  %v2037_v62 = vadd.f32 %v7070_v3, %v1859_v42  ;;  %v1861_v23 = vpop.f32.mrb[43].mxu0  ;;  %v2223_v34 = vpack.c.bf16 %v2197_v40, %v2196_v46  ;;  %v6232_v40 = vld [vmem:[%s8009_s2 + $0x50] sm:$0xff]  }
 0x31e   : > { %v2162_v57 = vadd.f32 %v7103_v19, %v2122_v43  ;;  %v2123_v44 = vmul.f32 %v7093_v45, %v2037_v62  ;;  %5753 = vmatmul.mubr.bf16.gmra.mrb[52].mxu1 %v2223_v34 }
 0x320   : > { %v2163_v53 = vadd.f32 %v7103_v19, %v2123_v44  ;;  %v2198_v60 = vmax.f32 %v2162_v57, 0.0  ;;  %v6234_v57 = vld [vmem:[%s8009_s2 + $0x58] sm:$0xff]  }
 0x321   : > { %v1864_v52 = vpop.f32.mrb[44].mxu0 }
 0x322   : > { %v2199_v37 = vmax.f32 %v2163_v53, 0.0  ;;  %v2042_v0 = vadd.f32 %v7064_v63, %v1864_v52  ;;  %v1866_v55 = vpop.f32.mrb[45].mxu0 }
 0x323   : > { %v1867_v4 = vpop.f32.mrb[46].mxu0  ;;  %v6343_v55 = vmov 0.0  }
 0x324   : > { %v2124_v56 = vmul.f32 %v7093_v45, %v2042_v0  ;;  %v2045_v3 = vadd.f32 %v7068_v2, %v1867_v4  ;;  %v1869_v54 = vpop.f32.mrb[47].mxu0  ;;  %v2224_v39 = vpack.c.bf16 %v2199_v37, %v2198_v60  ;;  %v6235_v37 = vld [vmem:[%s8009_s2 + $0x18] sm:$0xff]   ;;  %2627 = vst [vmem:[#allocation3] sm:$0xff] %v6343_v55  ;;  %2628 = vst [vmem:[#allocation3 + $0x8] sm:$0xff] %v6343_v55 }
 0x325   : > { %2629 = vst [vmem:[#allocation3 + $0x10] sm:$0xff] %v6343_v55  ;;  %2630 = vst [vmem:[#allocation3 + $0x18] sm:$0xff] %v6343_v55 }
 0x326   : > { %v2164_v58 = vadd.f32 %v7103_v19, %v2124_v56  ;;  %v2125_v14 = vmul.f32 %v7093_v45, %v2045_v3  ;;  %5756 = vmatprep.mubr.bf16.mxu1 %v2224_v39  ;;  %2631 = vst [vmem:[#allocation3 + $0x20] sm:$0xff] %v6343_v55  ;;  %2632 = vst [vmem:[#allocation3 + $0x28] sm:$0xff] %v6343_v55  ;;  %v6237_v56 = vld [vmem:[%s8009_s2 + $0x20] sm:$0xff]  }
 0x327   : > { %2633 = vst [vmem:[#allocation3 + $0x30] sm:$0xff] %v6343_v55  ;;  %2635 = vst [vmem:[#allocation3 + $0x40] sm:$0xff] %v6343_v55 }
 0x328   : > { %v2165_v48 = vadd.f32 %v7103_v19, %v2125_v14  ;;  %v2200_v49 = vmax.f32 %v2164_v58, 0.0  ;;  %2636 = vst [vmem:[#allocation3 + $0x48] sm:$0xff] %v6343_v55  ;;  %2637 = vst [vmem:[#allocation3 + $0x50] sm:$0xff] %v6343_v55 }
 0x329   : > { %v1872_v16 = vpop.f32.mrb[48].mxu0  ;;  %2638 = vst [vmem:[#allocation3 + $0x58] sm:$0xff] %v6343_v55  ;;  %2639 = vst [vmem:[#allocation3 + $0x60] sm:$0xff] %v6343_v55 }
 0x32a   : > { %v2201_v12 = vmax.f32 %v2165_v48, 0.0  ;;  %v2050_v63 = vadd.f32 %v7074_v5, %v1872_v16  ;;  %v1874_v59 = vpop.f32.mrb[49].mxu0  ;;  %v6229_v5 = vld [vmem:[%s8009_s2] sm:$0xff]   ;;  %2640 = vst [vmem:[#allocation3 + $0x68] sm:$0xff] %v6343_v55  ;;  %2641 = vst [vmem:[#allocation3 + $0x70] sm:$0xff] %v6343_v55  ;;  %v6238_v16 = vld [vmem:[%s8009_s2 + $0x68] sm:$0xff]  }
 0x32b   : > { %v1875_v17 = vpop.f32.mrb[50].mxu0  ;;  %5378 = vmatpush3.bf16.msra.mxu1 %v6229_v5  ;;  %2642 = vst [vmem:[#allocation3 + $0x78] sm:$0xff] %v6343_v55 }
 0x32c   : > { %v2126_v6 = vmul.f32 %v7093_v45, %v2050_v63  ;;  %v2053_v2 = vadd.f32 %v7078_v22, %v1875_v17  ;;  %v1877_v51 = vpop.f32.mrb[51].mxu0  ;;  %v2225_v25 = vpack.c.bf16 %v2201_v12, %v2200_v49  ;;  %5379 = vmatprep.subr.bf16.mxu1 %v6230_v47  ;;  %v6239_v17 = vld [vmem:[%s8009_s2 + $0x28] sm:$0xff]  }
 0x32e   : > { %v2166_v24 = vadd.f32 %v7103_v19, %v2126_v6  ;;  %v2127_v27 = vmul.f32 %v7093_v45, %v2053_v2  ;;  %5757 = vmatmul.mubr.bf16.gmra.mrb[56].mxu1 %v2225_v25  ;;  %v6240_v2 = vld [vmem:[%s8009_s2 + $0x70] sm:$0xff]  }
 0x32f   : > { %5380 = vmatpush3.bf16.msra.mxu1 %v6231_v35 }
 0x330   : > { %v2167_v20 = vadd.f32 %v7103_v19, %v2127_v27  ;;  %v2202_v22 = vmax.f32 %v2166_v24, 0.0  ;;  %5381 = vmatprep.subr.bf16.mxu1 %v6232_v40 }
 0x331   : > { %v1880_v61 = vpop.f32.mrb[52].mxu0 }
 0x332   : > { %v2203_v36 = vmax.f32 %v2167_v20, 0.0  ;;  %v2058_v29 = vadd.f32 %v7072_v8, %v1880_v61  ;;  %v1882_v31 = vpop.f32.mrb[53].mxu0  ;;  %v6242_v61 = vld [vmem:[%s8009_s2 + $0x78] sm:$0xff]  }
 0x333   : > { %v1883_v26 = vpop.f32.mrb[54].mxu0 }
 0x334   : > { %v2128_v32 = vmul.f32 %v7093_v45, %v2058_v29  ;;  %v2061_v33 = vadd.f32 %v7076_v7, %v1883_v26  ;;  %v1885_v38 = vpop.f32.mrb[55].mxu0  ;;  %v2226_v50 = vpack.c.bf16 %v2203_v36, %v2202_v22  ;;  %v6233_v7 = vld [vmem:[%s8009_s2 + $0x10] sm:$0xff]   ;;  %v6243_v26 = vld [vmem:[%s8009_s2 + $0x38] sm:$0xff]  }
 0x335   : > { %5382 = vmatpush3.bf16.msra.mxu1 %v6233_v7 }
 0x336   : > { %v2168_v8 = vadd.f32 %v7103_v19, %v2128_v32  ;;  %v2129_v46 = vmul.f32 %v7093_v45, %v2061_v33  ;;  %5760 = vmatprep.mubr.bf16.mxu1 %v2226_v50  ;;  %5383 = vmatprep.subr.bf16.mxu1 %v6234_v57 }
 0x338   : > { %v2169_v11 = vadd.f32 %v7103_v19, %v2129_v46  ;;  %v2204_v42 = vmax.f32 %v2168_v8, 0.0 }
 0x339   : > { %v1888_v41 = vpop.f32.mrb[56].mxu0  ;;  %5384 = vmatpush3.bf16.msra.mxu1 %v6235_v37 }
 0x33a   : > { %v2205_v43 = vmax.f32 %v2169_v11, 0.0  ;;  %v2066_v62 = vadd.f32 %v7082_v9, %v1888_v41  ;;  %v1890_v23 = vpop.f32.mrb[57].mxu0 }
 0x33b   : > { %v1891_v34 = vpop.f32.mrb[58].mxu0 }
 0x33c   : > { %v2130_v44 = vmul.f32 %v7093_v45, %v2066_v62  ;;  %v2069_v53 = vadd.f32 %v7086_v10, %v1891_v34  ;;  %v1893_v52 = vpop.f32.mrb[59].mxu0  ;;  %v2227_v60 = vpack.c.bf16 %v2205_v43, %v2204_v42  ;;  %v6236_v10 = vld [vmem:[%s8009_s2 + $0x60] sm:$0xff]  }
 0x33d   : > { %5385 = vmatprep.subr.bf16.mxu1 %v6236_v10 }
 0x33e   : > { %v2170_v9 = vadd.f32 %v7103_v19, %v2130_v44  ;;  %v2131_v0 = vmul.f32 %v7093_v45, %v2069_v53  ;;  %5761 = vmatmul.mubr.bf16.gmra.mrb[60].mxu1 %v2227_v60 }
 0x33f   : > { %5386 = vmatpush3.bf16.msra.mxu1 %v6237_v56 }
 0x340   : > { %v2171_v4 = vadd.f32 %v7103_v19, %v2131_v0  ;;  %v2206_v54 = vmax.f32 %v2170_v9, 0.0  ;;  %5387 = vmatprep.subr.bf16.mxu1 %v6238_v16 }
 0x341   : > { %v1896_v3 = vpop.f32.mrb[60].mxu0 }
 0x342   : > { %v2207_v39 = vmax.f32 %v2171_v4, 0.0  ;;  %v2074_v58 = vadd.f32 %v7080_v1, %v1896_v3  ;;  %v1898_v14 = vpop.f32.mrb[61].mxu0 }
 0x343   : > { %v1899_v48 = vpop.f32.mrb[62].mxu0  ;;  %5388 = vmatpush3.bf16.msra.mxu1 %v6239_v17 }
 0x344   : > { %v2132_v49 = vmul.f32 %v7093_v45, %v2074_v58  ;;  %v2077_v12 = vadd.f32 %v7084_v30, %v1899_v48  ;;  %v1901_v63 = vpop.f32.mrb[63].mxu0  ;;  %v2228_v59 = vpack.c.bf16 %v2207_v39, %v2206_v54  ;;  %v6241_v30 = vld [vmem:[%s8009_s2 + $0x30] sm:$0xff]   ;;  %5389 = vmatprep.subr.bf16.mxu1 %v6240_v2 }
 0x346   : > { %v2172_v1 = vadd.f32 %v7103_v19, %v2132_v49  ;;  %v2133_v6 = vmul.f32 %v7093_v45, %v2077_v12  ;;  %5764 = vmatprep.mubr.bf16.mxu1 %v2228_v59 }
 0x347   : > { %5390 = vmatpush3.bf16.msra.mxu1 %v6241_v30 }
 0x348   : > { %v2173_v51 = vadd.f32 %v7103_v19, %v2133_v6  ;;  %v2208_v24 = vmax.f32 %v2172_v1, 0.0  ;;  %5391 = vmatprep.subr.bf16.mxu1 %v6242_v61 }
 0x349   : > { %v1904_v25 = vpop.f32.mrb[64].mxu0 }
 0x34a   : > { %v2209_v27 = vmax.f32 %v2173_v51, 0.0  ;;  %v2082_v28 = vadd.f32 %v7095_v15, %v1904_v25  ;;  %v1906_v20 = vpop.f32.mrb[65].mxu0 }
 0x34b   : > { %v1907_v5 = vpop.f32.mrb[66].mxu0  ;;  %5392 = vmatpush3.bf16.msra.mxu1 %v6243_v26 }
 0x34c   : > { %v2134_v22 = vmul.f32 %v7093_v45, %v2082_v28  ;;  %v2085_v36 = vadd.f32 %v7105_v21, %v1907_v5  ;;  %v1909_v29 = vpop.f32.mrb[67].mxu0  ;;  %v2229_v31 = vpack.c.bf16 %v2209_v27, %v2208_v24 }
 0x34e   : > { %v2174_v15 = vadd.f32 %v7103_v19, %v2134_v22  ;;  %v2135_v47 = vmul.f32 %v7093_v45, %v2085_v36  ;;  %5765 = vmatmul.mubr.bf16.gmra.mrb[64].mxu1 %v2229_v31 }
 0x350   : > { %v2175_v32 = vadd.f32 %v7103_v19, %v2135_v47  ;;  %v2210_v38 = vmax.f32 %v2174_v15, 0.0 }
 0x351   : > { %v1912_v33 = vpop.f32.mrb[68].mxu0 }
 0x352   : > { %v2211_v50 = vmax.f32 %v2175_v32, 0.0  ;;  %v2090_v21 = vadd.f32 %v7088_v13, %v1912_v33  ;;  %v1914_v35 = vpop.f32.mrb[69].mxu0  ;;  %v7280_v13 = vld [vmem:[%s8011_s4 + $0x1] ss:$0 sm:$0xff] }
 0x353   : > { %v1915_v8 = vpop.f32.mrb[70].mxu0 }
 0x354   : > { %v2136_v46 = vmul.f32 %v7093_v45, %v2090_v21  ;;  %v2093_v40 = vadd.f32 %v7098_v18, %v1915_v8  ;;  %v1917_v11 = vpop.f32.mrb[71].mxu0  ;;  %v2230_v7 = vpack.c.bf16 %v2211_v50, %v2210_v38  ;;  %v7285_v18 = vld [vmem:[%s8012_s5 + $0x1] ss:$0 sm:$0xff] }
 0x356   : > { %v2176_v41 = vadd.f32 %v7103_v19, %v2136_v46  ;;  %v2137_v42 = vmul.f32 %v7093_v45, %v2093_v40  ;;  %5768 = vmatprep.mubr.bf16.mxu1 %v2230_v7  ;;  %v6244_v46 = vld [vmem:[%s8009_s2 + $0xc0] sm:$0xff]  }
 0x357   : > { %v3031_v40 = vld [vmem:[#allocation3 + $0x1] sm:$0xff]  ;;  %5435 = vmatprep.subr.bf16.mxu1 %v6244_v46 }
 0x358   : > { %v2177_v43 = vadd.f32 %v7103_v19, %v2137_v42  ;;  %v2212_v62 = vmax.f32 %v2176_v41, 0.0 }
 0x35a   : > { %v2213_v23 = vmax.f32 %v2177_v43, 0.0  ;;  %v6245_v43 = vld [vmem:[%s8009_s2 + $0x80] sm:$0xff]  }
 0x35c   : > { %v2231_v34 = vpack.c.bf16 %v2213_v23, %v2212_v62  ;;  %v6246_v62 = vld [vmem:[%s8009_s2 + $0xc8] sm:$0xff]  }
 0x35e   : > { %5769 = vmatmul.mubr.bf16.gmra.mrb[68].mxu1 %v2231_v34 }
 0x3b1   : > { %v5738_v57 = vpop.f32.mrb[36].mxu1 }
 0x3b2   : > { %v2481_v45 = vmul.f32 %v5738_v57, %v7280_v13  ;;  %v2330_v44 = vpop.f32.mrb[37].mxu1  ;;  %v6247_v57 = vld [vmem:[%s8009_s2 + $0x88] sm:$0xff]  }
 0x3b3   : > { %v2479_v19 = vmul.f32 %v7280_v13, %v2330_v44  ;;  %v5739_v53 = vpop.f32.mrb[38].mxu1 }
 0x3b4   : > { %v2521_v52 = vadd.f32 %v7285_v18, %v2481_v45  ;;  %v2482_v60 = vmul.f32 %v5739_v53, %v7280_v13  ;;  %v2333_v37 = vpop.f32.mrb[39].mxu1 }
 0x3b5   : > { %v2519_v9 = vadd.f32 %v7285_v18, %v2479_v19  ;;  %v2480_v0 = vmul.f32 %v7280_v13, %v2333_v37 }
 0x3b6   : > { %v2557_v10 = vmax.f32 %v2521_v52, 0.0  ;;  %v2522_v4 = vadd.f32 %v7285_v18, %v2482_v60 }
 0x3b7   : > { %v2555_v56 = vmax.f32 %v2519_v9, 0.0  ;;  %v2520_v3 = vadd.f32 %v7285_v18, %v2480_v0 }
 0x3b8   : > { %2593 = vst [vmem:[#allocation2 + $0x10] sm:$0xff] %v2557_v10  ;;  %v2558_v54 = vmax.f32 %v2522_v4, 0.0 }
 0x3b9   : > { %v2646_v39 = vrot.slane %v2555_v56, 1  ;;  %v2556_v58 = vmax.f32 %v2520_v3, 0.0 }
 0x3ba   : > { %2594 = vst [vmem:[#allocation2 + $0x18] sm:$0xff] %v2558_v54 }
 0x3bb   : > { %v2648_v14 = vmax.f32 %v2555_v56, %v2646_v39  ;;  %v2650_v48 = vrot.slane %v2556_v58, 1  ;;  %v2669_v16 = vrot.slane %v2556_v58, 7  ;;  %v6249_v39 = vld [vmem:[%s8009_s2 + $0x90] sm:$0xff]  }
 0x3bd   : > { %v2655_v49 = vrot.slane %v2648_v14, 1  ;;  %v2657_v12 = vrot.slane %v2648_v14, 2  ;;  %v2672_v63 = vsel %vm2671_vm0, %v2555_v56, %v2648_v14  ;;  %v2652_v59 = vmax.f32 %v2555_v56, %v2650_v48  ;;  %2686 = vst [vmem:[#allocation3 + $0x14] sm:$0x1] %v2669_v16 }
 0x3be   : > { %v2653_v17 = vmax.f32 %v2556_v58, %v2650_v48  ;;  %v6250_v48 = vld [vmem:[%s8009_s2 + $0xd8] sm:$0xff]  }
 0x3bf   : > { %v2674_v1 = vsel %vm2673_vm1, %v2672_v63, %v2655_v49  ;;  %v2660_v6 = vrot.slane %v2652_v59, 3 }
 0x3c0   : > { %v2676_v2 = vsel %vm2675_vm2, %v2674_v1, %v2657_v12  ;;  %v2663_v51 = vrot.slane %v2653_v17, 4  ;;  %v2665_v30 = vrot.slane %v2653_v17, 5  ;;  %v2667_v20 = vrot.slane %v2653_v17, 6 }
 0x3c1   : > { %v5742_v25 = vpop.f32.mrb[40].mxu1  ;;  %v2678_v24 = vsel %vm2677_vm3, %v2676_v2, %v2660_v6  ;;  %v2687_v23 = vld [vmem:[#allocation2 + $0x12] sm:$0xff] }
 0x3c2   : > { %v2485_v27 = vmul.f32 %v5742_v25, %v7280_v13  ;;  %v2346_v28 = vpop.f32.mrb[41].mxu1  ;;  %v2680_v5 = vsel %vm2679_vm4, %v2678_v24, %v2663_v51  ;;  %v6251_v51 = vld [vmem:[%s8009_s2 + $0x98] sm:$0xff]   ;;  %v6252_v24 = vld [vmem:[%s8009_s2 + $0xe0] sm:$0xff]  }
 0x3c3   : > { %v2483_v61 = vmul.f32 %v7280_v13, %v2346_v28  ;;  %v5743_v22 = vpop.f32.mrb[42].mxu1  ;;  %v2682_v36 = vsel %vm2681_vm5, %v2680_v5, %v2665_v30 }
 0x3c4   : > { %v2525_v29 = vadd.f32 %v7285_v18, %v2485_v27  ;;  %v2486_v31 = vmul.f32 %v5743_v22, %v7280_v13  ;;  %v2349_v26 = vpop.f32.mrb[43].mxu1  ;;  %v2684_v15 = vsel %vm2683_vm6, %v2682_v36, %v2667_v20 }
 0x3c5   : > { %v2523_v47 = vadd.f32 %v7285_v18, %v2483_v61  ;;  %v2484_v32 = vmul.f32 %v7280_v13, %v2349_v26  ;;  %2685 = vst [vmem:[#allocation3 + $0xc] sm:$0xff] %v2684_v15  ;;  %v6253_v26 = vld [vmem:[%s8009_s2 + $0xa0] sm:$0xff]  }
 0x3c6   : > { %v2561_v33 = vmax.f32 %v2525_v29, 0.0  ;;  %v2526_v38 = vadd.f32 %v7285_v18, %v2486_v31 }
 0x3c7   : > { %v2559_v50 = vmax.f32 %v2523_v47, 0.0  ;;  %v2524_v21 = vadd.f32 %v7285_v18, %v2484_v32 }
 0x3c8   : > { %2597 = vst [vmem:[#allocation2 + $0x30] sm:$0xff] %v2561_v33  ;;  %v2562_v35 = vmax.f32 %v2526_v38, 0.0  ;;  %v6254_v33 = vld [vmem:[%s8009_s2 + $0xe8] sm:$0xff]  }
 0x3c9   : > { %2595 = vst [vmem:[#allocation2 + $0x20] sm:$0xff] %v2559_v50  ;;  %v2560_v8 = vmax.f32 %v2524_v21, 0.0 }
 0x3ca   : > { %2598 = vst [vmem:[#allocation2 + $0x38] sm:$0xff] %v2562_v35 }
 0x3cb   : > { %2596 = vst [vmem:[#allocation2 + $0x28] sm:$0xff] %v2560_v8 }
 0x3cc   : > { %v3032_v11 = vld [vmem:[#allocation3 + $0x9] sm:$0xff] }
 0x3cd   : > { %v3012_v7 = vld [vmem:[#allocation3 + $0x8] sm:$0xff]  ;;  %v3044_v41 = vpack.c.bf16 %v3032_v11, %v3031_v40 }
 0x3ce   : > { %v3024_v42 = vpack.c.bf16 %v3012_v7, %v6343_v55  ;;  %v6248_v55 = vld [vmem:[%s8009_s2 + $0xd0] sm:$0xff]   ;;  %v6255_v11 = vld [vmem:[%s8009_s2 + $0xa8] sm:$0xff]  }
 0x3cf   : > { %3790 = vmatprep.mubr.bf16.mxu1 %v3044_v41 }
 0x3d0   : > { %3791 = vmatmul.mubr.bf16.vlgmr.msra.gmra.mrb[72].mxu1 %v3024_v42  ;;  %v2688_v45 = vld [vmem:[#allocation2 + $0x1a] sm:$0xff] }
 0x3d1   : > { %v5746_v34 = vpop.f32.mrb[44].mxu1  ;;  %5436 = vmatpush3.bf16.msra.mxu1 %v6245_v43  ;;  %v2728_v27 = vld [vmem:[#allocation2 + $0x36] sm:$0xff] }
 0x3d2   : > { %v2689_v44 = vld [vmem:[#allocation2 + $0x24] sm:$0xff]  ;;  %v2690_v19 = vld [vmem:[#allocation2 + $0x2c] sm:$0xff]  ;;  %v2362_v53 = vpop.f32.mrb[45].mxu1  ;;  %5437 = vmatprep.subr.bf16.mxu1 %v6246_v62  ;;  %v2489_v12 = vmul.f32 %v5746_v34, %v7280_v13 }
 0x3d3   : > { %v2691_v52 = vmax.f32 %v2687_v23, %v2689_v44  ;;  %v2692_v60 = vmax.f32 %v2688_v45, %v2690_v19  ;;  %v2487_v37 = vmul.f32 %v7280_v13, %v2362_v53  ;;  %v5747_v9 = vpop.f32.mrb[46].mxu1  ;;  %v6256_v62 = vld [vmem:[%s8009_s2 + $0xf0] sm:$0xff]  }
 0x3d4   : > { %v2490_v0 = vmul.f32 %v5747_v9, %v7280_v13  ;;  %v2365_v10 = vpop.f32.mrb[47].mxu1  ;;  %v2529_v5 = vadd.f32 %v7285_v18, %v2489_v12 }
 0x3d5   : > { %v2694_v4 = vrot.slane %v2691_v52, 1  ;;  %v2698_v56 = vrot.slane %v2692_v60, 1  ;;  %v2527_v3 = vadd.f32 %v7285_v18, %v2487_v37  ;;  %v2488_v54 = vmul.f32 %v7280_v13, %v2365_v10  ;;  %5438 = vmatpush3.bf16.msra.mxu1 %v6247_v57  ;;  %v6257_v10 = vld [vmem:[%s8009_s2 + $0xb0] sm:$0xff]  }
 0x3d6   : > { %v2530_v58 = vadd.f32 %v7285_v18, %v2490_v0  ;;  %v2717_v14 = vrot.slane %v2692_v60, 7  ;;  %5439 = vmatprep.subr.bf16.mxu1 %v6248_v55  ;;  %v2565_v38 = vmax.f32 %v2529_v5, 0.0 }
 0x3d7   : > { %v2696_v16 = vmax.f32 %v2691_v52, %v2694_v4  ;;  %v2700_v49 = vmax.f32 %v2691_v52, %v2698_v56  ;;  %v2563_v63 = vmax.f32 %v2527_v3, 0.0  ;;  %v2701_v59 = vmax.f32 %v2692_v60, %v2698_v56  ;;  %v6258_v3 = vld [vmem:[%s8009_s2 + $0xf8] sm:$0xff]  }
 0x3d8   : > { %v2566_v17 = vmax.f32 %v2530_v58, 0.0  ;;  %v2528_v1 = vadd.f32 %v7285_v18, %v2488_v54  ;;  %2727 = vst [vmem:[#allocation3 + $0x1f] sm:$0x1] %v2717_v14 }
 0x3d9   : > { %v2703_v6 = vrot.slane %v2696_v16, 1  ;;  %v2705_v2 = vrot.slane %v2696_v16, 2  ;;  %2599 = vst [vmem:[#allocation2 + $0x40] sm:$0xff] %v2563_v63  ;;  %5440 = vmatpush3.bf16.msra.mxu1 %v6249_v39  ;;  %v2719_v30 = vsel %vm2671_vm0, %v2691_v52, %v2696_v16  ;;  %v2708_v28 = vrot.slane %v2700_v49, 3 }
 0x3da   : > { %2602 = vst [vmem:[#allocation2 + $0x58] sm:$0xff] %v2566_v17  ;;  %v2564_v25 = vmax.f32 %v2528_v1, 0.0  ;;  %5441 = vmatprep.subr.bf16.mxu1 %v6250_v48  ;;  %v2711_v61 = vrot.slane %v2701_v59, 4  ;;  %v2713_v29 = vrot.slane %v2701_v59, 5  ;;  %v2715_v47 = vrot.slane %v2701_v59, 6 }
 0x3db   : > { %v2720_v20 = vsel %vm2673_vm1, %v2719_v30, %v2703_v6 }
 0x3dc   : > { %v2732_v22 = vmax.f32 %v2728_v27, %v2564_v25  ;;  %v2721_v36 = vsel %vm2675_vm2, %v2720_v20, %v2705_v2  ;;  %v6260_v27 = vld [vmem:[%s8009_s2 + $0x140] sm:$0xff]  }
 0x3dd   : > { %v2722_v31 = vsel %vm2677_vm3, %v2721_v36, %v2708_v28  ;;  %5442 = vmatpush3.bf16.msra.mxu1 %v6251_v51  ;;  %v6259_v51 = vld [vmem:[%s8009_s2 + $0xb8] sm:$0xff]  }
 0x3de   : > { %v2735_v15 = vrot.slane %v2732_v22, 1  ;;  %v2723_v32 = vsel %vm2679_vm4, %v2722_v31, %v2711_v61  ;;  %5443 = vmatprep.subr.bf16.mxu1 %v6252_v24 }
 0x3df   : > { %v2724_v50 = vsel %vm2681_vm5, %v2723_v32, %v2713_v29 }
 0x3e0   : > { %v2729_v21 = vld [vmem:[#allocation2 + $0x3e] sm:$0xff]  ;;  %v2737_v35 = vmax.f32 %v2732_v22, %v2735_v15  ;;  %v2725_v8 = vsel %vm2683_vm6, %v2724_v50, %v2715_v47 }
 0x3e1   : > { %v2733_v46 = vmax.f32 %v2729_v21, %v2565_v38  ;;  %v5750_v40 = vpop.f32.mrb[48].mxu1  ;;  %2726 = vst [vmem:[#allocation3 + $0x17] sm:$0xff] %v2725_v8  ;;  %5444 = vmatpush3.bf16.msra.mxu1 %v6253_v26 }
 0x3e2   : > { %v2744_v7 = vrot.slane %v2737_v35, 1  ;;  %v2760_v41 = vsel %vm2671_vm0, %v2732_v22, %v2737_v35  ;;  %v2493_v42 = vmul.f32 %v5750_v40, %v7280_v13  ;;  %v2378_v43 = vpop.f32.mrb[49].mxu1  ;;  %5445 = vmatprep.subr.bf16.mxu1 %v6254_v33  ;;  %v2746_v45 = vrot.slane %v2737_v35, 2 }
 0x3e3   : > { %v2739_v23 = vrot.slane %v2733_v46, 1  ;;  %v2491_v34 = vmul.f32 %v7280_v13, %v2378_v43  ;;  %v5751_v57 = vpop.f32.mrb[50].mxu1  ;;  %v2758_v55 = vrot.slane %v2733_v46, 7 }
 0x3e4   : > { %v2761_v44 = vsel %vm2673_vm1, %v2760_v41, %v2744_v7  ;;  %v2533_v19 = vadd.f32 %v7285_v18, %v2493_v42  ;;  %v2494_v53 = vmul.f32 %v5751_v57, %v7280_v13  ;;  %v2381_v52 = vpop.f32.mrb[51].mxu1 }
 0x3e5   : > { %v2742_v60 = vmax.f32 %v2733_v46, %v2739_v23  ;;  %v2741_v37 = vmax.f32 %v2732_v22, %v2739_v23  ;;  %v2531_v9 = vadd.f32 %v7285_v18, %v2491_v34  ;;  %v2492_v0 = vmul.f32 %v7280_v13, %v2381_v52  ;;  %2768 = vst [vmem:[#allocation3 + $0x2a] sm:$0x1] %v2758_v55 }
 0x3e6   : > { %5446 = vmatpush3.bf16.msra.mxu1 %v6255_v11  ;;  %v2569_v4 = vmax.f32 %v2533_v19, 0.0  ;;  %v2534_v56 = vadd.f32 %v7285_v18, %v2494_v53  ;;  %v2762_v63 = vsel %vm2675_vm2, %v2761_v44, %v2746_v45 }
 0x3e7   : > { %5447 = vmatprep.subr.bf16.mxu1 %v6256_v62  ;;  %v2752_v54 = vrot.slane %v2742_v60, 4  ;;  %v2749_v39 = vrot.slane %v2741_v37, 3  ;;  %v2567_v58 = vmax.f32 %v2531_v9, 0.0  ;;  %v2532_v14 = vadd.f32 %v7285_v18, %v2492_v0 }
 0x3e8   : > { %2605 = vst [vmem:[#allocation2 + $0x70] sm:$0xff] %v2569_v4  ;;  %v2570_v48 = vmax.f32 %v2534_v56, 0.0  ;;  %v3033_v16 = vld [vmem:[#allocation3 + $0x11] sm:$0xff]  ;;  %v3034_v49 = vld [vmem:[#allocation3 + $0x19] sm:$0xff]  ;;  %v2754_v6 = vrot.slane %v2742_v60, 5  ;;  %v2756_v25 = vrot.slane %v2742_v60, 6 }
 0x3e9   : > { %v3013_v12 = vld [vmem:[#allocation3 + $0x10] sm:$0xff]  ;;  %2603 = vst [vmem:[#allocation2 + $0x60] sm:$0xff] %v2567_v58  ;;  %v2568_v59 = vmax.f32 %v2532_v14, 0.0  ;;  %v3045_v17 = vpack.c.bf16 %v3034_v49, %v3033_v16  ;;  %v7382_v1 = vld [vmem:[#allocation3 + $0x18] sm:$0xff]  ;;  %v2763_v2 = vsel %vm2677_vm3, %v2762_v63, %v2749_v39 }
 0x3ea   : > { %5448 = vmatpush3.bf16.msra.mxu1 %v6257_v10  ;;  %2606 = vst [vmem:[#allocation2 + $0x78] sm:$0xff] %v2570_v48  ;;  %v3025_v30 = vpack.c.bf16 %v7382_v1, %v3013_v12  ;;  %v2764_v24 = vsel %vm2679_vm4, %v2763_v2, %v2752_v54 }
 0x3eb   : > { %5449 = vmatprep.subr.bf16.mxu1 %v6258_v3  ;;  %2604 = vst [vmem:[#allocation2 + $0x68] sm:$0xff] %v2568_v59  ;;  %3798 = vmatprep.mubr.bf16.mxu1 %v3045_v17  ;;  %v2765_v28 = vsel %vm2681_vm5, %v2764_v24, %v2754_v6 }
 0x3ec   : > { %3799 = vmatmul.mubr.bf16.gmra.mrb[76].mxu1 %v3025_v30  ;;  %v7395_v20 = vsel %vm2683_vm6, %v2765_v28, %v2756_v25 }
 0x3ed   : > { %2767 = vst [vmem:[#allocation3 + $0x22] sm:$0xff] %v7395_v20 }
 0x3ee   : > { %5450 = vmatpush3.bf16.msra.mxu1 %v6259_v51 }
 0x3ef   : > { %5493 = vmatprep.subr.bf16.mxu1 %v6260_v27 }
 0x3f0   : > { %v2769_v22 = vld [vmem:[#allocation2 + $0x5a] sm:$0xff] }
 0x3f1   : > { %v2772_v5 = vld [vmem:[#allocation2 + $0x74] sm:$0xff]  ;;  %v5754_v61 = vpop.f32.mrb[52].mxu1 }
 0x3f2   : > { %v2770_v36 = vld [vmem:[#allocation2 + $0x62] sm:$0xff]  ;;  %v2771_v29 = vld [vmem:[#allocation2 + $0x6c] sm:$0xff]  ;;  %v2497_v31 = vmul.f32 %v5754_v61, %v7280_v13  ;;  %v2394_v26 = vpop.f32.mrb[53].mxu1 }
 0x3f3   : > { %v2773_v15 = vmax.f32 %v2769_v22, %v2771_v29  ;;  %v2774_v47 = vmax.f32 %v2770_v36, %v2772_v5  ;;  %v2495_v32 = vmul.f32 %v7280_v13, %v2394_v26  ;;  %v5755_v33 = vpop.f32.mrb[54].mxu1 }
 0x3f4   : > { %v2537_v38 = vadd.f32 %v7285_v18, %v2497_v31  ;;  %v2498_v50 = vmul.f32 %v5755_v33, %v7280_v13  ;;  %v2397_v21 = vpop.f32.mrb[55].mxu1  ;;  %v7402_v35 = vld [vmem:[#allocation3 + $0x20] sm:$0xff] }
 0x3f5   : > { %v2776_v8 = vrot.slane %v2773_v15, 1  ;;  %v2780_v46 = vrot.slane %v2774_v47, 1  ;;  %v2535_v40 = vadd.f32 %v7285_v18, %v2495_v32  ;;  %v2496_v11 = vmul.f32 %v7280_v13, %v2397_v21 }
 0x3f6   : > { %v2573_v7 = vmax.f32 %v2537_v38, 0.0  ;;  %v2538_v41 = vadd.f32 %v7285_v18, %v2498_v50  ;;  %v3175_v42 = vpack.c.bf16 %v7402_v35, %v7382_v1  ;;  %v2799_v43 = vrot.slane %v2774_v47, 7 }
 0x3f7   : > { %v2778_v62 = vmax.f32 %v2773_v15, %v2776_v8  ;;  %v2782_v23 = vmax.f32 %v2773_v15, %v2780_v46  ;;  %v2571_v34 = vmax.f32 %v2535_v40, 0.0  ;;  %v2783_v57 = vmax.f32 %v2774_v47, %v2780_v46 }
 0x3f8   : > { %v2574_v55 = vmax.f32 %v2538_v41, 0.0  ;;  %v2536_v45 = vadd.f32 %v7285_v18, %v2496_v11  ;;  %2809 = vst [vmem:[#allocation3 + $0x35] sm:$0x1] %v2799_v43 }
 0x3f9   : > { %v2785_v44 = vrot.slane %v2778_v62, 1  ;;  %v2787_v19 = vrot.slane %v2778_v62, 2  ;;  %2607 = vst [vmem:[#allocation2 + $0x80] sm:$0xff] %v2571_v34  ;;  %v2801_v53 = vsel %vm2671_vm0, %v2773_v15, %v2778_v62  ;;  %v2790_v60 = vrot.slane %v2782_v23, 3  ;;  %v3035_v15 = vld [vmem:[#allocation3 + $0x21] sm:$0xff] }
 0x3fa   : > { %v2572_v52 = vmax.f32 %v2536_v45, 0.0  ;;  %v2793_v9 = vrot.slane %v2783_v57, 4  ;;  %v2795_v10 = vrot.slane %v2783_v57, 5  ;;  %v2797_v56 = vrot.slane %v2783_v57, 6 }
 0x3fb   : > { %v2802_v37 = vsel %vm2673_vm1, %v2801_v53, %v2785_v44 }
 0x3fc   : > { %2608 = vst [vmem:[#allocation2 + $0x88] sm:$0xff] %v2572_v52  ;;  %v2803_v0 = vsel %vm2675_vm2, %v2802_v37, %v2787_v19 }
 0x3fd   : > { %v2804_v4 = vsel %vm2677_vm3, %v2803_v0, %v2790_v60 }
 0x3fe   : > { %v2805_v3 = vsel %vm2679_vm4, %v2804_v4, %v2793_v9 }
 0x3ff   : > { %v2806_v54 = vsel %vm2681_vm5, %v2805_v3, %v2795_v10 }
 0x400   : > { %v2810_v39 = vld [vmem:[#allocation2 + $0x7e] sm:$0xff]  ;;  %v7417_v58 = vsel %vm2683_vm6, %v2806_v54, %v2797_v56 }
 0x401   : > { %v2814_v14 = vmax.f32 %v2810_v39, %v2573_v7  ;;  %v5758_v48 = vpop.f32.mrb[56].mxu1  ;;  %2808 = vst [vmem:[#allocation3 + $0x2d] sm:$0xff] %v7417_v58 }
 0x402   : > { %v2501_v16 = vmul.f32 %v5758_v48, %v7280_v13  ;;  %v2410_v49 = vpop.f32.mrb[57].mxu1 }
 0x403   : > { %v2817_v12 = vrot.slane %v2814_v14, 1  ;;  %v2811_v63 = vld [vmem:[#allocation2 + $0x86] sm:$0xff]  ;;  %v2499_v59 = vmul.f32 %v7280_v13, %v2410_v49  ;;  %v5759_v17 = vpop.f32.mrb[58].mxu1 }
 0x404   : > { %v2815_v6 = vmax.f32 %v2811_v63, %v2574_v55  ;;  %v2541_v2 = vadd.f32 %v7285_v18, %v2501_v16  ;;  %v2502_v51 = vmul.f32 %v5759_v17, %v7280_v13  ;;  %v2413_v30 = vpop.f32.mrb[59].mxu1 }
 0x405   : > { %v2819_v25 = vmax.f32 %v2814_v14, %v2817_v12  ;;  %v2539_v24 = vadd.f32 %v7285_v18, %v2499_v59  ;;  %v2500_v27 = vmul.f32 %v7280_v13, %v2413_v30 }
 0x406   : > { %v2821_v28 = vrot.slane %v2815_v6, 1  ;;  %v2577_v5 = vmax.f32 %v2541_v2, 0.0  ;;  %v2542_v61 = vadd.f32 %v7285_v18, %v2502_v51  ;;  %v2840_v22 = vrot.slane %v2815_v6, 7 }
 0x407   : > { %v2826_v36 = vrot.slane %v2819_v25, 1  ;;  %v2828_v29 = vrot.slane %v2819_v25, 2  ;;  %v2842_v31 = vsel %vm2671_vm0, %v2814_v14, %v2819_v25  ;;  %v2575_v26 = vmax.f32 %v2539_v24, 0.0 }
 0x408   : > { %v2823_v47 = vmax.f32 %v2814_v14, %v2821_v28  ;;  %v2824_v32 = vmax.f32 %v2815_v6, %v2821_v28  ;;  %2613 = vst [vmem:[#allocation2 + $0xb0] sm:$0xff] %v2577_v5  ;;  %v2578_v33 = vmax.f32 %v2542_v61, 0.0  ;;  %v2540_v38 = vadd.f32 %v7285_v18, %v2500_v27  ;;  %v3036_v50 = vld [vmem:[#allocation3 + $0x29] sm:$0xff]  ;;  %2850 = vst [vmem:[#allocation3 + $0x40] sm:$0x1] %v2840_v22 }
 0x409   : > { %v7429_v21 = vld [vmem:[#allocation3 + $0x28] sm:$0xff]  ;;  %v7431_v8 = vld [vmem:[#allocation3 + $0x30] sm:$0xff]  ;;  %v2843_v46 = vsel %vm2673_vm1, %v2842_v31, %v2826_v36  ;;  %2611 = vst [vmem:[#allocation2 + $0xa0] sm:$0xff] %v2575_v26  ;;  %v3046_v40 = vpack.c.bf16 %v3036_v50, %v3035_v15 }
 0x40a   : > { %v3026_v11 = vpack.c.bf16 %v7429_v21, %v7402_v35  ;;  %v3176_v7 = vpack.c.bf16 %v7431_v8, %v7429_v21  ;;  %v2831_v41 = vrot.slane %v2823_v47, 3  ;;  %v2834_v43 = vrot.slane %v2824_v32, 4  ;;  %2614 = vst [vmem:[#allocation2 + $0xb8] sm:$0xff] %v2578_v33 }
 0x40b   : > { %v2576_v62 = vmax.f32 %v2540_v38, 0.0  ;;  %3806 = vmatprep.mubr.bf16.mxu1 %v3046_v40  ;;  %v2844_v23 = vsel %vm2675_vm2, %v2843_v46, %v2828_v29  ;;  %v2836_v34 = vrot.slane %v2824_v32, 5  ;;  %v2838_v55 = vrot.slane %v2824_v32, 6 }
 0x40c   : > { %3807 = vmatmul.mubr.bf16.gmra.mrb[80].mxu1 %v3026_v11  ;;  %v2845_v57 = vsel %vm2677_vm3, %v2844_v23, %v2831_v41 }
 0x40d   : > { %2612 = vst [vmem:[#allocation2 + $0xa8] sm:$0xff] %v2576_v62  ;;  %v2846_v45 = vsel %vm2679_vm4, %v2845_v57, %v2834_v43 }
 0x40e   : > { %v2847_v44 = vsel %vm2681_vm5, %v2846_v45, %v2836_v34 }
 0x40f   : > { %v7443_v19 = vsel %vm2683_vm6, %v2847_v44, %v2838_v55 }
 0x410   : > { %2849 = vst [vmem:[#allocation3 + $0x38] sm:$0xff] %v7443_v19  ;;  %v3027_v30 = vpack.c.bf16 %v7443_v19, %v7431_v8 }
 0x411   : > { %v2853_v53 = vld [vmem:[#allocation2 + $0xb4] sm:$0xff]  ;;  %v5762_v52 = vpop.f32.mrb[60].mxu1 }
 0x412   : > { %v2505_v60 = vmul.f32 %v5762_v52, %v7280_v13  ;;  %v2426_v37 = vpop.f32.mrb[61].mxu1 }
 0x413   : > { %v2503_v0 = vmul.f32 %v7280_v13, %v2426_v37  ;;  %v5763_v10 = vpop.f32.mrb[62].mxu1 }
 0x414   : > { %v2851_v9 = vld [vmem:[#allocation2 + $0xa2] sm:$0xff]  ;;  %v2545_v56 = vadd.f32 %v7285_v18, %v2505_v60  ;;  %v2506_v3 = vmul.f32 %v5763_v10, %v7280_v13  ;;  %v2429_v54 = vpop.f32.mrb[63].mxu1  ;;  %v2852_v24 = vld [vmem:[#allocation2 + $0xaa] sm:$0xff] }
 0x415   : > { %v2855_v4 = vmax.f32 %v2851_v9, %v2853_v53  ;;  %v2543_v39 = vadd.f32 %v7285_v18, %v2503_v0  ;;  %v2504_v14 = vmul.f32 %v7280_v13, %v2429_v54 }
 0x416   : > { %v2581_v48 = vmax.f32 %v2545_v56, 0.0  ;;  %v2546_v16 = vadd.f32 %v7285_v18, %v2506_v3 }
 0x417   : > { %v2579_v49 = vmax.f32 %v2543_v39, 0.0  ;;  %v2544_v12 = vadd.f32 %v7285_v18, %v2504_v14  ;;  %v3037_v63 = vld [vmem:[#allocation3 + $0x31] sm:$0xff]  ;;  %v3038_v59 = vld [vmem:[#allocation3 + $0x39] sm:$0xff]  ;;  %v2858_v17 = vrot.slane %v2855_v4, 1 }
 0x418   : > { %2617 = vst [vmem:[#allocation2 + $0xd0] sm:$0xff] %v2581_v48  ;;  %v2582_v6 = vmax.f32 %v2546_v16, 0.0  ;;  %v3047_v2 = vpack.c.bf16 %v3038_v59, %v3037_v63 }
 0x419   : > { %2615 = vst [vmem:[#allocation2 + $0xc0] sm:$0xff] %v2579_v49  ;;  %v2580_v51 = vmax.f32 %v2544_v12, 0.0  ;;  %v2860_v25 = vmax.f32 %v2855_v4, %v2858_v17 }
 0x41a   : > { %3814 = vmatprep.mubr.bf16.mxu1 %v3047_v2 }
 0x41b   : > { %2616 = vst [vmem:[#allocation2 + $0xc8] sm:$0xff] %v2580_v51  ;;  %3815 = vmatmul.mubr.bf16.gmra.mrb[84].mxu1 %v3027_v30  ;;  %v2867_v27 = vrot.slane %v2860_v25, 1  ;;  %v2883_v5 = vsel %vm2671_vm0, %v2855_v4, %v2860_v25  ;;  %v2869_v38 = vrot.slane %v2860_v25, 2 }
 0x41d   : > { %v2884_v50 = vsel %vm2673_vm1, %v2883_v5, %v2867_v27 }
 0x41e   : > { %v2885_v9 = vsel %vm2675_vm2, %v2884_v50, %v2869_v38 }
 0x420   : > { %v2854_v28 = vld [vmem:[#allocation2 + $0xbc] sm:$0xff] }
 0x421   : > { %v2856_v61 = vmax.f32 %v2852_v24, %v2854_v28  ;;  %v5766_v22 = vpop.f32.mrb[64].mxu1 }
 0x422   : > { %v2892_v36 = vld [vmem:[#allocation2 + $0xc6] sm:$0xff]  ;;  %v2509_v29 = vmul.f32 %v5766_v22, %v7280_v13  ;;  %v2442_v31 = vpop.f32.mrb[65].mxu1  ;;  %v2893_v10 = vld [vmem:[#allocation2 + $0xce] sm:$0xff] }
 0x423   : > { %v2862_v26 = vrot.slane %v2856_v61, 1  ;;  %v2896_v15 = vmax.f32 %v2892_v36, %v2582_v6  ;;  %v2507_v47 = vmul.f32 %v7280_v13, %v2442_v31  ;;  %v5767_v32 = vpop.f32.mrb[66].mxu1  ;;  %v2881_v33 = vrot.slane %v2856_v61, 7 }
 0x424   : > { %v2549_v46 = vadd.f32 %v7285_v18, %v2509_v29  ;;  %v2510_v40 = vmul.f32 %v5767_v32, %v7280_v13  ;;  %v2445_v11 = vpop.f32.mrb[67].mxu1 }
 0x425   : > { %v2864_v41 = vmax.f32 %v2855_v4, %v2862_v26  ;;  %v2865_v43 = vmax.f32 %v2856_v61, %v2862_v26  ;;  %v2899_v62 = vrot.slane %v2896_v15, 1  ;;  %v2547_v23 = vadd.f32 %v7285_v18, %v2507_v47  ;;  %2891 = vst [vmem:[#allocation3 + $0x4b] sm:$0x1] %v2881_v33 }
 0x426   : > { %v2585_v34 = vmax.f32 %v2549_v46, 0.0  ;;  %v2550_v57 = vadd.f32 %v7285_v18, %v2510_v40  ;;  %v2508_v55 = vmul.f32 %v7280_v13, %v2445_v11 }
 0x427   : > { %v2872_v45 = vrot.slane %v2864_v41, 3  ;;  %v2875_v44 = vrot.slane %v2865_v43, 4  ;;  %v2901_v53 = vmax.f32 %v2896_v15, %v2899_v62  ;;  %v2583_v52 = vmax.f32 %v2547_v23, 0.0 }
 0x428   : > { %2621 = vst [vmem:[#allocation2 + $0xf0] sm:$0xff] %v2585_v34  ;;  %v2586_v60 = vmax.f32 %v2550_v57, 0.0  ;;  %v2548_v37 = vadd.f32 %v7285_v18, %v2508_v55  ;;  %v2877_v0 = vrot.slane %v2865_v43, 5  ;;  %v2879_v4 = vrot.slane %v2865_v43, 6 }
 0x429   : > { %v2886_v56 = vsel %vm2677_vm3, %v2885_v9, %v2872_v45  ;;  %v2908_v3 = vrot.slane %v2901_v53, 1  ;;  %v2897_v54 = vmax.f32 %v2893_v10, %v2583_v52  ;;  %v2924_v48 = vsel %vm2671_vm0, %v2896_v15, %v2901_v53 }
 0x42a   : > { %2622 = vst [vmem:[#allocation2 + $0xf8] sm:$0xff] %v2586_v60  ;;  %v2584_v39 = vmax.f32 %v2548_v37, 0.0  ;;  %v2887_v14 = vsel %vm2679_vm4, %v2886_v56, %v2875_v44  ;;  %v2910_v59 = vrot.slane %v2901_v53, 2 }
 0x42b   : > { %v2888_v16 = vsel %vm2681_vm5, %v2887_v14, %v2877_v0  ;;  %v2903_v49 = vrot.slane %v2897_v54, 1  ;;  %v2922_v63 = vrot.slane %v2897_v54, 7  ;;  %v2925_v17 = vsel %vm2673_vm1, %v2924_v48, %v2908_v3 }
 0x42c   : > { %2620 = vst [vmem:[#allocation2 + $0xe8] sm:$0xff] %v2584_v39  ;;  %v7472_v12 = vsel %vm2683_vm6, %v2888_v16, %v2879_v4  ;;  %v2926_v24 = vsel %vm2675_vm2, %v2925_v17, %v2910_v59 }
 0x42d   : > { %2890 = vst [vmem:[#allocation3 + $0x43] sm:$0xff] %v7472_v12  ;;  %v2905_v6 = vmax.f32 %v2896_v15, %v2903_v49  ;;  %v2906_v2 = vmax.f32 %v2897_v54, %v2903_v49  ;;  %2932 = vst [vmem:[#allocation3 + $0x56] sm:$0x1] %v2922_v63 }
 0x42f   : > { %v2913_v51 = vrot.slane %v2905_v6, 3  ;;  %v2916_v30 = vrot.slane %v2906_v2, 4  ;;  %v2918_v27 = vrot.slane %v2906_v2, 5  ;;  %v2920_v29 = vrot.slane %v2906_v2, 6 }
 0x431   : > { %v5770_v25 = vpop.f32.mrb[68].mxu1  ;;  %v2927_v61 = vsel %vm2677_vm3, %v2926_v24, %v2913_v51  ;;  %v2934_v0 = vld [vmem:[#allocation2 + $0xf2] sm:$0xff] }
 0x432   : > { %v2513_v28 = vmul.f32 %v5770_v25, %v7280_v13  ;;  %v2458_v5 = vpop.f32.mrb[69].mxu1  ;;  %v2928_v31 = vsel %vm2679_vm4, %v2927_v61, %v2916_v30 }
 0x433   : > { %v2511_v22 = vmul.f32 %v7280_v13, %v2458_v5  ;;  %v5771_v36 = vpop.f32.mrb[70].mxu1  ;;  %v2929_v32 = vsel %vm2681_vm5, %v2928_v31, %v2918_v27 }
 0x434   : > { %v2553_v26 = vadd.f32 %v7285_v18, %v2513_v28  ;;  %v2514_v15 = vmul.f32 %v5771_v36, %v7280_v13  ;;  %v2461_v47 = vpop.f32.mrb[71].mxu1  ;;  %v7484_v33 = vld [vmem:[#allocation3 + $0x40] sm:$0xff]  ;;  %v7489_v46 = vsel %vm2683_vm6, %v2929_v32, %v2920_v29 }
 0x435   : > { %v2551_v38 = vadd.f32 %v7285_v18, %v2511_v22  ;;  %v2512_v50 = vmul.f32 %v7280_v13, %v2461_v47  ;;  %v3177_v40 = vpack.c.bf16 %v7484_v33, %v7443_v19  ;;  %2931 = vst [vmem:[#allocation3 + $0x4e] sm:$0xff] %v7489_v46  ;;  %v3039_v13 = vld [vmem:[#allocation3 + $0x41] sm:$0xff] }
 0x436   : > { %v2589_v11 = vmax.f32 %v2553_v26, 0.0  ;;  %v2554_v41 = vadd.f32 %v7285_v18, %v2514_v15 }
 0x437   : > { %v2587_v43 = vmax.f32 %v2551_v38, 0.0  ;;  %v2552_v62 = vadd.f32 %v7285_v18, %v2512_v50  ;;  %v2933_v18 = vld [vmem:[#allocation2 + $0xea] sm:$0xff] }
 0x438   : > { %2625 = vst [vmem:[#allocation2 + $0x110] sm:$0xff] %v2589_v11  ;;  %v2590_v23 = vmax.f32 %v2554_v41, 0.0 }
 0x439   : > { %2623 = vst [vmem:[#allocation2 + $0x100] sm:$0xff] %v2587_v43  ;;  %v2588_v34 = vmax.f32 %v2552_v62, 0.0 }
 0x43a   : > { %2626 = vst [vmem:[#allocation2 + $0x118] sm:$0xff] %v2590_v23 }
 0x43b   : > { %2624 = vst [vmem:[#allocation2 + $0x108] sm:$0xff] %v2588_v34 }
 0x43c   : > { %v3040_v57 = vld [vmem:[#allocation3 + $0x49] sm:$0xff] }
 0x43d   : > { %v7496_v55 = vld [vmem:[#allocation3 + $0x48] sm:$0xff]  ;;  %v3048_v45 = vpack.c.bf16 %v3040_v57, %v3039_v13  ;;  %v7500_v53 = vld [vmem:[#allocation3 + $0x50] sm:$0xff] }
 0x43e   : > { %v3028_v44 = vpack.c.bf16 %v7496_v55, %v7484_v33  ;;  %v3178_v52 = vpack.c.bf16 %v7500_v53, %v7496_v55  ;;  %v3041_v57 = vld [vmem:[#allocation3 + $0x51] sm:$0xff] }
 0x43f   : > { %3822 = vmatprep.mubr.bf16.mxu1 %v3048_v45 }
 0x440   : > { %v2935_v60 = vld [vmem:[#allocation2 + $0xfc] sm:$0xff]  ;;  %3823 = vmatmul.mubr.bf16.gmra.mrb[88].mxu1 %v3028_v44 }
 0x441   : > { %v2937_v37 = vmax.f32 %v2933_v18, %v2935_v60  ;;  %v2975_v9 = vld [vmem:[#allocation2 + $0x116] sm:$0xff] }
 0x442   : > { %v2981_v10 = vrot.slane %v2975_v9, 1  ;;  %v3000_v4 = vrot.slane %v2975_v9, 7  ;;  %v2936_v56 = vld [vmem:[#allocation2 + $0x104] sm:$0xff]  ;;  %v2974_v3 = vld [vmem:[#allocation2 + $0x10e] sm:$0xff] }
 0x443   : > { %v2940_v54 = vrot.slane %v2937_v37, 1  ;;  %v2938_v39 = vmax.f32 %v2934_v0, %v2936_v56  ;;  %v2977_v14 = vrot.slane %v2974_v3, 1  ;;  %v3071_v56 = vld [vmem:[#allocation3 + $0xb] sm:$0xff] }
 0x444   : > { %3010 = vst [vmem:[#allocation3 + $0x6c] sm:$0x1] %v3000_v4  ;;  %v2984_v59 = vmax.f32 %v2975_v9, %v2981_v10  ;;  %v2983_v17 = vmax.f32 %v2974_v3, %v2981_v10  ;;  %v3072_v10 = vld [vmem:[#allocation3 + $0x13] sm:$0xff] }
 0x445   : > { %v2942_v48 = vmax.f32 %v2937_v37, %v2940_v54  ;;  %v2944_v16 = vrot.slane %v2938_v39, 1  ;;  %v2979_v49 = vmax.f32 %v2974_v3, %v2977_v14  ;;  %v2963_v63 = vrot.slane %v2938_v39, 7  ;;  %v3051_v54 = vld [vmem:[#allocation3 + $0x2] sm:$0xff] }
 0x446   : > { %v2991_v36 = vrot.slane %v2983_v17, 3  ;;  %v2994_v31 = vrot.slane %v2984_v59, 4  ;;  %v2996_v47 = vrot.slane %v2984_v59, 5  ;;  %v2998_v11 = vrot.slane %v2984_v59, 6  ;;  %v3073_v14 = vld [vmem:[#allocation3 + $0x1b] sm:$0xff]  ;;  %v6263_v17 = vld [vmem:[%s8009_s2 + $0x108] sm:$0xff]  }
 0x447   : > { %v2949_v6 = vrot.slane %v2942_v48, 1  ;;  %v2951_v2 = vrot.slane %v2942_v48, 2  ;;  %v2965_v51 = vsel %vm2671_vm0, %v2937_v37, %v2942_v48  ;;  %v2946_v30 = vmax.f32 %v2937_v37, %v2944_v16  ;;  %2973 = vst [vmem:[#allocation3 + $0x61] sm:$0x1] %v2963_v63  ;;  %v3074_v48 = vld [vmem:[#allocation3 + $0x23] sm:$0xff] }
 0x448   : > { %v2947_v25 = vmax.f32 %v2938_v39, %v2944_v16  ;;  %v2986_v24 = vrot.slane %v2979_v49, 1  ;;  %v2988_v27 = vrot.slane %v2979_v49, 2  ;;  %v3002_v28 = vsel %vm2671_vm0, %v2974_v3, %v2979_v49  ;;  %v3052_v39 = vld [vmem:[#allocation3 + $0xa] sm:$0xff]  ;;  %v6261_v16 = vld [vmem:[%s8009_s2 + $0x100] sm:$0xff]  }
 0x449   : > { %v2966_v5 = vsel %vm2673_vm1, %v2965_v51, %v2949_v6  ;;  %v2954_v61 = vrot.slane %v2946_v30, 3  ;;  %v3084_v3 = vpack.c.bf16 %v3072_v10, %v3071_v56  ;;  %v3064_v49 = vpack.c.bf16 %v3052_v39, %v3051_v54  ;;  %v6262_v63 = vld [vmem:[%s8009_s2 + $0x148] sm:$0xff]   ;;  %v6264_v6 = vld [vmem:[%s8009_s2 + $0x150] sm:$0xff]   ;;  %v3054_v51 = vld [vmem:[#allocation3 + $0x1a] sm:$0xff] }
 0x44a   : > { %v2957_v22 = vrot.slane %v2947_v25, 4  ;;  %v3003_v29 = vsel %vm2673_vm1, %v3002_v28, %v2986_v24  ;;  %v2967_v15 = vsel %vm2675_vm2, %v2966_v5, %v2951_v2  ;;  %v2959_v32 = vrot.slane %v2947_v25, 5  ;;  %v3053_v2 = vld [vmem:[#allocation3 + $0x12] sm:$0xff] }
 0x44b   : > { %v3004_v26 = vsel %vm2675_vm2, %v3003_v29, %v2988_v27  ;;  %v2968_v50 = vsel %vm2677_vm3, %v2967_v15, %v2954_v61  ;;  %v2961_v41 = vrot.slane %v2947_v25, 6  ;;  %v3085_v59 = vpack.c.bf16 %v3074_v48, %v3073_v14  ;;  %v3076_v30 = vld [vmem:[#allocation3 + $0x33] sm:$0xff]  ;;  %v3075_v27 = vld [vmem:[#allocation3 + $0x2b] sm:$0xff]  ;;  %v6269_v29 = vld [vmem:[%s8009_s2 + $0x120] sm:$0xff]  }
 0x44c   : > { %v3005_v38 = vsel %vm2677_vm3, %v3004_v26, %v2991_v36  ;;  %v2969_v43 = vsel %vm2679_vm4, %v2968_v50, %v2957_v22  ;;  %v6265_v25 = vld [vmem:[%s8009_s2 + $0x110] sm:$0xff]   ;;  %v3065_v24 = vpack.c.bf16 %v3054_v51, %v3053_v2  ;;  %v6266_v28 = vld [vmem:[%s8009_s2 + $0x158] sm:$0xff]   ;;  %v3086_v5 = vpack.c.bf16 %v3076_v30, %v3075_v27  ;;  %v6268_v22 = vld [vmem:[%s8009_s2 + $0x160] sm:$0xff]  }
 0x44d   : > { %v3006_v62 = vsel %vm2679_vm4, %v3005_v38, %v2994_v31  ;;  %v2970_v23 = vsel %vm2681_vm5, %v2969_v43, %v2959_v32  ;;  %v6267_v61 = vld [vmem:[%s8009_s2 + $0x118] sm:$0xff]   ;;  %v3056_v36 = vld [vmem:[#allocation3 + $0x2a] sm:$0xff]  ;;  %v6277_v2 = vld [vmem:[%s8009_s2 + $0x180] sm:$0xff]  }
 0x44e   : > { %v3007_v34 = vsel %vm2681_vm5, %v3006_v62, %v2996_v47  ;;  %v2971_v13 = vsel %vm2683_vm6, %v2970_v23, %v2961_v41  ;;  %v3043_v18 = vld [vmem:[#allocation3 + $0x61] sm:$0x7]  ;;  %v3066_v31 = vpack.c.bf16 %v3056_v36, %v7395_v20  ;;  %v6270_v15 = vld [vmem:[%s8009_s2 + $0x168] sm:$0xff]   ;;  %v6272_v20 = vld [vmem:[%s8009_s2 + $0x170] sm:$0xff]  }
 0x44f   : > { %v7518_v45 = vsel %vm2683_vm6, %v3007_v34, %v2998_v11  ;;  %2972 = vst [vmem:[#allocation3 + $0x59] sm:$0xff] %v2971_v13  ;;  %v3049_v44 = vpack.c.bf16 %v2971_v13, %v3041_v57  ;;  %v3050_v9 = vpack.c.bf16 %v3043_v18, %v3043_v18  ;;  %v3077_v26 = vld [vmem:[#allocation3 + $0x3b] sm:$0xff]  ;;  %v6271_v32 = vld [vmem:[%s8009_s2 + $0x128] sm:$0xff]   ;;  %v3057_v38 = vld [vmem:[#allocation3 + $0x32] sm:$0xff] }
 0x450   : > { %3009 = vst [vmem:[#allocation3 + $0x64] sm:$0xff] %v7518_v45  ;;  %v3087_v47 = vpack.c.bf16 %v7472_v12, %v3077_v26  ;;  %v3058_v50 = vld [vmem:[#allocation3 + $0x3a] sm:$0xff]  ;;  %v6273_v12 = vld [vmem:[%s8009_s2 + $0x130] sm:$0xff]   ;;  %v6278_v30 = vld [vmem:[%s8009_s2 + $0x1c8] sm:$0xff]  }
 0x451   : > { %3830 = vmatprep.mubr.bf16.mxu1 %v3049_v44  ;;  %v3067_v41 = vpack.c.bf16 %v3058_v50, %v3057_v38  ;;  %v3079_v43 = vld [vmem:[#allocation3 + $0x4b] sm:$0xff]  ;;  %v6274_v62 = vld [vmem:[%s8009_s2 + $0x178] sm:$0xff]   ;;  %v6276_v13 = vld [vmem:[%s8009_s2 + $0x1c0] sm:$0xff]  }
 0x452   : > { %v6275_v34 = vld [vmem:[%s8009_s2 + $0x138] sm:$0xff]   ;;  %v3060_v57 = vld [vmem:[#allocation3 + $0x4a] sm:$0xff] }
 0x453   : > { %v3112_v14 = vld [vmem:[#allocation3 + $0x15] sm:$0xff] }
 0x454   : > { %v6283_v50 = vld [vmem:[%s8009_s2 + $0x198] sm:$0xff]  }
 0x456   : > { %v7521_v60 = vld [vmem:[#allocation3 + $0x58] sm:$0xff]  ;;  %v3023_v0 = vld [vmem:[#allocation3 + $0x60] sm:$0x7] }
 0x457   : > { %v3029_v37 = vpack.c.bf16 %v7521_v60, %v7500_v53  ;;  %v3030_v4 = vpack.c.bf16 %v3023_v0, %v3023_v0  ;;  %v3080_v11 = vld [vmem:[#allocation3 + $0x53] sm:$0xff]  ;;  %v3081_v44 = vld [vmem:[#allocation3 + $0x5b] sm:$0xff]  ;;  %v3082_v18 = vld [vmem:[#allocation3 + $0x63] sm:$0xff] }
 0x458   : > { %v3088_v23 = vpack.c.bf16 %v3080_v11, %v3079_v43  ;;  %v3089_v0 = vpack.c.bf16 %v3082_v18, %v3081_v44  ;;  %v3061_v10 = vld [vmem:[#allocation3 + $0x52] sm:$0xff]  ;;  %v3083_v56 = vld [vmem:[#allocation3 + $0x6b] sm:$0x7]  ;;  %v3063_v39 = vld [vmem:[#allocation3 + $0x62] sm:$0x7] }
 0x459   : > { %3831 = vmatmul.mubr.bf16.gmra.mrb[92].mxu1 %v3029_v37  ;;  %v3059_v37 = vld [vmem:[#allocation3 + $0x42] sm:$0xff]  ;;  %v3090_v54 = vpack.c.bf16 %v3083_v56, %v3083_v56  ;;  %v3070_v48 = vpack.c.bf16 %v3063_v39, %v3063_v39  ;;  %v6288_v44 = vld [vmem:[%s8009_s2 + $0x1f0] sm:$0xff]   ;;  %v6290_v56 = vld [vmem:[%s8009_s2 + $0x1f8] sm:$0xff]  }
 0x45a   : > { %3838 = vmatprep.mubr.bf16.mxu1 %v3050_v9  ;;  %v3068_v9 = vpack.c.bf16 %v3060_v57, %v3059_v37  ;;  %v6284_v11 = vld [vmem:[%s8009_s2 + $0x1e0] sm:$0xff]   ;;  %v6287_v57 = vld [vmem:[%s8009_s2 + $0x1a8] sm:$0xff]   ;;  %v3100_v39 = vld [vmem:[#allocation3 + $0x54] sm:$0xff] }
 0x45b   : > { %v3118_v43 = vld [vmem:[#allocation3 + $0x45] sm:$0xff]  ;;  %v3097_v18 = vld [vmem:[#allocation3 + $0x3c] sm:$0xff] }
 0x45c   : > { %v3098_v37 = vld [vmem:[#allocation3 + $0x44] sm:$0xff] }
 0x45d   : > { %v3171_v35 = vld [vmem:[#allocation3 + $0x60] sm:$0xff]  ;;  %v3172_v55 = vld [vmem:[#allocation3 + $0x68] sm:$0xff] }
 0x45e   : > { %v3179_v19 = vpack.c.bf16 %v3171_v35, %v7521_v60  ;;  %v3174_v60 = vld [vmem:[#allocation3 + $0x78] sm:$0x7] }
 0x461   : > { %3839 = vmatmul.mubr.bf16.gmra.mrb[96].mxu1 %v3030_v4  ;;  %v3062_v4 = vld [vmem:[#allocation3 + $0x5a] sm:$0xff] }
 0x462   : > { %3878 = vmatprep.mubr.bf16.mxu1 %v3084_v3  ;;  %v3069_v3 = vpack.c.bf16 %v3062_v4, %v3061_v10  ;;  %v3107_v10 = vpack.c.bf16 %v3098_v37, %v3097_v18  ;;  %v3119_v4 = vld [vmem:[#allocation3 + $0x4d] sm:$0xff] }
 0x469   : > { %3879 = vmatmul.mubr.bf16.vlgmr.msra.gmra.mrb[100].mxu1 %v3064_v49 }
 0x46a   : > { %3886 = vmatprep.mubr.bf16.mxu1 %v3085_v59  ;;  %5494 = vmatpush3.bf16.msra.mxu1 %v6261_v16  ;;  %v3111_v16 = vld [vmem:[#allocation3 + $0xd] sm:$0xff]  ;;  %v3113_v59 = vld [vmem:[#allocation3 + $0x1d] sm:$0xff] }
 0x46b   : > { %5495 = vmatprep.subr.bf16.mxu1 %v6262_v63  ;;  %v3124_v49 = vpack.c.bf16 %v3112_v14, %v3111_v16  ;;  %v3092_v63 = vld [vmem:[#allocation3 + $0x14] sm:$0xff]  ;;  %v3121_v14 = vld [vmem:[#allocation3 + $0x5d] sm:$0xff] }
 0x46e   : > { %5496 = vmatpush3.bf16.msra.mxu1 %v6263_v17  ;;  %v3114_v17 = vld [vmem:[#allocation3 + $0x25] sm:$0xff] }
 0x46f   : > { %5497 = vmatprep.subr.bf16.mxu1 %v6264_v6  ;;  %v3091_v6 = vld [vmem:[#allocation3 + $0xc] sm:$0xff] }
 0x470   : > { %v3104_v51 = vpack.c.bf16 %v3092_v63, %v3091_v6 }
 0x471   : > { %3887 = vmatmul.mubr.bf16.gmra.mrb[104].mxu1 %v3065_v24  ;;  %v6279_v24 = vld [vmem:[%s8009_s2 + $0x188] sm:$0xff]  }
 0x472   : > { %3894 = vmatprep.mubr.bf16.mxu1 %v3086_v5  ;;  %5498 = vmatpush3.bf16.msra.mxu1 %v6265_v25  ;;  %v3125_v25 = vpack.c.bf16 %v3114_v17, %v3113_v59  ;;  %v6280_v5 = vld [vmem:[%s8009_s2 + $0x1d0] sm:$0xff]   ;;  %v7625_v17 = vld [vmem:[#allocation3] sm:$0xff] }
 0x473   : > { %5499 = vmatprep.subr.bf16.mxu1 %v6266_v28 }
 0x476   : > { %5500 = vmatpush3.bf16.msra.mxu1 %v6267_v61  ;;  %v3093_v61 = vld [vmem:[#allocation3 + $0x1c] sm:$0xff] }
 0x477   : > { %5501 = vmatprep.subr.bf16.mxu1 %v6268_v22  ;;  %v3094_v22 = vld [vmem:[#allocation3 + $0x24] sm:$0xff] }
 0x479   : > { %3895 = vmatmul.mubr.bf16.gmra.mrb[108].mxu1 %v3066_v31  ;;  %v3116_v31 = vld [vmem:[#allocation3 + $0x35] sm:$0xff] }
 0x47a   : > { %3902 = vmatprep.mubr.bf16.mxu1 %v3087_v47  ;;  %5502 = vmatpush3.bf16.msra.mxu1 %v6269_v29  ;;  %v6281_v47 = vld [vmem:[%s8009_s2 + $0x190] sm:$0xff]   ;;  %v3126_v38 = vpack.c.bf16 %v3116_v31, %v7417_v58  ;;  %v6285_v58 = vld [vmem:[%s8009_s2 + $0x1a0] sm:$0xff]  }
 0x47b   : > { %5503 = vmatprep.subr.bf16.mxu1 %v6270_v15  ;;  %v3151_v31 = vld [vmem:[#allocation3 + $0x17] sm:$0xff] }
 0x47e   : > { %5504 = vmatpush3.bf16.msra.mxu1 %v6271_v32  ;;  %v3105_v32 = vpack.c.bf16 %v3094_v22, %v3093_v61  ;;  %v3103_v61 = vld [vmem:[#allocation3 + $0x6c] sm:$0x7]  ;;  %v3152_v22 = vld [vmem:[#allocation3 + $0x1f] sm:$0xff] }
 0x47f   : > { %5505 = vmatprep.subr.bf16.mxu1 %v6272_v20  ;;  %v6282_v20 = vld [vmem:[%s8009_s2 + $0x1d8] sm:$0xff]  }
 0x481   : > { %3903 = vmatmul.mubr.bf16.gmra.mrb[112].mxu1 %v3067_v41  ;;  %v3117_v41 = vld [vmem:[#allocation3 + $0x3d] sm:$0xff] }
 0x482   : > { %3910 = vmatprep.mubr.bf16.mxu1 %v3088_v23  ;;  %5506 = vmatpush3.bf16.msra.mxu1 %v6273_v12  ;;  %v3096_v12 = vld [vmem:[#allocation3 + $0x34] sm:$0xff] }
 0x483   : > { %5507 = vmatprep.subr.bf16.mxu1 %v6274_v62  ;;  %v3095_v62 = vld [vmem:[#allocation3 + $0x2c] sm:$0xff] }
 0x484   : > { %v3106_v23 = vpack.c.bf16 %v3096_v12, %v3095_v62  ;;  %v3156_v62 = vld [vmem:[#allocation3 + $0x3f] sm:$0xff] }
 0x486   : > { %5508 = vmatpush3.bf16.msra.mxu1 %v6275_v34  ;;  %v6286_v34 = vld [vmem:[%s8009_s2 + $0x1e8] sm:$0xff]  }
 0x487   : > { %5551 = vmatprep.subr.bf16.mxu1 %v6276_v13  ;;  %v3127_v13 = vpack.c.bf16 %v3118_v43, %v3117_v41  ;;  %v3133_v41 = vld [vmem:[#allocation3 + $0x26] sm:$0xff]  ;;  %v3134_v43 = vld [vmem:[#allocation3 + $0x2e] sm:$0xff] }
 0x489   : > { %3911 = vmatmul.mubr.bf16.gmra.mrb[116].mxu1 %v3068_v9  ;;  %v3120_v9 = vld [vmem:[#allocation3 + $0x55] sm:$0xff] }
 0x48a   : > { %3918 = vmatprep.mubr.bf16.mxu1 %v3089_v0  ;;  %v6289_v0 = vld [vmem:[%s8009_s2 + $0x1b0] sm:$0xff]  }
 0x491   : > { %3919 = vmatmul.mubr.bf16.gmra.mrb[120].mxu1 %v3069_v3  ;;  %v3128_v3 = vpack.c.bf16 %v3120_v9, %v3119_v4  ;;  %v3136_v4 = vld [vmem:[#allocation3 + $0x3e] sm:$0xff] }
 0x492   : > { %3926 = vmatprep.mubr.bf16.mxu1 %v3090_v54  ;;  %v6291_v54 = vld [vmem:[%s8009_s2 + $0x1b8] sm:$0xff]  }
 0x499   : > { %3927 = vmatmul.mubr.bf16.gmra.mrb[124].mxu1 %v3070_v48  ;;  %v3122_v48 = vld [vmem:[#allocation3 + $0x65] sm:$0xff] }
 0x49a   : > { %3966 = vmatprep.mubr.bf16.mxu1 %v3124_v49  ;;  %v3099_v49 = vld [vmem:[#allocation3 + $0x4c] sm:$0xff] }
 0x49b   : > { %v3108_v59 = vpack.c.bf16 %v3100_v39, %v3099_v49  ;;  %v6296_v39 = vld [vmem:[%s8009_s2 + $0x220] sm:$0xff]  }
 0x49c   : > { %v3137_v49 = vld [vmem:[#allocation3 + $0x46] sm:$0xff] }
 0x4a1   : > { %3967 = vmatmul.mubr.bf16.vlgmr.msra.gmra.mrb[128].mxu1 %v3104_v51  ;;  %v3129_v51 = vpack.c.bf16 %v3122_v48, %v3121_v14 }
 0x4a2   : > { %3974 = vmatprep.mubr.bf16.mxu1 %v3125_v25  ;;  %5552 = vmatpush3.bf16.msra.mxu1 %v6277_v2 }
 0x4a3   : > { %v5393_v27 = vpop.f32.mrb[72].mxu1  ;;  %5553 = vmatprep.subr.bf16.mxu1 %v6278_v30 }
 0x4a4   : > { %v5394_v28 = vpop.f32.mrb[73].mxu1 }
 0x4a5   : > { %v7587_v36 = vadd.f32 %v5394_v28, %v5393_v27  ;;  %v5396_v29 = vpop.f32.mrb[74].mxu1  ;;  %v3101_v27 = vld [vmem:[#allocation3 + $0x5c] sm:$0xff] }
 0x4a6   : > { %v5397_v26 = vpop.f32.mrb[75].mxu1  ;;  %5554 = vmatpush3.bf16.msra.mxu1 %v6279_v24  ;;  %v3123_v24 = vld [vmem:[#allocation3 + $0x6d] sm:$0x7] }
 0x4a7   : > { %v7589_v15 = vadd.f32 %v5397_v26, %v5396_v29  ;;  %5555 = vmatprep.subr.bf16.mxu1 %v6280_v5  ;;  %v3130_v28 = vpack.c.bf16 %v3123_v24, %v3123_v24  ;;  %v3109_v5 = vpack.c.bf16 %v7518_v45, %v3101_v27  ;;  %v3110_v29 = vpack.c.bf16 %v3103_v61, %v3103_v61  ;;  %v6293_v45 = vld [vmem:[%s8009_s2 + $0x208] sm:$0xff]  }
 0x4a8   : > { %v3164_v26 = vpack.c.bf16 %v3152_v22, %v3151_v31  ;;  %v3139_v31 = vld [vmem:[#allocation3 + $0x56] sm:$0xff] }
 0x4a9   : > { %3975 = vmatmul.mubr.bf16.gmra.mrb[132].mxu1 %v3105_v32  ;;  %v3153_v32 = vld [vmem:[#allocation3 + $0x27] sm:$0xff] }
 0x4aa   : > { %3982 = vmatprep.mubr.bf16.mxu1 %v3126_v38  ;;  %5556 = vmatpush3.bf16.msra.mxu1 %v6281_v47  ;;  %v3132_v47 = vld [vmem:[#allocation3 + $0x1e] sm:$0xff]  ;;  %v3131_v38 = vld [vmem:[#allocation3 + $0x16] sm:$0xff] }
 0x4ab   : > { %5557 = vmatprep.subr.bf16.mxu1 %v6282_v20  ;;  %v3154_v20 = vld [vmem:[#allocation3 + $0x2f] sm:$0xff] }
 0x4ac   : > { %v3165_v12 = vpack.c.bf16 %v3154_v20, %v3153_v32  ;;  %v3162_v32 = vld [vmem:[#allocation3 + $0x6f] sm:$0xff] }
 0x4ae   : > { %5558 = vmatpush3.bf16.msra.mxu1 %v6283_v50  ;;  %v6292_v50 = vld [vmem:[%s8009_s2 + $0x200] sm:$0xff]  }
 0x4af   : > { %5559 = vmatprep.subr.bf16.mxu1 %v6284_v11  ;;  %v3144_v11 = vpack.c.bf16 %v3132_v47, %v3131_v38  ;;  %v3161_v47 = vld [vmem:[#allocation3 + $0x67] sm:$0xff]  ;;  %v3163_v38 = vld [vmem:[#allocation3 + $0x77] sm:$0x7] }
 0x4b0   : > { %v3169_v20 = vpack.c.bf16 %v3162_v32, %v3161_v47 }
 0x4b1   : > { %3983 = vmatmul.mubr.bf16.gmra.mrb[136].mxu1 %v3106_v23  ;;  %v6294_v23 = vld [vmem:[%s8009_s2 + $0x210] sm:$0xff]  }
 0x4b2   : > { %3990 = vmatprep.mubr.bf16.mxu1 %v3127_v13  ;;  %5560 = vmatpush3.bf16.msra.mxu1 %v6285_v58  ;;  %v3145_v13 = vpack.c.bf16 %v3134_v43, %v3133_v41  ;;  %v3143_v41 = vld [vmem:[#allocation3 + $0x76] sm:$0x7] }
 0x4b3   : > { %5561 = vmatprep.subr.bf16.mxu1 %v6286_v34  ;;  %v3150_v43 = vpack.c.bf16 %v3143_v41, %v3143_v41 }
 0x4b6   : > { %5562 = vmatpush3.bf16.msra.mxu1 %v6287_v57  ;;  %v3155_v57 = vld [vmem:[#allocation3 + $0x37] sm:$0xff] }
 0x4b7   : > { %5563 = vmatprep.subr.bf16.mxu1 %v6288_v44  ;;  %v3166_v37 = vpack.c.bf16 %v3156_v62, %v3155_v57 }
 0x4b9   : > { %3991 = vmatmul.mubr.bf16.gmra.mrb[140].mxu1 %v3107_v10  ;;  %v6295_v10 = vld [vmem:[%s8009_s2 + $0x218] sm:$0xff]  }
 0x4ba   : > { %3998 = vmatprep.mubr.bf16.mxu1 %v3128_v3  ;;  %5564 = vmatpush3.bf16.msra.mxu1 %v6289_v0  ;;  %v3158_v3 = vld [vmem:[#allocation3 + $0x4f] sm:$0xff] }
 0x4bb   : > { %5565 = vmatprep.subr.bf16.mxu1 %v6290_v56  ;;  %v3157_v56 = vld [vmem:[#allocation3 + $0x47] sm:$0xff] }
 0x4bc   : > { %v3167_v48 = vpack.c.bf16 %v3158_v3, %v3157_v56  ;;  %v3181_v3 = vpack.c.bf16 %v3174_v60, %v3174_v60 }
 0x4be   : > { %5566 = vmatpush3.bf16.msra.mxu1 %v6291_v54  ;;  %v3135_v54 = vld [vmem:[#allocation3 + $0x36] sm:$0xff] }
 0x4bf   : > { %v5399_v16 = vpop.f32.mrb[76].mxu1  ;;  %5772 = vmatprep.subr.bf16.mxu1 %v7625_v17  ;;  %v3146_v14 = vpack.c.bf16 %v3136_v4, %v3135_v54 }
 0x4c0   : > { %v5400_v63 = vpop.f32.mrb[77].mxu1 }
 0x4c1   : > { %v7628_v6 = vadd.f32 %v5400_v63, %v5399_v16  ;;  %v5402_v2 = vpop.f32.mrb[78].mxu1  ;;  %3999 = vmatmul.mubr.bf16.gmra.mrb[144].mxu1 %v3108_v59  ;;  %v6297_v16 = vld [vmem:[%s8009_s2 + $0x228] sm:$0xff]   ;;  %v3159_v59 = vld [vmem:[#allocation3 + $0x57] sm:$0xff] }
 0x4c2   : > { %v5403_v30 = vpop.f32.mrb[79].mxu1  ;;  %4006 = vmatprep.mubr.bf16.mxu1 %v3129_v51 }
 0x4c3   : > { %v7630_v25 = vadd.f32 %v5403_v30, %v5402_v2  ;;  %v3160_v2 = vld [vmem:[#allocation3 + $0x5f] sm:$0xff]  ;;  %v6298_v30 = vld [vmem:[%s8009_s2 + $0x230] sm:$0xff]  }
 0x4c4   : > { %v3168_v61 = vpack.c.bf16 %v3160_v2, %v3159_v59 }
 0x4c9   : > { %4007 = vmatmul.mubr.bf16.gmra.mrb[148].mxu1 %v3109_v5 }
 0x4ca   : > { %4014 = vmatprep.mubr.bf16.mxu1 %v3130_v28  ;;  %v3147_v28 = vpack.c.bf16 %v7489_v46, %v3137_v49  ;;  %v6301_v49 = vld [vmem:[%s8010_s3 + $0x48] sm:$0xff]  }
 0x4d1   : > { %4015 = vmatmul.mubr.bf16.gmra.mrb[152].mxu1 %v3110_v29  ;;  %v6299_v29 = vld [vmem:[%s8009_s2 + $0x238] sm:$0xff]  }
 0x4d2   : > { %4054 = vmatprep.mubr.bf16.mxu1 %v3164_v26  ;;  %v3140_v26 = vld [vmem:[#allocation3 + $0x5e] sm:$0xff] }
 0x4d3   : > { %v3148_v46 = vpack.c.bf16 %v3140_v26, %v3139_v31 }
 0x4d9   : > { %4055 = vmatmul.mubr.bf16.vlgmr.msra.gmra.mrb[156].mxu1 %v3144_v11  ;;  %v3142_v11 = vld [vmem:[#allocation3 + $0x6e] sm:$0xff] }
 0x4da   : > { %4062 = vmatprep.mubr.bf16.mxu1 %v3165_v12  ;;  %5773 = vmatpush3.bf16.msra.mxu1 %v6292_v50  ;;  %v3141_v50 = vld [vmem:[#allocation3 + $0x66] sm:$0xff]  ;;  %v3170_v12 = vpack.c.bf16 %v3163_v38, %v3163_v38 }
 0x4db   : > { %5774 = vmatprep.subr.bf16.mxu1 %v7625_v17 }
 0x4de   : > { %5775 = vmatpush3.bf16.msra.mxu1 %v6293_v45  ;;  %v3149_v45 = vpack.c.bf16 %v3142_v11, %v3141_v50 }
 0x4df   : > { %v5405_v58 = vpop.f32.mrb[80].mxu1  ;;  %5776 = vmatprep.subr.bf16.mxu1 %v7625_v17 }
 0x4e0   : > { %v5406_v34 = vpop.f32.mrb[81].mxu1 }
 0x4e1   : > { %v7644_v44 = vadd.f32 %v5406_v34, %v5405_v58  ;;  %v5408_v18 = vpop.f32.mrb[82].mxu1  ;;  %4063 = vmatmul.mubr.bf16.gmra.mrb[160].mxu1 %v3145_v13 }
 0x4e2   : > { %v5409_v9 = vpop.f32.mrb[83].mxu1  ;;  %4070 = vmatprep.mubr.bf16.mxu1 %v3166_v37  ;;  %5777 = vmatpush3.bf16.msra.mxu1 %v6294_v23 }
 0x4e3   : > { %v7646_v0 = vadd.f32 %v5409_v9, %v5408_v18  ;;  %5778 = vmatprep.subr.bf16.mxu1 %v7625_v17  ;;  %v3180_v9 = vpack.c.bf16 %v7625_v17, %v3172_v55 }
 0x4e6   : > { %5779 = vmatpush3.bf16.msra.mxu1 %v6295_v10  ;;  %v6300_v10 = vld [vmem:[%s8010_s3 + $0x40] sm:$0xff]  }
 0x4e7   : > { %5780 = vmatprep.subr.bf16.mxu1 %v7625_v17 }
 0x4e9   : > { %4071 = vmatmul.mubr.bf16.gmra.mrb[164].mxu1 %v3146_v14 }
 0x4ea   : > { %4078 = vmatprep.mubr.bf16.mxu1 %v3167_v48  ;;  %5781 = vmatpush3.bf16.msra.mxu1 %v6296_v39 }
 0x4eb   : > { %5782 = vmatprep.subr.bf16.mxu1 %v7625_v17 }
 0x4ee   : > { %v5411_v63 = vpop.f32.mrb[84].mxu1  ;;  %5783 = vmatpush3.bf16.msra.mxu1 %v6297_v16 }
 0x4ef   : > { %v5412_v51 = vpop.f32.mrb[85].mxu1  ;;  %5784 = vmatprep.subr.bf16.mxu1 %v7625_v17 }
 0x4f0   : > { %v7663_v24 = vadd.f32 %v5412_v51, %v5411_v63  ;;  %v5414_v27 = vpop.f32.mrb[86].mxu1 }
 0x4f1   : > { %v5415_v5 = vpop.f32.mrb[87].mxu1  ;;  %4079 = vmatmul.mubr.bf16.gmra.mrb[168].mxu1 %v3147_v28 }
 0x4f2   : > { %v7667_v22 = vadd.f32 %v5415_v5, %v5414_v27  ;;  %4086 = vmatprep.mubr.bf16.mxu1 %v3168_v61  ;;  %5785 = vmatpush3.bf16.msra.mxu1 %v6298_v30 }
 0x4f3   : > { %5786 = vmatprep.subr.bf16.mxu1 %v7625_v17 }
 0x4f6   : > { %5787 = vmatpush3.bf16.msra.mxu1 %v6299_v29 }
 0x4f7   : > { %5816 = vmatprep.subr.bf16.mxu1 %v7625_v17 }
 0x4f9   : > { %4087 = vmatmul.mubr.bf16.gmra.mrb[172].mxu1 %v3148_v46  ;;  %v6303_v46 = vld [vmem:[%s8010_s3 + $0x58] sm:$0xff]  }
 0x4fa   : > { %4094 = vmatprep.mubr.bf16.mxu1 %v3169_v20 }
 0x501   : > { %4095 = vmatmul.mubr.bf16.gmra.mrb[176].mxu1 %v3149_v45 }
 0x502   : > { %4102 = vmatprep.mubr.bf16.mxu1 %v3170_v12 }
 0x509   : > { %4103 = vmatmul.mubr.bf16.gmra.mrb[180].mxu1 %v3150_v43 }
 0x50a   : > { %5788 = vmatprep.mubr.msk.bf16.mxu1 %vm6344_vm7, %v7625_v17 }
 0x511   : > { %5789 = vmatmul.mubr.bf16.vlgmr.msra.gmra.mrb[184].mxu1 %v3175_v42 }
 0x512   : > { %5792 = vmatprep.mubr.msk.bf16.mxu1 %vm6344_vm7, %v7625_v17  ;;  %5817 = vmatpush3.bf16.msra.mxu1 %v6300_v10 }
 0x513   : > { %v5417_v62 = vpop.f32.mrb[88].mxu1  ;;  %5818 = vmatprep.subr.bf16.mxu1 %v7625_v17 }
 0x514   : > { %v5418_v58 = vpop.f32.mrb[89].mxu1 }
 0x515   : > { %v7681_v23 = vadd.f32 %v5418_v58, %v5417_v62  ;;  %v5420_v34 = vpop.f32.mrb[90].mxu1 }
 0x516   : > { %v5421_v13 = vpop.f32.mrb[91].mxu1  ;;  %5819 = vmatpush3.bf16.msra.mxu1 %v6301_v49 }
 0x517   : > { %v7683_v57 = vadd.f32 %v5421_v13, %v5420_v34  ;;  %5820 = vmatprep.subr.bf16.mxu1 %v7625_v17  ;;  %v6305_v13 = vld [vmem:[%s8010_s3 + $0x68] sm:$0xff]  }
 0x519   : > { %5793 = vmatmul.mubr.bf16.gmra.mrb[188].mxu1 %v3176_v7 }
 0x51a   : > { %5796 = vmatprep.mubr.msk.bf16.mxu1 %vm6344_vm7, %v7625_v17 }
 0x521   : > { %5797 = vmatmul.mubr.bf16.gmra.mrb[192].mxu1 %v3177_v40 }
 0x522   : > { %5800 = vmatprep.mubr.msk.bf16.mxu1 %vm6344_vm7, %v7625_v17 }
 0x529   : > { %5801 = vmatmul.mubr.bf16.gmra.mrb[196].mxu1 %v3178_v52 }
 0x52a   : > { %5804 = vmatprep.mubr.msk.bf16.mxu1 %vm6344_vm7, %v7625_v17 }
 0x52c   : > { %v5423_v1 = vpop.f32.mrb[92].mxu1 }
 0x52d   : > { %v5424_v42 = vpop.f32.mrb[93].mxu1 }
 0x52e   : > { %v7700_v21 = vadd.f32 %v5424_v42, %v5423_v1  ;;  %v5426_v8 = vpop.f32.mrb[94].mxu1 }
 0x52f   : > { %v5427_v7 = vpop.f32.mrb[95].mxu1 }
 0x530   : > { %v7703_v33 = vadd.f32 %v5427_v7, %v5426_v8 }
 0x531   : > { %5805 = vmatmul.mubr.bf16.gmra.mrb[200].mxu1 %v3179_v19 }
 0x532   : > { %5808 = vmatprep.mubr.msk.bf16.mxu1 %vm6344_vm7, %v7625_v17 }
 0x534   : > { %v5429_v40 = vpop.f32.mrb[96].mxu1 }
 0x535   : > { %v5430_v53 = vpop.f32.mrb[97].mxu1 }
 0x536   : > { %v7707_v52 = vadd.f32 %v5430_v53, %v5429_v40  ;;  %v5432_v18 = vpop.f32.mrb[98].mxu1 }
 0x537   : > { %v5433_v37 = vpop.f32.mrb[99].mxu1 }
 0x539   : > { %5809 = vmatmul.mubr.bf16.gmra.mrb[204].mxu1 %v3180_v9 }
 0x53a   : > { %5812 = vmatprep.mubr.msk.bf16.mxu1 %vm6344_vm7, %v7625_v17 }
 0x53c   : > { %v5451_v4 = vpop.f32.mrb[100].mxu1 }
 0x53d   : > { %v5452_v56 = vpop.f32.mrb[101].mxu1 }
 0x53e   : > { %v5453_v54 = vadd.f32 %v5452_v56, %v5451_v4  ;;  %v5454_v39 = vpop.f32.mrb[102].mxu1  ;;  %v6307_v4 = vld [vmem:[%s8010_s3 + $0x78] sm:$0xff]  }
 0x53f   : > { %v5455_v14 = vpop.f32.mrb[103].mxu1 }
 0x540   : > { %v7717_v48 = vadd.f32 %v5453_v54, %v7587_v36  ;;  %v5456_v16 = vadd.f32 %v5455_v14, %v5454_v39 }
 0x541   : > { %5813 = vmatmul.mubr.bf16.gmra.mrb[208].mxu1 %v3181_v3 }
 0x542   : > { %v7723_v63 = vadd.f32 %v5456_v16, %v7589_v15  ;;  %5832 = vmatprep.mubr.msk.bf16.mxu1 %vm6344_vm7, %v7625_v17  ;;  %v6302_v15 = vld [vmem:[%s8010_s3 + $0x50] sm:$0xff]  }
 0x543   : > { %5821 = vmatpush3.bf16.msra.mxu1 %v6302_v15 }
 0x544   : > { %v5457_v59 = vpop.f32.mrb[104].mxu1  ;;  %5822 = vmatprep.subr.bf16.mxu1 %v7625_v17 }
 0x545   : > { %v5458_v2 = vpop.f32.mrb[105].mxu1 }
 0x546   : > { %v5459_v51 = vadd.f32 %v5458_v2, %v5457_v59  ;;  %v5460_v36 = vpop.f32.mrb[106].mxu1 }
 0x547   : > { %v5461_v30 = vpop.f32.mrb[107].mxu1  ;;  %5823 = vmatpush3.bf16.msra.mxu1 %v6303_v46 }
 0x548   : > { %v7729_v27 = vadd.f32 %v5459_v51, %v7628_v6  ;;  %v5462_v28 = vadd.f32 %v5461_v30, %v5460_v36  ;;  %5824 = vmatprep.subr.bf16.mxu1 %v7625_v17 }
 0x54a   : > { %v7735_v5 = vadd.f32 %v5462_v28, %v7630_v25 }
 0x54c   : > { %v5463_v61 = vpop.f32.mrb[108].mxu1 }
 0x54d   : > { %v5464_v29 = vpop.f32.mrb[109].mxu1 }
 0x54e   : > { %v5465_v31 = vadd.f32 %v5464_v29, %v5463_v61  ;;  %v5466_v26 = vpop.f32.mrb[110].mxu1 }
 0x54f   : > { %v5467_v47 = vpop.f32.mrb[111].mxu1 }
 0x550   : > { %v7739_v32 = vadd.f32 %v5465_v31, %v7644_v44  ;;  %v5468_v6 = vadd.f32 %v5467_v47, %v5466_v26  ;;  %v6304_v44 = vld [vmem:[%s8010_s3 + $0x60] sm:$0xff]  }
 0x551   : > { %5825 = vmatpush3.bf16.msra.mxu1 %v6304_v44 }
 0x552   : > { %v7745_v20 = vadd.f32 %v5468_v6, %v7646_v0  ;;  %5826 = vmatprep.subr.bf16.mxu1 %v7625_v17 }
 0x554   : > { %v5469_v25 = vpop.f32.mrb[112].mxu1 }
 0x555   : > { %v5470_v38 = vpop.f32.mrb[113].mxu1  ;;  %5827 = vmatpush3.bf16.msra.mxu1 %v6305_v13 }
 0x556   : > { %v5471_v50 = vadd.f32 %v5470_v38, %v5469_v25  ;;  %v5472_v11 = vpop.f32.mrb[114].mxu1  ;;  %5828 = vmatprep.subr.bf16.mxu1 %v7625_v17 }
 0x557   : > { %v5473_v12 = vpop.f32.mrb[115].mxu1 }
 0x558   : > { %v7752_v45 = vadd.f32 %v5471_v50, %v7663_v24  ;;  %v5474_v41 = vadd.f32 %v5473_v12, %v5472_v11 }
 0x55a   : > { %v3908_v0 = vadd.f32 %v5474_v41, %v7667_v22 }
 0x55c   : > { %v5475_v43 = vpop.f32.mrb[116].mxu1 }
 0x55d   : > { %v5476_v62 = vpop.f32.mrb[117].mxu1 }
 0x55e   : > { %v5477_v58 = vadd.f32 %v5476_v62, %v5475_v43  ;;  %v5478_v34 = vpop.f32.mrb[118].mxu1 }
 0x55f   : > { %v5479_v1 = vpop.f32.mrb[119].mxu1 }
 0x560   : > { %v3913_v35 = vadd.f32 %v5477_v58, %v7681_v23  ;;  %v5480_v42 = vadd.f32 %v5479_v1, %v5478_v34  ;;  %v6306_v23 = vld [vmem:[%s8010_s3 + $0x70] sm:$0xff]  }
 0x561   : > { %5829 = vmatpush3.bf16.msra.mxu1 %v6306_v23 }
 0x562   : > { %v3916_v24 = vadd.f32 %v5480_v42, %v7683_v57  ;;  %5830 = vmatprep.subr.bf16.mxu1 %v7625_v17 }
 0x564   : > { %v5481_v8 = vpop.f32.mrb[120].mxu1 }
 0x565   : > { %v5482_v7 = vpop.f32.mrb[121].mxu1  ;;  %5831 = vmatpush3.bf16.msra.mxu1 %v6307_v4 }
 0x566   : > { %v5483_v22 = vadd.f32 %v5482_v7, %v5481_v8  ;;  %v5484_v19 = vpop.f32.mrb[122].mxu1 }
 0x567   : > { %v5485_v40 = vpop.f32.mrb[123].mxu1 }
 0x568   : > { %v3921_v55 = vadd.f32 %v5483_v22, %v7700_v21  ;;  %v5486_v53 = vadd.f32 %v5485_v40, %v5484_v19 }
 0x56a   : > { %v3924_v18 = vadd.f32 %v5486_v53, %v7703_v33 }
 0x56c   : > { %v5487_v37 = vpop.f32.mrb[124].mxu1 }
 0x56d   : > { %v5488_v9 = vpop.f32.mrb[125].mxu1 }
 0x56e   : > { %v5489_v10 = vadd.f32 %v5488_v9, %v5487_v37  ;;  %v5490_v60 = vpop.f32.mrb[126].mxu1 }
 0x56f   : > { %v5491_v57 = vpop.f32.mrb[127].mxu1 }
 0x570   : > { %v3929_v21 = vadd.f32 %v5489_v10, %v7707_v52 }
 0x574   : > { %v5509_v33 = vpop.f32.mrb[128].mxu1 }
 0x575   : > { %v5510_v56 = vpop.f32.mrb[129].mxu1 }
 0x576   : > { %v5511_v3 = vadd.f32 %v5510_v56, %v5509_v33  ;;  %v5512_v54 = vpop.f32.mrb[130].mxu1 }
 0x577   : > { %v5513_v39 = vpop.f32.mrb[131].mxu1 }
 0x578   : > { %v3969_v14 = vadd.f32 %v5511_v3, %v7717_v48  ;;  %v5514_v16 = vadd.f32 %v5513_v39, %v5512_v54 }
 0x57a   : > { %v3972_v49 = vadd.f32 %v5514_v16, %v7723_v63 }
 0x57c   : > { %v5515_v59 = vpop.f32.mrb[132].mxu1 }
 0x57d   : > { %v5516_v2 = vpop.f32.mrb[133].mxu1 }
 0x57e   : > { %v5517_v51 = vadd.f32 %v5516_v2, %v5515_v59  ;;  %v5518_v36 = vpop.f32.mrb[134].mxu1 }
 0x57f   : > { %v5519_v30 = vpop.f32.mrb[135].mxu1 }
 0x580   : > { %v3977_v28 = vadd.f32 %v5517_v51, %v7729_v27  ;;  %v5520_v15 = vadd.f32 %v5519_v30, %v5518_v36 }
 0x582   : > { %v3980_v52 = vadd.f32 %v5520_v15, %v7735_v5 }
 0x584   : > { %v5521_v61 = vpop.f32.mrb[136].mxu1 }
 0x585   : > { %v5522_v29 = vpop.f32.mrb[137].mxu1 }
 0x586   : > { %v5523_v31 = vadd.f32 %v5522_v29, %v5521_v61  ;;  %v5524_v26 = vpop.f32.mrb[138].mxu1 }
 0x587   : > { %v5525_v47 = vpop.f32.mrb[139].mxu1 }
 0x588   : > { %v3985_v48 = vadd.f32 %v5523_v31, %v7739_v32  ;;  %v5526_v6 = vadd.f32 %v5525_v47, %v5524_v26 }
 0x58a   : > { %v3988_v63 = vadd.f32 %v5526_v6, %v7745_v20 }
 0x58c   : > { %v5527_v46 = vpop.f32.mrb[140].mxu1 }
 0x58d   : > { %v5528_v25 = vpop.f32.mrb[141].mxu1 }
 0x58e   : > { %v5529_v38 = vadd.f32 %v5528_v25, %v5527_v46  ;;  %v5530_v50 = vpop.f32.mrb[142].mxu1 }
 0x58f   : > { %v5531_v11 = vpop.f32.mrb[143].mxu1 }
 0x590   : > { %v3993_v27 = vadd.f32 %v5529_v38, %v7752_v45  ;;  %v5532_v44 = vadd.f32 %v5531_v11, %v5530_v50 }
 0x592   : > { %v3996_v12 = vadd.f32 %v5532_v44, %v3908_v0 }
 0x594   : > { %v5533_v5 = vpop.f32.mrb[144].mxu1 }
 0x595   : > { %v5534_v41 = vpop.f32.mrb[145].mxu1 }
 0x596   : > { %v5535_v43 = vadd.f32 %v5534_v41, %v5533_v5  ;;  %v5536_v62 = vpop.f32.mrb[146].mxu1 }
 0x597   : > { %v5537_v58 = vpop.f32.mrb[147].mxu1 }
 0x598   : > { %v4001_v34 = vadd.f32 %v5535_v43, %v3913_v35  ;;  %v5538_v13 = vadd.f32 %v5537_v58, %v5536_v62 }
 0x59a   : > { %v4004_v32 = vadd.f32 %v5538_v13, %v3916_v24 }
 0x59c   : > { %v5539_v1 = vpop.f32.mrb[148].mxu1 }
 0x59d   : > { %v5540_v42 = vpop.f32.mrb[149].mxu1 }
 0x59e   : > { %v5541_v20 = vadd.f32 %v5540_v42, %v5539_v1  ;;  %v5542_v8 = vpop.f32.mrb[150].mxu1 }
 0x59f   : > { %v5543_v7 = vpop.f32.mrb[151].mxu1 }
 0x5a0   : > { %v4009_v22 = vadd.f32 %v5541_v20, %v3921_v55  ;;  %v5544_v19 = vadd.f32 %v5543_v7, %v5542_v8 }
 0x5a2   : > { %v4012_v40 = vadd.f32 %v5544_v19, %v3924_v18 }
 0x5a4   : > { %v5545_v53 = vpop.f32.mrb[152].mxu1 }
 0x5a5   : > { %v5546_v45 = vpop.f32.mrb[153].mxu1 }
 0x5a6   : > { %v5547_v23 = vadd.f32 %v5546_v45, %v5545_v53  ;;  %v5548_v0 = vpop.f32.mrb[154].mxu1 }
 0x5a7   : > { %v5549_v37 = vpop.f32.mrb[155].mxu1 }
 0x5a8   : > { %v4017_v9 = vadd.f32 %v5547_v23, %v3929_v21 }
 0x5ac   : > { %v5567_v10 = vpop.f32.mrb[156].mxu1 }
 0x5ad   : > { %v5568_v60 = vpop.f32.mrb[157].mxu1 }
 0x5ae   : > { %v5569_v57 = vadd.f32 %v5568_v60, %v5567_v10  ;;  %v5570_v35 = vpop.f32.mrb[158].mxu1 }
 0x5af   : > { %v5571_v4 = vpop.f32.mrb[159].mxu1 }
 0x5b0   : > { %v5572_v24 = vadd.f32 %v5571_v4, %v5570_v35  ;;  %v4057_v33 = vadd.f32 %v5569_v57, %v3969_v14 }
 0x5b2   : > { %v4060_v56 = vadd.f32 %v5572_v24, %v3972_v49 }
 0x5b4   : > { %v5573_v3 = vpop.f32.mrb[160].mxu1 }
 0x5b5   : > { %v5574_v54 = vpop.f32.mrb[161].mxu1 }
 0x5b6   : > { %v5575_v39 = vadd.f32 %v5574_v54, %v5573_v3  ;;  %v5576_v55 = vpop.f32.mrb[162].mxu1 }
 0x5b7   : > { %v5577_v16 = vpop.f32.mrb[163].mxu1 }
 0x5b8   : > { %v5578_v18 = vadd.f32 %v5577_v16, %v5576_v55  ;;  %v4065_v59 = vadd.f32 %v5575_v39, %v3977_v28 }
 0x5ba   : > { %v4068_v2 = vadd.f32 %v5578_v18, %v3980_v52 }
 0x5bc   : > { %v5579_v51 = vpop.f32.mrb[164].mxu1 }
 0x5bd   : > { %v5580_v36 = vpop.f32.mrb[165].mxu1 }
 0x5be   : > { %v5581_v30 = vadd.f32 %v5580_v36, %v5579_v51  ;;  %v5582_v21 = vpop.f32.mrb[166].mxu1 }
 0x5bf   : > { %v5583_v15 = vpop.f32.mrb[167].mxu1 }
 0x5c0   : > { %v5584_v61 = vadd.f32 %v5583_v15, %v5582_v21  ;;  %v4073_v29 = vadd.f32 %v5581_v30, %v3985_v48 }
 0x5c2   : > { %v7779_v31 = vadd.f32 %v5584_v61, %v3988_v63 }
 0x5c4   : > { %v5585_v26 = vpop.f32.mrb[168].mxu1 }
 0x5c5   : > { %v5586_v14 = vpop.f32.mrb[169].mxu1 }
 0x5c6   : > { %v5587_v49 = vadd.f32 %v5586_v14, %v5585_v26  ;;  %v5588_v47 = vpop.f32.mrb[170].mxu1 }
 0x5c7   : > { %v5589_v6 = vpop.f32.mrb[171].mxu1 }
 0x5c8   : > { %v5590_v46 = vadd.f32 %v5589_v6, %v5588_v47  ;;  %v7781_v25 = vadd.f32 %v5587_v49, %v3993_v27 }
 0x5ca   : > { %v7783_v38 = vadd.f32 %v5590_v46, %v3996_v12 }
 0x5cc   : > { %v5591_v28 = vpop.f32.mrb[172].mxu1 }
 0x5cd   : > { %v5592_v52 = vpop.f32.mrb[173].mxu1 }
 0x5ce   : > { %v5593_v50 = vadd.f32 %v5592_v52, %v5591_v28  ;;  %v5594_v11 = vpop.f32.mrb[174].mxu1 }
 0x5cf   : > { %v5595_v44 = vpop.f32.mrb[175].mxu1 }
 0x5d0   : > { %v5596_v5 = vadd.f32 %v5595_v44, %v5594_v11  ;;  %v7785_v41 = vadd.f32 %v5593_v50, %v4001_v34 }
 0x5d2   : > { %v7787_v48 = vadd.f32 %v5596_v5, %v4004_v32  ;;  %v7798_v32 = vld [vmem:[%s8011_s4 + $0x2] ss:$0 sm:$0xff] }
 0x5d4   : > { %v5597_v63 = vpop.f32.mrb[176].mxu1 }
 0x5d5   : > { %v5598_v43 = vpop.f32.mrb[177].mxu1 }
 0x5d6   : > { %v5599_v62 = vadd.f32 %v5598_v43, %v5597_v63  ;;  %v5600_v58 = vpop.f32.mrb[178].mxu1 }
 0x5d7   : > { %v5601_v13 = vpop.f32.mrb[179].mxu1 }
 0x5d8   : > { %v5602_v1 = vadd.f32 %v5601_v13, %v5600_v58  ;;  %v7789_v27 = vadd.f32 %v5599_v62, %v4009_v22  ;;  %v7803_v22 = vld [vmem:[%s8012_s5 + $0x2] ss:$0 sm:$0xff] }
 0x5da   : > { %v7791_v12 = vadd.f32 %v5602_v1, %v4012_v40 }
 0x5dc   : > { %v5603_v42 = vpop.f32.mrb[180].mxu1 }
 0x5dd   : > { %v5604_v20 = vpop.f32.mrb[181].mxu1 }
 0x5de   : > { %v5605_v8 = vadd.f32 %v5604_v20, %v5603_v42  ;;  %v5606_v7 = vpop.f32.mrb[182].mxu1 }
 0x5df   : > { %v5607_v19 = vpop.f32.mrb[183].mxu1 }
 0x5e0   : > { %v7793_v53 = vadd.f32 %v5605_v8, %v4017_v9 }
 0x5e4   : > { %v4144_v34 = vpop.f32.mrb[184].mxu1 }
 0x5e5   : > { %v4145_v45 = vadd.f32 %v4144_v34, %v4057_v33  ;;  %v5790_v23 = vpop.f32.mrb[185].mxu1 }
 0x5e6   : > { %v4147_v40 = vpop.f32.mrb[186].mxu1 }
 0x5e7   : > { %v4204_v0 = vmul.f32 %v7798_v32, %v4145_v45  ;;  %v4148_v37 = vadd.f32 %v4147_v40, %v4060_v56  ;;  %v5791_v10 = vpop.f32.mrb[187].mxu1 }
 0x5e9   : > { %v4221_v9 = vadd.f32 %v7803_v22, %v4204_v0  ;;  %v4205_v60 = vmul.f32 %v7798_v32, %v4148_v37 }
 0x5eb   : > { %v4222_v57 = vadd.f32 %v7803_v22, %v4205_v60  ;;  %v4234_v4 = vmax.f32 %v4221_v9, 0.0 }
 0x5ec   : > { %v4152_v35 = vpop.f32.mrb[188].mxu1 }
 0x5ed   : > { %v4235_v24 = vmax.f32 %v4222_v57, 0.0  ;;  %v4153_v33 = vadd.f32 %v4152_v35, %v4065_v59  ;;  %v5794_v3 = vpop.f32.mrb[189].mxu1 }
 0x5ee   : > { %v4155_v54 = vpop.f32.mrb[190].mxu1 }
 0x5ef   : > { %v4247_v39 = vpack.c.bf16 %v4235_v24, %v4234_v4  ;;  %v4206_v55 = vmul.f32 %v7798_v32, %v4153_v33  ;;  %v4156_v16 = vadd.f32 %v4155_v54, %v4068_v2  ;;  %v5795_v18 = vpop.f32.mrb[191].mxu1 }
 0x5f1   : > { %v4223_v56 = vadd.f32 %v7803_v22, %v4206_v55  ;;  %v4207_v51 = vmul.f32 %v7798_v32, %v4156_v16  ;;  %5833 = vmatmul.mubr.bf16.vlgmr.msra.gmra.mrb[212].mxu1 %v4247_v39 }
 0x5f2   : > { %5836 = vmatprep.mubr.msk.bf16.mxu1 %vm6344_vm7, %v7625_v17 }
 0x5f3   : > { %v4224_v36 = vadd.f32 %v7803_v22, %v4207_v51  ;;  %v4236_v21 = vmax.f32 %v4223_v56, 0.0 }
 0x5f4   : > { %v4160_v30 = vpop.f32.mrb[192].mxu1 }
 0x5f5   : > { %v4237_v59 = vmax.f32 %v4224_v36, 0.0  ;;  %v4161_v15 = vadd.f32 %v4160_v30, %v4073_v29  ;;  %v5798_v61 = vpop.f32.mrb[193].mxu1 }
 0x5f6   : > { %v4163_v26 = vpop.f32.mrb[194].mxu1  ;;  %v6308_v61 = vld [vmem:[%s8010_s3 + $0x80] sm:$0xff]  }
 0x5f7   : > { %v4208_v14 = vmul.f32 %v7798_v32, %v4161_v15  ;;  %v4164_v2 = vadd.f32 %v4163_v26, %v7779_v31  ;;  %v5799_v49 = vpop.f32.mrb[195].mxu1  ;;  %v4248_v47 = vpack.c.bf16 %v4237_v59, %v4236_v21  ;;  %5860 = vmatprep.subr.bf16.mxu1 %v6308_v61  ;;  %v6313_v26 = vld [vmem:[%s8010_s3 + $0xa8] sm:$0xff]  }
 0x5f8   : > { %5861 = vmatpush3.bf16.msra.mxu1 %v6308_v61  ;;  %v7878_v49 = vld [vmem:[%s8010_s3 + $0xc0] sm:$0xff]  }
 0x5f9   : > { %v4225_v6 = vadd.f32 %v7803_v22, %v4208_v14  ;;  %v4209_v46 = vmul.f32 %v7798_v32, %v4164_v2  ;;  %5837 = vmatmul.mubr.bf16.gmra.mrb[216].mxu1 %v4248_v47  ;;  %v6314_v14 = vld [vmem:[%s8010_s3 + $0xb0] sm:$0xff]   ;;  %v6315_v2 = vld [vmem:[%s8010_s3 + $0xb8] sm:$0xff]   ;;  %v7884_v47 = vld [vmem:[%s8011_s4 + $0x3] ss:$0 sm:$0xff] }
 0x5fa   : > { %5840 = vmatprep.mubr.msk.bf16.mxu1 %vm6344_vm7, %v7625_v17 }
 0x5fb   : > { %v4226_v28 = vadd.f32 %v7803_v22, %v4209_v46  ;;  %v4238_v29 = vmax.f32 %v4225_v6, 0.0  ;;  %v7889_v46 = vld [vmem:[%s8012_s5 + $0x3] ss:$0 sm:$0xff] }
 0x5fc   : > { %v4168_v52 = vpop.f32.mrb[196].mxu1 }
 0x5fd   : > { %v4239_v50 = vmax.f32 %v4226_v28, 0.0  ;;  %v4169_v11 = vadd.f32 %v4168_v52, %v7781_v25  ;;  %v5802_v44 = vpop.f32.mrb[197].mxu1 }
 0x5fe   : > { %v4171_v5 = vpop.f32.mrb[198].mxu1 }
 0x5ff   : > { %v4210_v31 = vmul.f32 %v7798_v32, %v4169_v11  ;;  %v4172_v63 = vadd.f32 %v4171_v5, %v7783_v38  ;;  %v5803_v43 = vpop.f32.mrb[199].mxu1  ;;  %v4249_v62 = vpack.c.bf16 %v4239_v50, %v4238_v29 }
 0x601   : > { %v4227_v58 = vadd.f32 %v7803_v22, %v4210_v31  ;;  %v4211_v13 = vmul.f32 %v7798_v32, %v4172_v63  ;;  %5841 = vmatmul.mubr.bf16.gmra.mrb[220].mxu1 %v4249_v62 }
 0x602   : > { %5844 = vmatprep.mubr.msk.bf16.mxu1 %vm6344_vm7, %v7625_v17 }
 0x603   : > { %v4228_v1 = vadd.f32 %v7803_v22, %v4211_v13  ;;  %v4240_v25 = vmax.f32 %v4227_v58, 0.0 }
 0x604   : > { %v4176_v42 = vpop.f32.mrb[200].mxu1 }
 0x605   : > { %v4241_v20 = vmax.f32 %v4228_v1, 0.0  ;;  %v4177_v8 = vadd.f32 %v4176_v42, %v7785_v41  ;;  %v5806_v7 = vpop.f32.mrb[201].mxu1 }
 0x606   : > { %v4179_v19 = vpop.f32.mrb[202].mxu1 }
 0x607   : > { %v4212_v38 = vmul.f32 %v7798_v32, %v4177_v8  ;;  %v4180_v34 = vadd.f32 %v4179_v19, %v7787_v48  ;;  %v5807_v45 = vpop.f32.mrb[203].mxu1  ;;  %v4250_v23 = vpack.c.bf16 %v4241_v20, %v4240_v25 }
 0x609   : > { %v4229_v40 = vadd.f32 %v7803_v22, %v4212_v38  ;;  %v4213_v0 = vmul.f32 %v7798_v32, %v4180_v34  ;;  %5845 = vmatmul.mubr.bf16.gmra.mrb[224].mxu1 %v4250_v23 }
 0x60a   : > { %5848 = vmatprep.mubr.msk.bf16.mxu1 %vm6344_vm7, %v7625_v17 }
 0x60b   : > { %v4230_v37 = vadd.f32 %v7803_v22, %v4213_v0  ;;  %v4242_v41 = vmax.f32 %v4229_v40, 0.0 }
 0x60c   : > { %v4184_v10 = vpop.f32.mrb[204].mxu1 }
 0x60d   : > { %v4243_v9 = vmax.f32 %v4230_v37, 0.0  ;;  %v4185_v60 = vadd.f32 %v4184_v10, %v7789_v27  ;;  %v5810_v57 = vpop.f32.mrb[205].mxu1 }
 0x60e   : > { %v4187_v35 = vpop.f32.mrb[206].mxu1 }
 0x60f   : > { %v4214_v48 = vmul.f32 %v7798_v32, %v4185_v60  ;;  %v4188_v4 = vadd.f32 %v4187_v35, %v7791_v12  ;;  %v5811_v24 = vpop.f32.mrb[207].mxu1  ;;  %v4251_v33 = vpack.c.bf16 %v4243_v9, %v4242_v41 }
 0x611   : > { %v4231_v3 = vadd.f32 %v7803_v22, %v4214_v48  ;;  %v4215_v54 = vmul.f32 %v7798_v32, %v4188_v4  ;;  %5849 = vmatmul.mubr.bf16.gmra.mrb[228].mxu1 %v4251_v33 }
 0x612   : > { %5852 = vmatprep.mubr.msk.bf16.mxu1 %vm6344_vm7, %v7625_v17 }
 0x613   : > { %v4232_v39 = vadd.f32 %v7803_v22, %v4215_v54  ;;  %v4244_v27 = vmax.f32 %v4231_v3, 0.0 }
 0x614   : > { %v4192_v55 = vpop.f32.mrb[208].mxu1 }
 0x615   : > { %v4245_v16 = vmax.f32 %v4232_v39, 0.0  ;;  %v4193_v18 = vadd.f32 %v4192_v55, %v7793_v53  ;;  %v5814_v56 = vpop.f32.mrb[209].mxu1  ;;  %v6309_v53 = vld [vmem:[%s8010_s3 + $0x88] sm:$0xff]  }
 0x616   : > { %v4195_v51 = vpop.f32.mrb[210].mxu1  ;;  %5862 = vmatprep.subr.bf16.mxu1 %v6309_v53 }
 0x617   : > { %v4216_v12 = vmul.f32 %v7798_v32, %v4193_v18  ;;  %v5815_v36 = vpop.f32.mrb[211].mxu1  ;;  %v4252_v30 = vpack.c.bf16 %v4245_v16, %v4244_v27  ;;  %5863 = vmatpush3.bf16.msra.mxu1 %v6309_v53  ;;  %v6310_v32 = vld [vmem:[%s8010_s3 + $0x90] sm:$0xff]  }
 0x618   : > { %5864 = vmatprep.subr.bf16.mxu1 %v6310_v32 }
 0x619   : > { %v4233_v21 = vadd.f32 %v7803_v22, %v4216_v12  ;;  %5853 = vmatmul.mubr.bf16.gmra.mrb[232].mxu1 %v4252_v30  ;;  %v6312_v22 = vld [vmem:[%s8010_s3 + $0xa0] sm:$0xff]  }
 0x61a   : > { %5856 = vmatprep.mubr.msk.bf16.mxu1 %vm6344_vm7, %v7625_v17  ;;  %v6311_v17 = vld [vmem:[%s8010_s3 + $0x98] sm:$0xff]  }
 0x61b   : > { %v4246_v59 = vmax.f32 %v4233_v21, 0.0  ;;  %5865 = vmatpush3.bf16.msra.mxu1 %v6310_v32 }
 0x61c   : > { %5866 = vmatprep.subr.bf16.mxu1 %v6311_v17 }
 0x61d   : > { %v4253_v15 = vpack.c.bf16 %v4246_v59, %v4246_v59 }
 0x61f   : > { %5867 = vmatpush3.bf16.msra.mxu1 %v6311_v17 }
 0x620   : > { %5868 = vmatprep.subr.bf16.mxu1 %v6312_v22 }
 0x621   : > { %5857 = vmatmul.mubr.bf16.gmra.mrb[236].mxu1 %v4253_v15 }
 0x623   : > { %5869 = vmatpush3.bf16.msra.mxu1 %v6312_v22 }
 0x624   : > { %5870 = vmatprep.subr.bf16.mxu1 %v6313_v26 }
 0x627   : > { %5871 = vmatpush3.bf16.msra.mxu1 %v6313_v26 }
 0x628   : > { %5872 = vmatprep.subr.bf16.mxu1 %v6314_v14 }
 0x62b   : > { %5873 = vmatpush3.bf16.msra.mxu1 %v6314_v14 }
 0x62c   : > { %5874 = vmatprep.subr.bf16.mxu1 %v6315_v2 }
 0x62f   : > { %5875 = vmatpush3.bf16.msra.mxu1 %v6315_v2 }
 0x630   : > { %5880 = vmatprep.subr.bf16.mxu1 %v7878_v49 }
 0x6c4   : > { %v4353_v6 = vpop.f32.mrb[212].mxu1 }
 0x6c5   : > { %v4413_v28 = vmul.f32 %v7884_v47, %v4353_v6  ;;  %v5834_v52 = vpop.f32.mrb[213].mxu1 }
 0x6c6   : > { %v4356_v29 = vpop.f32.mrb[214].mxu1 }
 0x6c7   : > { %v4430_v50 = vadd.f32 %v7889_v46, %v4413_v28  ;;  %v4414_v11 = vmul.f32 %v7884_v47, %v4356_v29  ;;  %v5835_v44 = vpop.f32.mrb[215].mxu1 }
 0x6c9   : > { %v4443_v5 = vmax.f32 %v4430_v50, 0.0  ;;  %v4431_v31 = vadd.f32 %v7889_v46, %v4414_v11 }
 0x6cb   : > { %v4472_v63 = vrot.slane %v4443_v5, 1  ;;  %v4444_v43 = vmax.f32 %v4431_v31, 0.0 }
 0x6cc   : > { %v4361_v62 = vpop.f32.mrb[216].mxu1 }
 0x6cd   : > { %4457 = vst [vmem:[#allocation2 + $0x8] sm:$0xff] %v4444_v43  ;;  %v4415_v58 = vmul.f32 %v7884_v47, %v4361_v62  ;;  %v5838_v13 = vpop.f32.mrb[217].mxu1  ;;  %v4474_v42 = vmax.f32 %v4443_v5, %v4472_v63 }
 0x6ce   : > { %v4364_v1 = vpop.f32.mrb[218].mxu1 }
 0x6cf   : > { %v4432_v25 = vadd.f32 %v7889_v46, %v4415_v58  ;;  %v4416_v20 = vmul.f32 %v7884_v47, %v4364_v1  ;;  %v5839_v8 = vpop.f32.mrb[219].mxu1  ;;  %v4480_v34 = vrot.slane %v4474_v42, 1  ;;  %v4487_v45 = vsel %vm2671_vm0, %v4443_v5, %v4474_v42 }
 0x6d0   : > { %v4482_v9 = vrot.slane %v4474_v42, 2 }
 0x6d1   : > { %v4445_v7 = vmax.f32 %v4432_v25, 0.0  ;;  %v4433_v19 = vadd.f32 %v7889_v46, %v4416_v20  ;;  %v4488_v4 = vsel %vm2673_vm1, %v4487_v45, %v4480_v34 }
 0x6d2   : > { %v4489_v54 = vsel %vm2675_vm2, %v4488_v4, %v4482_v9 }
 0x6d3   : > { %4458 = vst [vmem:[#allocation2 + $0x10] sm:$0xff] %v4445_v7  ;;  %v4446_v38 = vmax.f32 %v4433_v19, 0.0 }
 0x6d4   : > { %v4470_v23 = vld [vmem:[#allocation2 + $0x8] sm:$0x1]  ;;  %v4369_v40 = vpop.f32.mrb[220].mxu1 }
 0x6d5   : > { %v4476_v0 = vrot.slane %v4470_v23, 1  ;;  %4459 = vst [vmem:[#allocation2 + $0x18] sm:$0xff] %v4446_v38  ;;  %v4417_v37 = vmul.f32 %v7884_v47, %v4369_v40  ;;  %v5842_v10 = vpop.f32.mrb[221].mxu1 }
 0x6d6   : > { %v4372_v41 = vpop.f32.mrb[222].mxu1 }
 0x6d7   : > { %v4478_v60 = vmax.f32 %v4443_v5, %v4476_v0  ;;  %v4434_v57 = vadd.f32 %v7889_v46, %v4417_v37  ;;  %v4418_v35 = vmul.f32 %v7884_v47, %v4372_v41  ;;  %v5843_v48 = vpop.f32.mrb[223].mxu1 }
 0x6d9   : > { %v4447_v24 = vmax.f32 %v4434_v57, 0.0  ;;  %v4435_v33 = vadd.f32 %v7889_v46, %v4418_v35  ;;  %v4485_v3 = vrot.slane %v4478_v60, 3 }
 0x6da   : > { %v4492_v39 = vld [vmem:[#allocation2 + $0xb] sm:$0xff]  ;;  %v4493_v16 = vld [vmem:[#allocation2 + $0x13] sm:$0x1] }
 0x6db   : > { %4460 = vst [vmem:[#allocation2 + $0x20] sm:$0xff] %v4447_v24  ;;  %v4448_v55 = vmax.f32 %v4435_v33, 0.0  ;;  %v4490_v27 = vsel %vm2677_vm3, %v4489_v54, %v4485_v3 }
 0x6dc   : > { %v4494_v18 = vld [vmem:[#allocation2 + $0x16] sm:$0xff]  ;;  %v4495_v56 = vld [vmem:[#allocation2 + $0x1e] sm:$0x1]  ;;  %v4377_v51 = vpop.f32.mrb[224].mxu1  ;;  %4491 = vst [vmem:[#allocation4] sm:$0x1f] %v4490_v27 }
 0x6dd   : > { %v4496_v12 = vmax.f32 %v4492_v39, %v4494_v18  ;;  %v4497_v36 = vmax.f32 %v4493_v16, %v4495_v56  ;;  %4461 = vst [vmem:[#allocation2 + $0x28] sm:$0xff] %v4448_v55  ;;  %v4419_v30 = vmul.f32 %v7884_v47, %v4377_v51  ;;  %v5846_v21 = vpop.f32.mrb[225].mxu1 }
 0x6de   : > { %v4380_v59 = vpop.f32.mrb[226].mxu1 }
 0x6df   : > { %v4436_v15 = vadd.f32 %v7889_v46, %v4419_v30  ;;  %v4420_v61 = vmul.f32 %v7884_v47, %v4380_v59  ;;  %v5847_v53 = vpop.f32.mrb[227].mxu1  ;;  %v4499_v32 = vrot.slane %v4496_v12, 1  ;;  %v4503_v17 = vrot.slane %v4497_v36, 1 }
 0x6e1   : > { %v4449_v22 = vmax.f32 %v4436_v15, 0.0  ;;  %v4437_v26 = vadd.f32 %v7889_v46, %v4420_v61  ;;  %v4501_v14 = vmax.f32 %v4496_v12, %v4499_v32  ;;  %v4505_v2 = vmax.f32 %v4496_v12, %v4503_v17 }
 0x6e3   : > { %4462 = vst [vmem:[#allocation2 + $0x30] sm:$0xff] %v4449_v22  ;;  %v4450_v6 = vmax.f32 %v4437_v26, 0.0  ;;  %v4507_v28 = vrot.slane %v4501_v14, 1  ;;  %v4509_v52 = vrot.slane %v4501_v14, 2  ;;  %v4514_v50 = vsel %vm2671_vm0, %v4496_v12, %v4501_v14 }
 0x6e4   : > { %v4385_v29 = vpop.f32.mrb[228].mxu1  ;;  %v4512_v5 = vrot.slane %v4505_v2, 3  ;;  %v4519_v42 = vld [vmem:[#allocation2 + $0x21] sm:$0xff]  ;;  %v4520_v8 = vld [vmem:[#allocation2 + $0x29] sm:$0x1] }
 0x6e5   : > { %4463 = vst [vmem:[#allocation2 + $0x38] sm:$0xff] %v4450_v6  ;;  %v4421_v11 = vmul.f32 %v7884_v47, %v4385_v29  ;;  %v5850_v44 = vpop.f32.mrb[229].mxu1  ;;  %v4515_v31 = vsel %vm2673_vm1, %v4514_v50, %v4507_v28 }
 0x6e6   : > { %v4388_v63 = vpop.f32.mrb[230].mxu1  ;;  %v4516_v43 = vsel %vm2675_vm2, %v4515_v31, %v4509_v52 }
 0x6e7   : > { %v4438_v62 = vadd.f32 %v7889_v46, %v4421_v11  ;;  %v4422_v58 = vmul.f32 %v7884_v47, %v4388_v63  ;;  %v5851_v13 = vpop.f32.mrb[231].mxu1  ;;  %v4517_v1 = vsel %vm2677_vm3, %v4516_v43, %v4512_v5 }
 0x6e8   : > { %4518 = vst [vmem:[#allocation4 + $0x5] sm:$0x1f] %v4517_v1 }
 0x6e9   : > { %v4451_v25 = vmax.f32 %v4438_v62, 0.0  ;;  %v4439_v20 = vadd.f32 %v7889_v46, %v4422_v58 }
 0x6ea   : > { %v4521_v7 = vld [vmem:[#allocation2 + $0x2c] sm:$0xff]  ;;  %v4522_v19 = vld [vmem:[#allocation2 + $0x34] sm:$0x1] }
 0x6eb   : > { %v4523_v38 = vmax.f32 %v4519_v42, %v4521_v7  ;;  %v4524_v34 = vmax.f32 %v4520_v8, %v4522_v19  ;;  %4464 = vst [vmem:[#allocation2 + $0x40] sm:$0xff] %v4451_v25  ;;  %v4452_v45 = vmax.f32 %v4439_v20, 0.0 }
 0x6ec   : > { %v4393_v23 = vpop.f32.mrb[232].mxu1  ;;  %v4546_v39 = vld [vmem:[#allocation2 + $0x37] sm:$0xff]  ;;  %v4547_v18 = vld [vmem:[#allocation2 + $0x3f] sm:$0x1] }
 0x6ed   : > { %4465 = vst [vmem:[#allocation2 + $0x48] sm:$0xff] %v4452_v45  ;;  %v4423_v40 = vmul.f32 %v7884_v47, %v4393_v23  ;;  %v5854_v0 = vpop.f32.mrb[233].mxu1  ;;  %v4526_v37 = vrot.slane %v4523_v38, 1  ;;  %v4530_v10 = vrot.slane %v4524_v34, 1 }
 0x6ee   : > { %v4396_v41 = vpop.f32.mrb[234].mxu1 }
 0x6ef   : > { %v4440_v9 = vadd.f32 %v7889_v46, %v4423_v40  ;;  %v4424_v60 = vmul.f32 %v7884_v47, %v4396_v41  ;;  %v5855_v57 = vpop.f32.mrb[235].mxu1  ;;  %v4528_v35 = vmax.f32 %v4523_v38, %v4526_v37  ;;  %v4532_v48 = vmax.f32 %v4523_v38, %v4530_v10  ;;  %v4600_v8 = vld [vmem:[#allocation4] sm:$0xff]  ;;  %v6317_v10 = vld [vmem:[%s8010_s3 + $0xc8] sm:$0xff]   ;;  %v6318_v41 = vld [vmem:[%s8010_s3 + $0xd0] sm:$0xff]  }
 0x6f0   : > { %v6322_v57 = vld [vmem:[%s8010_s3 + $0xf0] sm:$0xff]  }
 0x6f1   : > { %v4453_v4 = vmax.f32 %v4440_v9, 0.0  ;;  %v4441_v24 = vadd.f32 %v7889_v46, %v4424_v60  ;;  %v4534_v33 = vrot.slane %v4528_v35, 1  ;;  %v4536_v3 = vrot.slane %v4528_v35, 2  ;;  %v6319_v9 = vld [vmem:[%s8010_s3 + $0xd8] sm:$0xff]   ;;  %v6320_v60 = vld [vmem:[%s8010_s3 + $0xe0] sm:$0xff]  }
 0x6f2   : > { %v4541_v54 = vsel %vm2671_vm0, %v4523_v38, %v4528_v35  ;;  %v4539_v27 = vrot.slane %v4532_v48, 3  ;;  %v6323_v35 = vld [vmem:[%s8010_s3 + $0xf8] sm:$0xff]   ;;  %v6333_v48 = vld [vmem:[#allocation3] sm:$0xff] }
 0x6f3   : > { %4466 = vst [vmem:[#allocation2 + $0x50] sm:$0xff] %v4453_v4  ;;  %v4454_v55 = vmax.f32 %v4441_v24, 0.0  ;;  %v4542_v16 = vsel %vm2673_vm1, %v4541_v54, %v4534_v33  ;;  %v5271_v4 = vld [vmem:[%s8011_s4 + $0x4] ss:$0 sm:$0xff] }
 0x6f4   : > { %v4548_v56 = vld [vmem:[#allocation2 + $0x42] sm:$0xff]  ;;  %v4549_v51 = vld [vmem:[#allocation2 + $0x4a] sm:$0x1]  ;;  %v4401_v12 = vpop.f32.mrb[236].mxu1  ;;  %v4543_v36 = vsel %vm2675_vm2, %v4542_v16, %v4536_v3 }
 0x6f5   : > { %v4550_v30 = vmax.f32 %v4546_v39, %v4548_v56  ;;  %v4551_v21 = vmax.f32 %v4547_v18, %v4549_v51  ;;  %4467 = vst [vmem:[#allocation2 + $0x58] sm:$0xff] %v4454_v55  ;;  %v4425_v59 = vmul.f32 %v7884_v47, %v4401_v12  ;;  %v5858_v15 = vpop.f32.mrb[237].mxu1  ;;  %v4544_v61 = vsel %vm2677_vm3, %v4543_v36, %v4539_v27  ;;  %v5272_v33 = vld [vmem:[%s8012_s5 + $0x4] ss:$0 sm:$0xff] }
 0x6f6   : > { %v4404_v53 = vpop.f32.mrb[238].mxu1  ;;  %4545 = vst [vmem:[#allocation4 + $0xa] sm:$0x1f] %v4544_v61 }
 0x6f7   : > { %v4553_v32 = vrot.slane %v4550_v30, 1  ;;  %v4557_v17 = vrot.slane %v4551_v21, 1  ;;  %v4442_v22 = vadd.f32 %v7889_v46, %v4425_v59  ;;  %v5859_v26 = vpop.f32.mrb[239].mxu1 }
 0x6f8   : > { %v6327_v26 = vld [vmem:[%s8010_s3 + $0x118] sm:$0xff]  }
 0x6f9   : > { %v4455_v14 = vmax.f32 %v4442_v22, 0.0  ;;  %v4555_v2 = vmax.f32 %v4550_v30, %v4553_v32  ;;  %v4559_v6 = vmax.f32 %v4550_v30, %v4557_v17  ;;  %v6324_v32 = vld [vmem:[%s8010_s3 + $0x100] sm:$0xff]   ;;  %v6325_v17 = vld [vmem:[%s8010_s3 + $0x108] sm:$0xff]   ;;  %v6326_v22 = vld [vmem:[%s8010_s3 + $0x110] sm:$0xff]  }
 0x6fa   : > { %v4573_v28 = vld [vmem:[#allocation2 + $0x4d] sm:$0xff]  ;;  %v4574_v43 = vld [vmem:[#allocation2 + $0x55] sm:$0x1] }
 0x6fb   : > { %v4577_v52 = vmax.f32 %v4573_v28, %v4454_v55  ;;  %4468 = vst [vmem:[#allocation2 + $0x60] sm:$0x7] %v4455_v14  ;;  %v4561_v29 = vrot.slane %v4555_v2, 1  ;;  %v4563_v50 = vrot.slane %v4555_v2, 2  ;;  %v4568_v47 = vsel %vm2671_vm0, %v4550_v30, %v4555_v2  ;;  %v6328_v14 = vld [vmem:[%s8010_s3 + $0x120] sm:$0xff]   ;;  %v6329_v2 = vld [vmem:[%s8010_s3 + $0x128] sm:$0xff]  }
 0x6fc   : > { %v4566_v44 = vrot.slane %v4559_v6, 3  ;;  %v6330_v6 = vld [vmem:[%s8010_s3 + $0x130] sm:$0xff]   ;;  %v6331_v28 = vld [vmem:[%s8010_s3 + $0x138] sm:$0xff]  }
 0x6fd   : > { %v4580_v11 = vrot.slane %v4577_v52, 1  ;;  %v4569_v5 = vsel %vm2673_vm1, %v4568_v47, %v4561_v29 }
 0x6fe   : > { %v4570_v31 = vsel %vm2675_vm2, %v4569_v5, %v4563_v50  ;;  %v5298_v50 = vld [vmem:[%s8012_s5 + $0x5] ss:$0 sm:$0xff] }
 0x6ff   : > { %v4582_v63 = vmax.f32 %v4577_v52, %v4580_v11  ;;  %v4571_v46 = vsel %vm2677_vm3, %v4570_v31, %v4566_v44 }
 0x700   : > { %4572 = vst [vmem:[#allocation4 + $0xf] sm:$0x1f] %v4571_v46 }
 0x701   : > { %v4588_v58 = vrot.slane %v4582_v63, 1  ;;  %v4595_v1 = vsel %vm2671_vm0, %v4577_v52, %v4582_v63  ;;  %v4590_v25 = vrot.slane %v4582_v63, 2 }
 0x702   : > { %v4576_v62 = vld [vmem:[#allocation2 + $0x60] sm:$0x1] }
 0x703   : > { %v4578_v13 = vmax.f32 %v4574_v43, %v4576_v62  ;;  %v4596_v19 = vsel %vm2673_vm1, %v4595_v1, %v4588_v58 }
 0x704   : > { %v4597_v45 = vsel %vm2675_vm2, %v4596_v19, %v4590_v25 }
 0x705   : > { %v4584_v42 = vrot.slane %v4578_v13, 1 }
 0x707   : > { %v4586_v20 = vmax.f32 %v4577_v52, %v4584_v42  ;;  %v4601_v7 = vld [vmem:[#allocation4 + $0x8] sm:$0xff]  ;;  %v5297_v52 = vld [vmem:[%s8011_s4 + $0x5] ss:$0 sm:$0xff] }
 0x708   : > { %v4604_v38 = vpack.c.bf16 %v4601_v7, %v4600_v8 }
 0x709   : > { %v4593_v34 = vrot.slane %v4586_v20, 3 }
 0x70a   : > { %5876 = vmatprep.mubr.bf16.mxu1 %v4604_v38 }
 0x70b   : > { %v4598_v23 = vsel %vm2677_vm3, %v4597_v45, %v4593_v34 }
 0x70c   : > { %4599 = vst [vmem:[#allocation4 + $0x14] sm:$0x1f] %v4598_v23 }
 0x713   : > { %v4602_v40 = vld [vmem:[#allocation4 + $0x10] sm:$0xff]  ;;  %v4603_v0 = vld [vmem:[#allocation4 + $0x18] sm:$0x1] }
 0x714   : > { %v4605_v37 = vpack.c.bf16 %v4603_v0, %v4602_v40 }
 0x716   : > { %5877 = vmatmul.mubr.bf16.vlgmr.msra.gmra.mrb[240].mxu1 %v4605_v37 }
 0x717   : > { %5881 = vmatpush3.bf16.msra.mxu1 %v7878_v49  ;;  %v6321_v49 = vld [vmem:[%s8010_s3 + $0xe8] sm:$0xff]  }
 0x718   : > { %5882 = vmatprep.subr.bf16.mxu1 %v6317_v10 }
 0x71b   : > { %5883 = vmatpush3.bf16.msra.mxu1 %v6317_v10 }
 0x71c   : > { %5884 = vmatprep.subr.bf16.mxu1 %v6318_v41 }
 0x71f   : > { %5885 = vmatpush3.bf16.msra.mxu1 %v6318_v41 }
 0x720   : > { %5886 = vmatprep.subr.bf16.mxu1 %v6319_v9 }
 0x723   : > { %5887 = vmatpush3.bf16.msra.mxu1 %v6319_v9  ;;  %v4998_v9 = vlaneseq }
 0x724   : > { %5888 = vmatprep.subr.bf16.mxu1 %v6320_v60 }
 0x727   : > { %5889 = vmatpush3.bf16.msra.mxu1 %v6320_v60  ;;  %v4999_v60 = vshrl.u32 %v4998_v9, 7 }
 0x728   : > { %5890 = vmatprep.subr.bf16.mxu1 %v6321_v49 }
 0x72b   : > { %5891 = vmatpush3.bf16.msra.mxu1 %v6321_v49  ;;  %v4909_v49 = vld [vmem:[%s8012_s5 + $0x6] sm:$0x1] }
 0x72c   : > { %5892 = vmatprep.subr.bf16.mxu1 %v6322_v57 }
 0x72f   : > { %5893 = vmatpush3.bf16.msra.mxu1 %v6322_v57  ;;  %v5000_v57 = vsub.s32 0, %v4999_v60 }
 0x730   : > { %5894 = vmatprep.subr.bf16.mxu1 %v6323_v35 }
 0x733   : > { %5895 = vmatpush3.bf16.msra.mxu1 %v6323_v35 }
 0x734   : > { %5900 = vmatprep.subr.bf16.mxu1 %v6333_v48 }
 0x7e9   : > { %v5878_v24 = vpop.f32.mrb[240].mxu1 }
 0x7ea   : > { %v4728_v3 = vmul.f32 %v5878_v24, %v5271_v4  ;;  %v4705_v54 = vpop.f32.mrb[241].mxu1 }
 0x7eb   : > { %v4726_v39 = vmul.f32 %v5271_v4, %v4705_v54  ;;  %v5879_v55 = vpop.f32.mrb[242].mxu1 }
 0x7ec   : > { %v4736_v27 = vadd.f32 %v5272_v33, %v4728_v3  ;;  %v4729_v16 = vmul.f32 %v5879_v55, %v5271_v4  ;;  %v4708_v18 = vpop.f32.mrb[243].mxu1 }
 0x7ed   : > { %v4734_v56 = vadd.f32 %v5272_v33, %v4726_v39  ;;  %v4727_v51 = vmul.f32 %v5271_v4, %v4708_v18 }
 0x7ee   : > { %v4737_v12 = vadd.f32 %v5272_v33, %v4729_v16  ;;  %v4740_v30 = vmax.f32 %v4736_v27, 0.0 }
 0x7ef   : > { %v4735_v36 = vadd.f32 %v5272_v33, %v4727_v51  ;;  %v4738_v59 = vmax.f32 %v4734_v56, 0.0 }
 0x7f0   : > { %v4741_v21 = vmax.f32 %v4737_v12, 0.0 }
 0x7f1   : > { %v4739_v15 = vmax.f32 %v4735_v36, 0.0 }
 0x7f2   : > { %v4743_v61 = vpack.c.bf16 %v4741_v21, %v4740_v30 }
 0x7f3   : > { %v4742_v53 = vpack.c.bf16 %v4739_v15, %v4738_v59 }
 0x7f5   : > { %5896 = vmatprep.mubr.bf16.mxu1 %v4742_v53 }
 0x7f6   : > { %5897 = vmatmul.mubr.bf16.vlgmr.msra.gmra.mrb[244].mxu1 %v4743_v61 }
 0x7f7   : > { %5916 = vmatprep.mubr.msk.bf16.mxu1 %vm6344_vm7, %v6333_v48  ;;  %5901 = vmatpush3.bf16.msra.mxu1 %v6324_v32 }
 0x7f8   : > { %5902 = vmatprep.subr.bf16.mxu1 %v6333_v48 }
 0x7fb   : > { %5903 = vmatpush3.bf16.msra.mxu1 %v6325_v17 }
 0x7fc   : > { %5904 = vmatprep.subr.bf16.mxu1 %v6333_v48 }
 0x7ff   : > { %5905 = vmatpush3.bf16.msra.mxu1 %v6326_v22 }
 0x800   : > { %5906 = vmatprep.subr.bf16.mxu1 %v6333_v48 }
 0x803   : > { %5907 = vmatpush3.bf16.msra.mxu1 %v6327_v26 }
 0x804   : > { %5908 = vmatprep.subr.bf16.mxu1 %v6333_v48 }
 0x807   : > { %5909 = vmatpush3.bf16.msra.mxu1 %v6328_v14 }
 0x808   : > { %5910 = vmatprep.subr.bf16.mxu1 %v6333_v48 }
 0x80b   : > { %5911 = vmatpush3.bf16.msra.mxu1 %v6329_v2 }
 0x80c   : > { %5912 = vmatprep.subr.bf16.mxu1 %v6333_v48 }
 0x80f   : > { %5913 = vmatpush3.bf16.msra.mxu1 %v6330_v6 }
 0x810   : > { %5914 = vmatprep.subr.bf16.mxu1 %v6333_v48 }
 0x813   : > { %5915 = vmatpush3.bf16.msra.mxu1 %v6331_v28 }
 0x8c9   : > { %v5898_v29 = vpop.f32.mrb[244].mxu1 }
 0x8ca   : > { %v4843_v47 = vpop.f32.mrb[245].mxu1  ;;  %v4866_v11 = vmul.f32 %v5898_v29, %v5297_v52 }
 0x8cb   : > { %v4864_v44 = vmul.f32 %v5297_v52, %v4843_v47  ;;  %v5899_v5 = vpop.f32.mrb[246].mxu1 }
 0x8cc   : > { %v4867_v31 = vmul.f32 %v5899_v5, %v5297_v52  ;;  %v4846_v63 = vpop.f32.mrb[247].mxu1  ;;  %v4874_v58 = vadd.f32 %v5298_v50, %v4866_v11 }
 0x8cd   : > { %v4872_v46 = vadd.f32 %v5298_v50, %v4864_v44  ;;  %v4865_v43 = vmul.f32 %v5297_v52, %v4846_v63 }
 0x8ce   : > { %v4875_v62 = vadd.f32 %v5298_v50, %v4867_v31  ;;  %v4878_v20 = vmax.f32 %v4874_v58, 0.0 }
 0x8cf   : > { %v4873_v13 = vadd.f32 %v5298_v50, %v4865_v43  ;;  %v4876_v1 = vmax.f32 %v4872_v46, 0.0 }
 0x8d0   : > { %v4879_v25 = vmax.f32 %v4875_v62, 0.0 }
 0x8d1   : > { %v4877_v42 = vmax.f32 %v4873_v13, 0.0 }
 0x8d2   : > { %v4882_v19 = vsel %vm2671_vm0, %v4879_v25, 0.0 }
 0x8d3   : > { %v4880_v8 = vadd.f32 %v4877_v42, %v4876_v1 }
 0x8d5   : > { %v4881_v7 = vadd.f32 %v4880_v8, %v4878_v20 }
 0x8d7   : > { %v4883_v38 = vadd.f32 %v4882_v19, %v4881_v7 }
 0x8d9   : > { %v4884_v34 = vrot.slane %v4883_v38, 4 }
 0x8db   : > { %v4885_v45 = vadd.f32 %v4884_v34, %v4883_v38 }
 0x8dd   : > { %v4886_v23 = vrot.slane %v4885_v45, 2 }
 0x8df   : > { %v4887_v40 = vadd.f32 %v4886_v23, %v4885_v45 }
 0x8e1   : > { %v4888_v0 = vrot.slane %v4887_v40, 1 }
 0x8e3   : > { %v4889_v37 = vadd.f32 %v4888_v0, %v4887_v40 }
 0x8e5   : > { %v4890_v10 = vmul.f32 0.04, %v4889_v37 }
 0x8e7   : > { %v4891_v41 = vpack.c.bf16 %v4890_v10, %v4890_v10 }
 0x8e9   : > { %5917 = vmatmul.mubr.bf16.vlgmr.msra.gmra.mrb[248].mxu1 %v4891_v41 }
 0x9bc   : > { %v4992_v35 = vpop.f32.mrb[248].mxu1 }
 0x9bd   : > { %v4993_v48 = vadd.f32 %v4992_v35, %v4909_v49  ;;  %v5918_v4 = vpop.f32.mrb[249].mxu1 }
 0x9be   : > { %v4995_v24 = vpop.f32.mrb[250].mxu1 }
 0x9bf   : > { %v5001_v33 = vrot.slane %v4993_v48, %v5000_v57  ;;  %v5919_v3 = vpop.f32.mrb[251].mxu1 }
 0x9c1   : > { %5002 = vst [vmem:[%s249_s11] sm:$0xff] %v5001_v33 }
 0x9c2 PF: > { %s16_s21 = sadd.s32 1, %s6340_s21  }
 0x9c3   : > { %p13_p4 = scmp.ge.s32.totalorder %s16_s21, 4  }
 0x9c5   :  { %15 = sbr.rel (!%p13_p4) target bundleno = 1 (0x1), region = 78 }

</bundles_post_ra>
